<compile_context>
chip_gen: v5e
topology: v5e:2x2
jax: 0.10.0
libtpu: 0.0.40
codegen_flags: <defaults>
</compile_context>

<pallas_src>
import functools

import jax
import jax.numpy as jnp
from jax import lax
from jax.experimental import pallas as pl
from jax.experimental.pallas import tpu as pltpu


# ----------------------- per-generation configuration -----------------------


def _pick_block():
    # v5* has a 128-wide MXU and the least HBM BW -> BLOCK=128 halves intra-block
    # FLOPs and VMEM; v6e/v7x keep 256 to fill the 256-wide MXU.
    try:
        kind = jax.devices()[0].device_kind.lower()
    except Exception:
        kind = ""
    return 128 if "v5" in kind else 256


def _vmem_budget():
    # ~75% of physical per-core VMEM (64 MiB on v7x, 128 MiB on v5e/v6e).
    try:
        cap = pltpu.get_tpu_info().vmem_capacity_bytes
    except Exception:
        cap = 64 * 1024 * 1024
    return int(cap * 3 // 4)


BLOCK = _pick_block()
VMEM_LIMIT = _vmem_budget()


def _row_tile(rows):
    for t in (256, 128, 64, 32, 16, 8):
        if rows % t == 0:
            return t
    return rows


def _col_tile(cols):
    for t in (512, 256, 128):
        if cols % t == 0:
            return t
    return cols          # small / non-128-multiple: full width (== array dim)


def _heads_per_group(num_heads, head_dim):
    # Largest head group whose lane width is a multiple of 128 and <= 1024 lanes.
    if (num_heads * head_dim) % 128 != 0:
        return num_heads                     # tiny test config: one lane-dense slab
    g = num_heads
    for cand in range(1, num_heads + 1):
        if (num_heads % cand == 0 and (cand * head_dim) % 128 == 0
                and cand * head_dim <= 1024):
            g = cand
    return g


# ----------------------------- Pallas kernels ------------------------------


def _silu_qkv_kernel(x_ref, wq_ref, wk_ref, wv_ref, q_ref, k_ref, v_ref):
    # x: (TM, D); w*: (D, TC) column tiles (resident across the row axis).
    x = x_ref[...]
    for w_ref, o_ref in ((wq_ref, q_ref), (wk_ref, k_ref), (wv_ref, v_ref)):
        y = jnp.dot(x, w_ref[...], preferred_element_type=jnp.float32)
        o_ref[...] = (y * jax.nn.sigmoid(y)).astype(o_ref.dtype)


def _lightning_attn_kernel(slope_ref, blen_ref, dd_ref, q_ref, k_ref, v_ref,
                           o_ref, kv_ref, *, heads_per_group, head_dim):
    # One grid point == (batch, head_group, seq_block).
    # q/k/v/o: (BLOCK, G*Dh) lane-dense slabs; dd: (G, BLOCK, BLOCK) precomputed
    # causal-decay table (resident per group); kv: (G, Dh, Dh) f32, resident
    # across the sequence axis and used directly as the recurrence accumulator.
    gi = pl.program_id(1)
    si = pl.program_id(2)

    @pl.when(si == 0)
    def _():
        kv_ref[...] = jnp.zeros_like(kv_ref)

    blk = q_ref.shape[0]
    m_f = blen_ref[si].astype(jnp.float32)                   # true rows in this block
    rows_f = lax.broadcasted_iota(jnp.float32, (blk, 1), 0)
    row_valid = rows_f < m_f

    for h in range(heads_per_group):                          # bounded static unroll
        s = slope_ref[gi * heads_per_group + h]
        lo = h * head_dim
        hi = lo + head_dim
        qi = q_ref[:, lo:hi]
        ki = k_ref[:, lo:hi]
        vi = v_ref[:, lo:hi]

        q_decay = jnp.exp(-s * (rows_f + 1.0))                                # (blk, 1)
        k_decay = jnp.where(row_valid,
                            jnp.exp(jnp.minimum(-s * (m_f - 1.0 - rows_f), 0.0)),
                            0.0)                                              # (blk, 1)

        kv_h = kv_ref[h]                                                      # (Dh, Dh) f32
        # inter-block (history) contribution — native-dtype MXU operands, f32 acc.
        qd = (qi.astype(jnp.float32) * q_decay).astype(qi.dtype)
        inter = jnp.dot(qd, kv_h.astype(qi.dtype),
                        preferred_element_type=jnp.float32)
        # intra-block (decayed causal) contribution — precomputed decay table.
        qk = lax.dot_general(qi, ki, (((1,), (1,)), ((), ())),
                             preferred_element_type=jnp.float32) * dd_ref[h]
        intra = jnp.dot(qk.astype(vi.dtype), vi,
                        preferred_element_type=jnp.float32)
        o_ref[:, lo:hi] = (inter + intra).astype(o_ref.dtype)

        # kv recurrence (accumulated directly in the resident output block).
        kd = (ki.astype(jnp.float32) * k_decay).astype(vi.dtype)
        kv_ref[h] = jnp.exp(-s * m_f) * kv_h + lax.dot_general(
            kd, vi, (((0,), (0,)), ((), ())), preferred_element_type=jnp.float32)


def _gate_norm_kernel(attn_full_ref, attn_ref, x_ref, normw_ref, gatew_ref,
                      y_ref, *, eps):
    # attn_full: (TM, H*Dh) full row (for the variance); attn: (TM, TC) column
    # slice of the same array; x: (TM, D); norm/gate weight column tiles resident.
    a_full = attn_full_ref[...].astype(jnp.float32)
    inv_rms = lax.rsqrt(jnp.mean(a_full * a_full, axis=-1, keepdims=True) + eps)
    normed = normw_ref[...] * (attn_ref[...].astype(jnp.float32) * inv_rms)
    gate = jax.nn.sigmoid(jnp.dot(x_ref[...], gatew_ref[...],
                                  preferred_element_type=jnp.float32))
    y_ref[...] = (gate * normed).astype(y_ref.dtype)


def _out_proj_kernel(y_ref, w_ref, o_ref):
    o_ref[...] = jnp.dot(y_ref[...], w_ref[...],
                         preferred_element_type=jnp.float32).astype(o_ref.dtype)


# ------------------------------- wrappers -----------------------------------


def lightning_attention_core(q, k, v, slope, dd, block_len, *, num_heads,
                             head_dim, block):
    b, n_pad, hd = q.shape
    num_blocks = n_pad // block
    g = _heads_per_group(num_heads, head_dim)
    num_groups = num_heads // g
    gdh = g * head_dim

    kernel = functools.partial(_lightning_attn_kernel,
                               heads_per_group=g, head_dim=head_dim)
    out, kv = pl.pallas_call(
        kernel,
        out_shape=(jax.ShapeDtypeStruct((b, n_pad, hd), q.dtype),
                   jax.ShapeDtypeStruct((b, num_heads, head_dim, head_dim),
                                        jnp.float32)),
        grid=(b, num_groups, num_blocks),
        in_specs=[
            pl.BlockSpec(memory_space=pltpu.MemorySpace.SMEM),   # slope (H,) f32
            pl.BlockSpec(memory_space=pltpu.MemorySpace.SMEM),   # block_len (NB,) i32
            pl.BlockSpec((g, block, block), lambda bi, gi, si: (gi, 0, 0)),   # dd table
            pl.BlockSpec((None, block, gdh), lambda bi, gi, si: (bi, si, gi)),
            pl.BlockSpec((None, block, gdh), lambda bi, gi, si: (bi, si, gi)),
            pl.BlockSpec((None, block, gdh), lambda bi, gi, si: (bi, si, gi)),
        ],
        out_specs=(
            pl.BlockSpec((None, block, gdh), lambda bi, gi, si: (bi, si, gi)),
            pl.BlockSpec((None, g, head_dim, head_dim),
                         lambda bi, gi, si: (bi, gi, 0, 0)),   # resident accumulator
        ),
        compiler_params=pltpu.CompilerParams(
            dimension_semantics=("parallel", "parallel", "arbitrary"),
            vmem_limit_bytes=VMEM_LIMIT),
    )(slope, block_len, dd, q, k, v)
    return out, kv


def minimax_lightning_attention(x, params, slope_rate, num_heads, head_dim):
    b, n, d = x.shape
    hd = num_heads * head_dim
    block = BLOCK
    num_blocks = (n + block - 1) // block
    n_pad = num_blocks * block

    x_p = jnp.pad(x, ((0, 0), (0, n_pad - n), (0, 0))) if n_pad != n else x
    rows = b * n_pad
    x2 = x_p.reshape(rows, d)
    tm = _row_tile(rows)
    tc = _col_tile(hd)

    # Split the qkv weight (torch column order [head, (q|k|v), dh]) into three
    # (d, H*Dh) slabs with [head, dh] column order (one-time weight reshuffle).
    w_qkv = params["qkv_w_t"].reshape(d, num_heads, 3, head_dim)
    w_q = w_qkv[:, :, 0].reshape(d, hd)
    w_k = w_qkv[:, :, 1].reshape(d, hd)
    w_v = w_qkv[:, :, 2].reshape(d, hd)

    # 1) SiLU(qkv_proj): column-tiled matmul, weight column tiles resident.
    q2, k2, v2 = pl.pallas_call(
        _silu_qkv_kernel,
        out_shape=tuple(jax.ShapeDtypeStruct((rows, hd), x.dtype) for _ in range(3)),
        grid=(hd // tc, rows // tm),
        in_specs=[pl.BlockSpec((tm, d), lambda j, i: (i, 0)),
                  pl.BlockSpec((d, tc), lambda j, i: (0, j)),
                  pl.BlockSpec((d, tc), lambda j, i: (0, j)),
                  pl.BlockSpec((d, tc), lambda j, i: (0, j))],
        out_specs=tuple(pl.BlockSpec((tm, tc), lambda j, i: (i, j)) for _ in range(3)),
        compiler_params=pltpu.CompilerParams(
            dimension_semantics=("parallel", "parallel"),
            vmem_limit_bytes=VMEM_LIMIT),
    )(x2, w_q, w_k, w_v)

    q = q2.reshape(b, n_pad, hd)
    k = k2.reshape(b, n_pad, hd)
    v = v2.reshape(b, n_pad, hd)

    # 2) Lightning attention core (Pallas).
    slope = slope_rate.astype(jnp.float32).reshape(num_heads)
    idx = jnp.arange(block, dtype=jnp.float32)
    dist = idx[:, None] - idx[None, :]
    dd = jnp.exp(jnp.where(dist >= 0.0, -slope[:, None, None] * dist,
                           -jnp.inf)).astype(jnp.float32)            # (H, BLOCK, BLOCK)
    block_len = jnp.minimum(block, n - jnp.arange(num_blocks) * block).astype(jnp.int32)

    attn, kv_state = lightning_attention_core(
        q, k, v, slope, dd, block_len,
        num_heads=num_heads, head_dim=head_dim, block=block)

    # 3) RMSNorm + sigmoid output gate (fused, column-tiled over H*Dh).
    attn2 = attn.reshape(rows, hd)
    tcg = _col_tile(hd)
    y = pl.pallas_call(
        functools.partial(_gate_norm_kernel, eps=1e-6),
        out_shape=jax.ShapeDtypeStruct((rows, hd), x.dtype),
        grid=(hd // tcg, rows // tm),
        in_specs=[pl.BlockSpec((tm, hd), lambda j, i: (i, 0)),   # full row (variance)
                  pl.BlockSpec((tm, tcg), lambda j, i: (i, j)),  # column slice
                  pl.BlockSpec((tm, d), lambda j, i: (i, 0)),
                  pl.BlockSpec((1, tcg), lambda j, i: (0, j)),
                  pl.BlockSpec((d, tcg), lambda j, i: (0, j))],
        out_specs=pl.BlockSpec((tm, tcg), lambda j, i: (i, j)),
        compiler_params=pltpu.CompilerParams(
            dimension_semantics=("parallel", "parallel"),
            vmem_limit_bytes=VMEM_LIMIT),
    )(attn2, attn2, x2, params["norm_w"].reshape(1, hd).astype(jnp.float32),
      params["gate_w_t"])

    # 4) out_proj (column-tiled over the hidden dimension).
    tcd = _col_tile(d)
    out2 = pl.pallas_call(
        _out_proj_kernel,
        out_shape=jax.ShapeDtypeStruct((rows, d), x.dtype),
        grid=(d // tcd, rows // tm),
        in_specs=[pl.BlockSpec((tm, hd), lambda j, i: (i, 0)),
                  pl.BlockSpec((hd, tcd), lambda j, i: (0, j))],
        out_specs=pl.BlockSpec((tm, tcd), lambda j, i: (i, j)),
        compiler_params=pltpu.CompilerParams(
            dimension_semantics=("parallel", "parallel"),
            vmem_limit_bytes=VMEM_LIMIT),
    )(y, params["out_w_t"])

    out = out2.reshape(b, n_pad, d)[:, :n]
    # TODO(synk): decode path (past_key_value is not None) not implemented.
    return out, None, kv_state


# --------------------------- params / reference -----------------------------


def init_params(key, hidden, num_heads, head_dim, scale=0.02):
    hd = num_heads * head_dim
    k1, k2, k3 = jax.random.split(key, 3)
    qkv_w = scale * jax.random.normal(k1, (3 * hd, hidden), jnp.float32)  # torch (out,in)
    gate_w = scale * jax.random.normal(k2, (hd, hidden), jnp.float32)
    out_w = scale * jax.random.normal(k3, (hidden, hd), jnp.float32)
    return {
        "qkv_w_t": qkv_w.T,                    # (hidden, 3*hd), [head,(q|k|v),dh] cols
        "gate_w_t": gate_w.T,                  # (hidden, hd)
        "out_w_t": out_w.T,                    # (hd, hidden)
        "norm_w": jnp.ones((hd,), jnp.float32),
    }


def build_slope_rate(num_heads):
    return jnp.array([2.0 ** (-8.0 * (i + 1) / num_heads) for i in range(num_heads)],
                     jnp.float32)


def ref_forward(x, params, slope_rate, num_heads, head_dim):
    b, n, d = x.shape
    hd = num_heads * head_dim
    y = x.reshape(b * n, d) @ params["qkv_w_t"]
    qkv = (y * jax.nn.sigmoid(y)).reshape(b, n, num_heads, 3 * head_dim)
    q, k, v = jnp.split(qkv, 3, axis=-1)
    q = jnp.transpose(q, (0, 2, 1, 3)).astype(jnp.float32)
    k = jnp.transpose(k, (0, 2, 1, 3)).astype(jnp.float32)
    v = jnp.transpose(v, (0, 2, 1, 3)).astype(jnp.float32)

    s = slope_rate.reshape(num_heads, 1, 1).astype(jnp.float32)
    arr = jnp.arange(BLOCK, dtype=jnp.float32) + 1.0
    q_decay = jnp.exp(-s * arr.reshape(-1, 1))
    k_decay = jnp.exp(-s * (BLOCK - arr.reshape(-1, 1)))
    index = arr[:, None] - arr[None, :]
    s_index = jnp.where(index >= 0, -(s[None] * index[None, None]), -jnp.inf)
    diag_decay = jnp.exp(s_index)

    kv_state = jnp.zeros((b, num_heads, head_dim, head_dim), jnp.float32)
    outs = []
    num_blocks = (n + BLOCK - 1) // BLOCK
    for i in range(num_blocks):
        si = i * BLOCK
        ei = min(si + BLOCK, n)
        m = ei - si
        qi, ki, vi = q[:, :, si:ei], k[:, :, si:ei], v[:, :, si:ei]
        qkv_none_diag = jnp.einsum("bhmd,bhde->bhme", qi * q_decay[:, :m], kv_state)
        qk = jnp.einsum("bhmd,bhkd->bhmk", qi, ki) * diag_decay[:, :, :m, :m]
        qkv_diag = jnp.einsum("bhmk,bhke->bhme", qk, vi)
        block_decay = jnp.exp(-s * m)
        outs.append(qkv_none_diag + qkv_diag)
        kv_state = block_decay * kv_state + jnp.einsum(
            "bhmd,bhme->bhde", ki * k_decay[:, -m:], vi)
    out = jnp.concatenate(outs, axis=2)

    out = jnp.transpose(out, (0, 2, 1, 3)).reshape(b, n, hd)
    var = jnp.mean(out * out, axis=-1, keepdims=True)
    out = params["norm_w"] * (out * lax.rsqrt(var + 1e-6))
    out = jax.nn.sigmoid(x @ params["gate_w_t"]) * out
    out = out @ params["out_w_t"]
    return out, kv_state


# ---------------------------------- main -------------------------------------

if __name__ == "__main__":
    B, N, HIDDEN = 2, 300, 32          # N > BLOCK so the chunked recurrence + tail run
    NUM_HEADS, HEAD_DIM = 2, 16

    key = jax.random.PRNGKey(0)
    kx, kp = jax.random.split(key)
    x = jax.random.normal(kx, (B, N, HIDDEN), jnp.float32)
    params = init_params(kp, HIDDEN, NUM_HEADS, HEAD_DIM)
    slope_rate = build_slope_rate(NUM_HEADS)

    out, attn_weights, kv = minimax_lightning_attention(
        x, params, slope_rate, NUM_HEADS, HEAD_DIM)
    jax.block_until_ready((out, kv))

    ref_out, ref_kv = ref_forward(x, params, slope_rate, NUM_HEADS, HEAD_DIM)
    assert out.shape == (B, N, HIDDEN)
    assert kv.shape == (B, NUM_HEADS, HEAD_DIM, HEAD_DIM)
    if not (jnp.allclose(out, ref_out, rtol=2e-2, atol=2e-4)
            and jnp.allclose(kv, ref_kv, rtol=2e-2, atol=2e-4)):
        raise AssertionError("Pallas output does not match JAX reference")
    print("KERNEL_OK")
</pallas_src>

<mosaic_0001>
module attributes {stable_mosaic.version = 11 : i64} {
  func.func @_silu_qkv_kernel(%arg0: i32, %arg1: i32, %arg2: memref<256x32xf32, #tpu.memory_space<vmem>>, %arg3: memref<32x32xf32, #tpu.memory_space<vmem>>, %arg4: memref<32x32xf32, #tpu.memory_space<vmem>>, %arg5: memref<32x32xf32, #tpu.memory_space<vmem>>, %arg6: memref<256x32xf32, #tpu.memory_space<vmem>>, %arg7: memref<256x32xf32, #tpu.memory_space<vmem>>, %arg8: memref<256x32xf32, #tpu.memory_space<vmem>>) attributes {dimension_semantics = [#tpu.dimension_semantics<parallel>, #tpu.dimension_semantics<parallel>], iteration_bounds = array<i64: 1, 4>, scalar_prefetch = 0 : i64, scratch_operands = 0 : i64, tpu.core_type = #tpu.core_type<tc>, window_params = [{transform_indices = @transform_0, window_bounds = array<i64: 256, 32>}, {transform_indices = @transform_1, window_bounds = array<i64: 32, 32>}, {transform_indices = @transform_2, window_bounds = array<i64: 32, 32>}, {transform_indices = @transform_3, window_bounds = array<i64: 32, 32>}, {transform_indices = @transform_4, window_bounds = array<i64: 256, 32>}, {transform_indices = @transform_5, window_bounds = array<i64: 256, 32>}, {transform_indices = @transform_6, window_bounds = array<i64: 256, 32>}]} {
    %c0 = arith.constant 0 : index
    %c0_0 = arith.constant 0 : index
    %0 = vector.load %arg2[%c0, %c0_0] : memref<256x32xf32, #tpu.memory_space<vmem>>, vector<256x32xf32>
    %c0_1 = arith.constant 0 : index
    %c0_2 = arith.constant 0 : index
    %1 = vector.load %arg3[%c0_1, %c0_2] : memref<32x32xf32, #tpu.memory_space<vmem>>, vector<32x32xf32>
    %cst = arith.constant dense<0.000000e+00> : vector<256x32xf32>
    %2 = tpu.matmul %0, %1, %cst {dimension_numbers = #tpu.dot_dimension_numbers<[1], [0], [0], [1], [0, 0, 1, 1], [], []>} : vector<256x32xf32>, vector<32x32xf32>, vector<256x32xf32> -> vector<256x32xf32>
    %3 = arith.negf %2 : vector<256x32xf32>
    %4 = math.exp %3 : vector<256x32xf32>
    %cst_3 = arith.constant 1.000000e+00 : f32
    %5 = vector.broadcast %cst_3 : f32 to vector<256x32xf32>
    %6 = arith.addf %5, %4 : vector<256x32xf32>
    %7 = arith.divf %5, %6 : vector<256x32xf32>
    %8 = arith.mulf %2, %7 : vector<256x32xf32>
    %c0_4 = arith.constant 0 : index
    %c0_5 = arith.constant 0 : index
    %9 = vector.load %arg6[%c0_4, %c0_5] : memref<256x32xf32, #tpu.memory_space<vmem>>, vector<256x32xf32>
    tpu.vector_store %arg6[%c0_4, %c0_5], %8 {strides = array<i32>} : memref<256x32xf32, #tpu.memory_space<vmem>>, vector<256x32xf32>,
    %c0_6 = arith.constant 0 : index
    %c0_7 = arith.constant 0 : index
    %10 = vector.load %arg4[%c0_6, %c0_7] : memref<32x32xf32, #tpu.memory_space<vmem>>, vector<32x32xf32>
    %cst_8 = arith.constant dense<0.000000e+00> : vector<256x32xf32>
    %11 = tpu.matmul %0, %10, %cst_8 {dimension_numbers = #tpu.dot_dimension_numbers<[1], [0], [0], [1], [0, 0, 1, 1], [], []>} : vector<256x32xf32>, vector<32x32xf32>, vector<256x32xf32> -> vector<256x32xf32>
    %12 = arith.negf %11 : vector<256x32xf32>
    %13 = math.exp %12 : vector<256x32xf32>
    %cst_9 = arith.constant 1.000000e+00 : f32
    %14 = vector.broadcast %cst_9 : f32 to vector<256x32xf32>
    %15 = arith.addf %14, %13 : vector<256x32xf32>
    %16 = arith.divf %14, %15 : vector<256x32xf32>
    %17 = arith.mulf %11, %16 : vector<256x32xf32>
    %c0_10 = arith.constant 0 : index
    %c0_11 = arith.constant 0 : index
    %18 = vector.load %arg7[%c0_10, %c0_11] : memref<256x32xf32, #tpu.memory_space<vmem>>, vector<256x32xf32>
    tpu.vector_store %arg7[%c0_10, %c0_11], %17 {strides = array<i32>} : memref<256x32xf32, #tpu.memory_space<vmem>>, vector<256x32xf32>,
    %c0_12 = arith.constant 0 : index
    %c0_13 = arith.constant 0 : index
    %19 = vector.load %arg5[%c0_12, %c0_13] : memref<32x32xf32, #tpu.memory_space<vmem>>, vector<32x32xf32>
    %cst_14 = arith.constant dense<0.000000e+00> : vector<256x32xf32>
    %20 = tpu.matmul %0, %19, %cst_14 {dimension_numbers = #tpu.dot_dimension_numbers<[1], [0], [0], [1], [0, 0, 1, 1], [], []>} : vector<256x32xf32>, vector<32x32xf32>, vector<256x32xf32> -> vector<256x32xf32>
    %21 = arith.negf %20 : vector<256x32xf32>
    %22 = math.exp %21 : vector<256x32xf32>
    %cst_15 = arith.constant 1.000000e+00 : f32
    %23 = vector.broadcast %cst_15 : f32 to vector<256x32xf32>
    %24 = arith.addf %23, %22 : vector<256x32xf32>
    %25 = arith.divf %23, %24 : vector<256x32xf32>
    %26 = arith.mulf %20, %25 : vector<256x32xf32>
    %c0_16 = arith.constant 0 : index
    %c0_17 = arith.constant 0 : index
    %27 = vector.load %arg8[%c0_16, %c0_17] : memref<256x32xf32, #tpu.memory_space<vmem>>, vector<256x32xf32>
    tpu.vector_store %arg8[%c0_16, %c0_17], %26 {strides = array<i32>} : memref<256x32xf32, #tpu.memory_space<vmem>>, vector<256x32xf32>,
    return
  }
  func.func @transform_0(%arg0: i32, %arg1: i32) -> (i32, i32) {
    %c0_i32 = arith.constant 0 : i32
    %c0_i32_0 = arith.constant 0 : i32
    return %arg1, %c0_i32 : i32, i32
  }
  func.func @transform_1(%arg0: i32, %arg1: i32) -> (i32, i32) {
    %c0_i32 = arith.constant 0 : i32
    %c0_i32_0 = arith.constant 0 : i32
    return %c0_i32, %arg0 : i32, i32
  }
  func.func @transform_2(%arg0: i32, %arg1: i32) -> (i32, i32) {
    %c0_i32 = arith.constant 0 : i32
    %c0_i32_0 = arith.constant 0 : i32
    return %c0_i32, %arg0 : i32, i32
  }
  func.func @transform_3(%arg0: i32, %arg1: i32) -> (i32, i32) {
    %c0_i32 = arith.constant 0 : i32
    %c0_i32_0 = arith.constant 0 : i32
    return %c0_i32, %arg0 : i32, i32
  }
  func.func @transform_4(%arg0: i32, %arg1: i32) -> (i32, i32) {
    %c0_i32 = arith.constant 0 : i32
    return %arg1, %arg0 : i32, i32
  }
  func.func @transform_5(%arg0: i32, %arg1: i32) -> (i32, i32) {
    %c0_i32 = arith.constant 0 : i32
    return %arg1, %arg0 : i32, i32
  }
  func.func @transform_6(%arg0: i32, %arg1: i32) -> (i32, i32) {
    %c0_i32 = arith.constant 0 : i32
    return %arg1, %arg0 : i32, i32
  }
}

</mosaic_0001>

<bundles_post_ra>
// kernel: tpu_custom_call.1
= control target key start
LH: loop header
LB: loop body
LE: loop exit
PB: predicated region body
PF: predicated region fallthrough
CT: control target
= control target key end

     0   :  { %s3762_s21 = smov 0   ;;  %s3764_s22 = smov 0   ;;  %s5991_s0 = inlined_call_operand.vmem [shape: f32[1024,32], index: 0, kind: input, shape index: {}]   ;;  %s5992_s1 = inlined_call_operand.vmem [shape: f32[32,32], index: 1, kind: input, shape index: {}]   ;;  %s5993_s2 = inlined_call_operand.vmem [shape: f32[32,32], index: 2, kind: input, shape index: {}]   ;;  %s5994_s3 = inlined_call_operand.vmem [shape: f32[32,32], index: 3, kind: input, shape index: {}]   ;;  %s5995_s4 = inlined_call_operand.vmem [shape: f32[1024,32], index: 4, kind: output, shape index: {0}]   ;;  %s5996_s5 = inlined_call_operand.vmem [shape: f32[1024,32], index: 5, kind: output, shape index: {1}]   ;;  %s5997_s6 = inlined_call_operand.vmem [shape: f32[1024,32], index: 6, kind: output, shape index: {2}]  }
   0x1   :  { %s3766_s23 = smov 0  }
   0x2 LB: > { %s26_s24 = sadd.s32 1, %s3721_s22  ;;  %p3080_p0 = scmp.ge.s32.totalorder %s3725_s23, 1  ;;  %s3725_s23 = sphi %s3766_s23, %s17_s23   ;;  %s3721_s22 = sphi %s3764_s22, %s6141_s22   ;;  %s3717_s21 = sphi %s3762_s21, %s6140_s21  }
   0x3   : > { %p27_p1 = scmp.ge.s32.totalorder %s26_s24, 4  ;;  %p263_p2 = scmp.lt.s32.totalorder %s3725_s23, 5 }
   0x5   : > { %s6143_s24 = smov (%p27_p1, %s26_s24), 0  ;;  %p264_p3 = pnand %p3080_p0, %p263_p2 }
   0x6   : > { %s3081_s7 = sshll.u32 (!%p264_p3), %s3717_s21, 5 }
   0x7   : > { %267 = sbr.rel (%p264_p3) target bundleno = 570 (0x23a), region = 36  ;;  %p325_p4 = scmp.lt.s32.totalorder (!%p264_p3), %s3081_s7, 127 }
   0xc   : > { %v404_v0 = vld [vmem:[%s5992_s1 + $0x18] sm:$0xff]  ;;  %v403_v3 = vld [vmem:[%s5992_s1 + $0x10] sm:$0xff]  ;;  %v402_v6 = vld [vmem:[%s5992_s1 + $0x8] sm:$0xff]  ;;  %s6145_s7 = smov (!%p325_p4, %s3081_s7), 127  ;;  %vm405_vm0 = vcmask 261120  }
   0xd   : > { %v1290_v1 = vld [vmem:[%s5993_s2 + $0x18] sm:$0xff]  ;;  %514 = vmatpush.msra.mxu0 %v404_v0  ;;  %3283 = vmatpush.msra.mxu3 %v404_v0  ;;  %v1289_v4 = vld [vmem:[%s5993_s2 + $0x10] sm:$0xff]  ;;  %v1288_v7 = vld [vmem:[%s5993_s2 + $0x8] sm:$0xff]  ;;  %s3816_s29 = sshll.u32 %s6145_s7, 3 }
   0xe   : > { %v2079_v2 = vld [vmem:[%s5994_s3 + $0x18] sm:$0xff]  ;;  %v2078_v5 = vld [vmem:[%s5994_s3 + $0x10] sm:$0xff]  ;;  %1303 = vmatpush.msra.mxu1 %v1290_v1  ;;  %v2077_v8 = vld [vmem:[%s5994_s3 + $0x8] sm:$0xff]  ;;  %s3822_s9 = scalar_lea.vmem %s5991_s0, %s3816_s29  ;;  %s4066_s11 = scalar_lea.vmem %s5995_s4, %s3816_s29 }
   0xf   : > { %2092 = vmatpush.msra.mxu2 %v2079_v2  ;;  %515 = vmatpush.msra.mxu0 %v403_v3  ;;  %v401_v9 = vld [vmem:[%s5992_s1] sm:$0xff]  ;;  %v370_v14 = vld [vmem:[%s3822_s9 + $0x8] sm:$0xff]  ;;  %v371_v16 = vld [vmem:[%s3822_s9 + $0x10] sm:$0xff]  ;;  %s4088_s14 = scalar_lea.vmem %s5996_s5, %s3816_s29  ;;  %s4143_s17 = scalar_lea.vmem %s5997_s6, %s3816_s29 }
  0x10   : > { %3284 = vmatpush.msra.mxu3 %v403_v3  ;;  %1304 = vmatpush.msra.mxu1 %v1289_v4  ;;  %v1287_v10 = vld [vmem:[%s5993_s2] sm:$0xff]  ;;  %v3835_v15 = vld [vmem:[%s3822_s9 + $0xc8] sm:$0xff]  ;;  %v3844_v17 = vld [vmem:[%s3822_s9 + $0xd0] sm:$0xff] }
  0x11   : > { %2093 = vmatpush.msra.mxu2 %v2078_v5  ;;  %516 = vmatpush.msra.mxu0 %v402_v6  ;;  %v2076_v11 = vld [vmem:[%s5994_s3] sm:$0xff]  ;;  %v372_v18 = vld [vmem:[%s3822_s9 + $0x18] sm:$0xff]  ;;  %v374_v22 = vld [vmem:[%s3822_s9 + $0x28] sm:$0xff] }
  0x12   : > { %3285 = vmatpush.msra.mxu3 %v402_v6  ;;  %1305 = vmatpush.msra.mxu1 %v1288_v7  ;;  %v369_v12 = vld [vmem:[%s3822_s9] sm:$0xff]  ;;  %v3853_v19 = vld [vmem:[%s3822_s9 + $0xd8] sm:$0xff]  ;;  %v3871_v23 = vld [vmem:[%s3822_s9 + $0xe8] sm:$0xff] }
  0x13   : > { %2094 = vmatpush.msra.mxu2 %v2077_v8  ;;  %517 = vmatpush.msra.mxu0 %v401_v9  ;;  %v3826_v13 = vld [vmem:[%s3822_s9 + $0xc0] sm:$0xff]  ;;  %v375_v24 = vld [vmem:[%s3822_s9 + $0x30] sm:$0xff]  ;;  %v376_v26 = vld [vmem:[%s3822_s9 + $0x38] sm:$0xff] }
  0x14   : > { %3286 = vmatpush.msra.mxu3 %v401_v9  ;;  %1306 = vmatpush.msra.mxu1 %v1287_v10  ;;  %v373_v20 = vld [vmem:[%s3822_s9 + $0x20] sm:$0xff]  ;;  %v3880_v25 = vld [vmem:[%s3822_s9 + $0xf0] sm:$0xff]  ;;  %v3889_v27 = vld [vmem:[%s3822_s9 + $0xf8] sm:$0xff] }
  0x15   : > { %2095 = vmatpush.msra.mxu2 %v2076_v11  ;;  %3089 = vmatmul.msk.f32.vlgmr.msra.gmra.mxu0 %vm405_vm0, %v369_v12  ;;  %v3862_v21 = vld [vmem:[%s3822_s9 + $0xe0] sm:$0xff]  ;;  %v378_v29 = vld [vmem:[%s3822_s9 + $0x48] sm:$0xff]  ;;  %v379_v30 = vld [vmem:[%s3822_s9 + $0x50] sm:$0xff] }
  0x16   : > { %3113 = vmatmul.msk.f32.vlgmr.msra.gmra.mxu3 %vm405_vm0, %v3826_v13  ;;  %3153 = vmatmul.msk.f32.vlgmr.msra.gmra.mxu1 %vm405_vm0, %v369_v12  ;;  %v377_v28 = vld [vmem:[%s3822_s9 + $0x40] sm:$0xff]  ;;  %v380_v31 = vld [vmem:[%s3822_s9 + $0x58] sm:$0xff]  ;;  %v382_v33 = vld [vmem:[%s3822_s9 + $0x68] sm:$0xff] }
  0x17   : > { %3287 = vmatpush.msrb.mxu3 %v1290_v1  ;;  %3217 = vmatmul.msk.f32.vlgmr.msra.gmra.mxu2 %vm405_vm0, %v369_v12  ;;  %v381_v32 = vld [vmem:[%s3822_s9 + $0x60] sm:$0xff]  ;;  %v383_v34 = vld [vmem:[%s3822_s9 + $0x70] sm:$0xff]  ;;  %v384_v35 = vld [vmem:[%s3822_s9 + $0x78] sm:$0xff] }
  0x18   : > { %v385_v37 = vld [vmem:[%s3822_s9 + $0x80] sm:$0xff]  ;;  %v386_v45 = vld [vmem:[%s3822_s9 + $0x88] sm:$0xff]  ;;  %v387_v57 = vld [vmem:[%s3822_s9 + $0x90] sm:$0xff] }
  0x19   : > { %3288 = vmatpush.msrb.mxu3 %v1289_v4 }
  0x1b   : > { %3289 = vmatpush.msrb.mxu3 %v1288_v7 }
  0x1d   : > { %3290 = vmatpush.msrb.mxu3 %v1287_v10  ;;  %3090 = vmatmul.msk.f32.gmra.mxu0 %vm405_vm0, %v370_v14 }
  0x1e   : > { %3114 = vmatmul.msk.f32.gmra.mxu3 %vm405_vm0, %v3835_v15  ;;  %3154 = vmatmul.msk.f32.gmra.mxu1 %vm405_vm0, %v370_v14 }
  0x1f   : > { %3291 = vmatpush.msra.mxu3 %v2079_v2  ;;  %3218 = vmatmul.msk.f32.gmra.mxu2 %vm405_vm0, %v370_v14 }
  0x21   : > { %3292 = vmatpush.msra.mxu3 %v2078_v5 }
  0x23   : > { %3293 = vmatpush.msra.mxu3 %v2077_v8 }
  0x25   : > { %3294 = vmatpush.msra.mxu3 %v2076_v11  ;;  %3091 = vmatmul.msk.f32.gmra.mxu0 %vm405_vm0, %v371_v16 }
  0x26   : > { %3115 = vmatmul.msk.f32.gmra.mxu3 %vm405_vm0, %v3844_v17  ;;  %3155 = vmatmul.msk.f32.gmra.mxu1 %vm405_vm0, %v371_v16 }
  0x27   : > { %3219 = vmatmul.msk.f32.gmra.mxu2 %vm405_vm0, %v371_v16 }
  0x2d   : > { %3092 = vmatmul.msk.f32.gmra.mxu0 %vm405_vm0, %v372_v18 }
  0x2e   : > { %3116 = vmatmul.msk.f32.gmra.mxu3 %vm405_vm0, %v3853_v19  ;;  %3156 = vmatmul.msk.f32.gmra.mxu1 %vm405_vm0, %v372_v18 }
  0x2f   : > { %3220 = vmatmul.msk.f32.gmra.mxu2 %vm405_vm0, %v372_v18 }
  0x35   : > { %3093 = vmatmul.msk.f32.gmra.mxu0 %vm405_vm0, %v373_v20 }
  0x36   : > { %3117 = vmatmul.msk.f32.gmra.mxu3 %vm405_vm0, %v3862_v21  ;;  %3157 = vmatmul.msk.f32.gmra.mxu1 %vm405_vm0, %v373_v20 }
  0x37   : > { %3221 = vmatmul.msk.f32.gmra.mxu2 %vm405_vm0, %v373_v20 }
  0x3d   : > { %3094 = vmatmul.msk.f32.gmra.mxu0 %vm405_vm0, %v374_v22 }
  0x3e   : > { %3118 = vmatmul.msk.f32.gmra.mxu3 %vm405_vm0, %v3871_v23  ;;  %3158 = vmatmul.msk.f32.gmra.mxu1 %vm405_vm0, %v374_v22 }
  0x3f   : > { %3222 = vmatmul.msk.f32.gmra.mxu2 %vm405_vm0, %v374_v22 }
  0x45   : > { %3095 = vmatmul.msk.f32.gmra.mxu0 %vm405_vm0, %v375_v24 }
  0x46   : > { %3119 = vmatmul.msk.f32.gmra.mxu3 %vm405_vm0, %v3880_v25  ;;  %3159 = vmatmul.msk.f32.gmra.mxu1 %vm405_vm0, %v375_v24 }
  0x47   : > { %3223 = vmatmul.msk.f32.gmra.mxu2 %vm405_vm0, %v375_v24 }
  0x4d   : > { %3096 = vmatmul.msk.f32.gmra.mxu0 %vm405_vm0, %v376_v26 }
  0x4e   : > { %3120 = vmatmul.msk.f32.gmra.mxu3 %vm405_vm0, %v3889_v27  ;;  %3160 = vmatmul.msk.f32.gmra.mxu1 %vm405_vm0, %v376_v26 }
  0x4f   : > { %3224 = vmatmul.msk.f32.gmra.mxu2 %vm405_vm0, %v376_v26 }
  0x55   : > { %3097 = vmatmul.msk.f32.gmra.mxu0 %vm405_vm0, %v377_v28 }
  0x56   : > { %3177 = vmatmul.msk.f32.vlgmr.msrb.gmra.mxu3 %vm405_vm0, %v3826_v13  ;;  %3161 = vmatmul.msk.f32.gmra.mxu1 %vm405_vm0, %v377_v28 }
  0x57   : > { %3225 = vmatmul.msk.f32.gmra.mxu2 %vm405_vm0, %v377_v28 }
  0x5d   : > { %3098 = vmatmul.msk.f32.gmra.mxu0 %vm405_vm0, %v378_v29 }
  0x5e   : > { %3178 = vmatmul.msk.f32.gmra.mxu3 %vm405_vm0, %v3835_v15  ;;  %3162 = vmatmul.msk.f32.gmra.mxu1 %vm405_vm0, %v378_v29 }
  0x5f   : > { %3226 = vmatmul.msk.f32.gmra.mxu2 %vm405_vm0, %v378_v29 }
  0x65   : > { %3099 = vmatmul.msk.f32.gmra.mxu0 %vm405_vm0, %v379_v30 }
  0x66   : > { %3179 = vmatmul.msk.f32.gmra.mxu3 %vm405_vm0, %v3844_v17  ;;  %3163 = vmatmul.msk.f32.gmra.mxu1 %vm405_vm0, %v379_v30 }
  0x67   : > { %3227 = vmatmul.msk.f32.gmra.mxu2 %vm405_vm0, %v379_v30  ;;  %v388_v30 = vld [vmem:[%s3822_s9 + $0x98] sm:$0xff] }
  0x6d   : > { %3100 = vmatmul.msk.f32.gmra.mxu0 %vm405_vm0, %v380_v31 }
  0x6e   : > { %3180 = vmatmul.msk.f32.gmra.mxu3 %vm405_vm0, %v3853_v19  ;;  %3164 = vmatmul.msk.f32.gmra.mxu1 %vm405_vm0, %v380_v31 }
  0x6f   : > { %3228 = vmatmul.msk.f32.gmra.mxu2 %vm405_vm0, %v380_v31 }
  0x75   : > { %3101 = vmatmul.msk.f32.gmra.mxu0 %vm405_vm0, %v381_v32 }
  0x76   : > { %3181 = vmatmul.msk.f32.gmra.mxu3 %vm405_vm0, %v3862_v21  ;;  %3165 = vmatmul.msk.f32.gmra.mxu1 %vm405_vm0, %v381_v32 }
  0x77   : > { %3229 = vmatmul.msk.f32.gmra.mxu2 %vm405_vm0, %v381_v32 }
  0x7d   : > { %3102 = vmatmul.msk.f32.gmra.mxu0 %vm405_vm0, %v382_v33 }
  0x7e   : > { %3182 = vmatmul.msk.f32.gmra.mxu3 %vm405_vm0, %v3871_v23  ;;  %3166 = vmatmul.msk.f32.gmra.mxu1 %vm405_vm0, %v382_v33 }
  0x7f   : > { %3230 = vmatmul.msk.f32.gmra.mxu2 %vm405_vm0, %v382_v33 }
  0x85   : > { %3103 = vmatmul.msk.f32.gmra.mxu0 %vm405_vm0, %v383_v34 }
  0x86   : > { %3183 = vmatmul.msk.f32.gmra.mxu3 %vm405_vm0, %v3880_v25  ;;  %3167 = vmatmul.msk.f32.gmra.mxu1 %vm405_vm0, %v383_v34 }
  0x87   : > { %3231 = vmatmul.msk.f32.gmra.mxu2 %vm405_vm0, %v383_v34 }
  0x8d   : > { %3104 = vmatmul.msk.f32.gmra.mxu0 %vm405_vm0, %v384_v35 }
  0x8e   : > { %3184 = vmatmul.msk.f32.gmra.mxu3 %vm405_vm0, %v3889_v27  ;;  %3168 = vmatmul.msk.f32.gmra.mxu1 %vm405_vm0, %v384_v35 }
  0x8f   : > { %3232 = vmatmul.msk.f32.gmra.mxu2 %vm405_vm0, %v384_v35 }
  0x92   : > { %v3944_v36 = vpop.f32.mrf.mxu0 }
  0x93   : > { %v3121_v38 = vmul.f32 -1.442695, %v3944_v36  ;;  %v3948_v39 = vpop.f32.mrf.mxu1 }
  0x94   : > { %v3185_v40 = vmul.f32 -1.442695, %v3948_v39 }
  0x95   : > { %3319 = vpow2.f32 %v3121_v38  ;;  %3105 = vmatmul.msk.f32.gmra.mxu0 %vm405_vm0, %v385_v37 }
  0x96   : > { %3241 = vmatmul.msk.f32.vlgmr.msra.gmra.mxu3 %vm405_vm0, %v3826_v13  ;;  %3321 = vpow2.f32 %v3185_v40  ;;  %3169 = vmatmul.msk.f32.gmra.mxu1 %vm405_vm0, %v385_v37 }
  0x97   : > { %3233 = vmatmul.msk.f32.gmra.mxu2 %vm405_vm0, %v385_v37 }
  0x99   : > { %v3956_v41 = vpop.f32.mrf.mxu3 }
  0x9a   : > { %v3145_v42 = vmul.f32 -1.442695, %v3956_v41  ;;  %v3959_v43 = vpop.f32.mrf.mxu2  ;;  %v3961_v44 = vpop.f32.mrf.mxu0 }
  0x9b   : > { %v3320_v46 = vpop.eup %3319  ;;  %v3249_v47 = vmul.f32 -1.442695, %v3959_v43  ;;  %v3965_v48 = vpop.f32.mrf.mxu1  ;;  %v3122_v51 = vmul.f32 -1.442695, %v3961_v44 }
  0x9c   : > { %3323 = vpow2.f32 %v3145_v42  ;;  %v3322_v49 = vpop.eup %3321  ;;  %v3967_v50 = vadd.f32 1.0, %v3320_v46  ;;  %v3186_v53 = vmul.f32 -1.442695, %v3965_v48 }
  0x9d   : > { %v3970_v52 = vadd.f32 1.0, %v3322_v49  ;;  %3325 = vpow2.f32 %v3249_v47  ;;  %3106 = vmatmul.msk.f32.gmra.mxu0 %vm405_vm0, %v386_v45 }
  0x9e   : > { %3242 = vmatmul.msk.f32.gmra.mxu3 %vm405_vm0, %v3835_v15  ;;  %3327 = vrcp.f32 %v3967_v50  ;;  %3170 = vmatmul.msk.f32.gmra.mxu1 %vm405_vm0, %v386_v45  ;;  %v752_v56 = vand.u32 2147483647, %v3967_v50  ;;  %v754_v58 = vand.u32 2147483648, %v3967_v50  ;;  %vm748_vm1 = vweird.f32 %v3967_v50 }
  0x9f   : > { %3329 = vrcp.f32 %v3970_v52  ;;  %3234 = vmatmul.msk.f32.gmra.mxu2 %vm405_vm0, %v386_v45  ;;  %v1541_v59 = vand.u32 2147483647, %v3970_v52  ;;  %v1543_v0 = vand.u32 2147483648, %v3970_v52  ;;  %vm1537_vm2 = vweird.f32 %v3970_v52 }
  0xa0   : > { %3331 = vpow2.f32 %v3122_v51  ;;  %vm4000_vm3 = vcmp.eq.f32.partialorder %v752_v56, 8.507059e+37  ;;  %v755_v9 = vor.u32 1.1754944e-38, %v754_v58 }
  0xa1   : > { %v3980_v54 = vpop.f32.mrf.mxu3  ;;  %3333 = vpow2.f32 %v3186_v53  ;;  %vm4012_vm4 = vcmp.eq.f32.partialorder %v1541_v59, 8.507059e+37  ;;  %v1544_v14 = vor.u32 1.1754944e-38, %v1543_v0 }
  0xa2   : > { %v3324_v55 = vpop.eup %3323  ;;  %v3146_v61 = vmul.f32 -1.442695, %v3980_v54  ;;  %v3989_v62 = vpop.f32.mrf.mxu2 }
  0xa3   : > { %v3986_v60 = vadd.f32 1.0, %v3324_v55  ;;  %v3326_v63 = vpop.eup %3325  ;;  %v3995_v2 = vpop.f32.mrf.mxu0  ;;  %v3250_v7 = vmul.f32 -1.442695, %v3989_v62 }
  0xa4   : > { %v3328_v1 = vpop.eup %3327  ;;  %v4004_v6 = vadd.f32 1.0, %v3326_v63  ;;  %v3123_v15 = vmul.f32 -1.442695, %v3995_v2  ;;  %v4036_v33 = vpop.f32.mrf.mxu1 }
  0xa5   : > { %3335 = vrcp.f32 %v3986_v60  ;;  %v3997_v3 = vpop.eup %3329  ;;  %v744_v4 = vmul.f32 %v3328_v1, %v3967_v50  ;;  %3107 = vmatmul.msk.f32.gmra.mxu0 %vm405_vm0, %v387_v57  ;;  %vm749_vm5 = vweird.f32 %v3328_v1  ;;  %v1114_v24 = vand.u32 2147483648, %v3986_v60 }
  0xa6   : > { %3243 = vmatmul.msk.f32.gmra.mxu3 %vm405_vm0, %v3844_v17  ;;  %v3332_v8 = vpop.eup %3331  ;;  %v1533_v10 = vmul.f32 %v3997_v3, %v3970_v52  ;;  %3337 = vpow2.f32 %v3146_v61  ;;  %3171 = vmatmul.msk.f32.gmra.mxu1 %vm405_vm0, %v387_v57  ;;  %v1112_v17 = vand.u32 2147483647, %v3986_v60  ;;  %vm1538_vm6 = vweird.f32 %v3997_v3  ;;  %vm750_vm8 = vmor %vm748_vm1, %vm749_vm5 }
  0xa7   : > { %v3334_v12 = vpop.eup %3333  ;;  %v745_v13 = vsub.f32 1.0, %v744_v4  ;;  %3339 = vrcp.f32 %v4004_v6  ;;  %3235 = vmatmul.msk.f32.gmra.mxu2 %vm405_vm0, %v387_v57  ;;  %v4021_v18 = vadd.f32 1.0, %v3332_v8  ;;  %v2330_v29 = vand.u32 2147483647, %v4004_v6  ;;  %vm4054_vm10 = vmor %vm1537_vm2, %vm1538_vm6 }
  0xa8   : > { %v1534_v16 = vsub.f32 1.0, %v1533_v10  ;;  %v4023_v20 = vadd.f32 1.0, %v3334_v12  ;;  %3341 = vpow2.f32 %v3250_v7  ;;  %vm1108_vm7 = vweird.f32 %v3986_v60 }
  0xa9   : > { %v746_v22 = vmul.f32 %v3328_v1, %v745_v13  ;;  %3343 = vrcp.f32 %v4021_v18  ;;  %vm4042_vm9 = vcmp.eq.f32.partialorder %v1112_v17, 8.507059e+37  ;;  %v2332_v38 = vand.u32 2147483648, %v4004_v6  ;;  %v4122_v13 = vpop.f32.mrf.mxu3 }
  0xaa   : > { %v1535_v28 = vmul.f32 %v3997_v3, %v1534_v16  ;;  %3345 = vpow2.f32 %v3123_v15  ;;  %v1115_v47 = vor.u32 1.1754944e-38, %v1114_v24  ;;  %vm2326_vm11 = vweird.f32 %v4004_v6 }
  0xab   : > { %v4026_v26 = vpop.eup %3335  ;;  %v747_v31 = vadd.f32 %v3328_v1, %v746_v22  ;;  %3347 = vrcp.f32 %v4023_v20  ;;  %vm4075_vm12 = vcmp.eq.f32.partialorder %v2330_v29, 8.507059e+37  ;;  %vm763_vm14 = vweird.f32 %v4021_v18 }
  0xac   : > { %v1104_v32 = vmul.f32 %v4026_v26, %v3986_v60  ;;  %v3338_v34 = vpop.eup %3337  ;;  %v1536_v35 = vadd.f32 %v3997_v3, %v1535_v28  ;;  %vm1109_vm13 = vweird.f32 %v4026_v26  ;;  %v769_v7 = vand.u32 2147483648, %v4021_v18  ;;  %v4135_v28 = vpop.f32.mrf.mxu2 }
  0xad   : > { %v4048_v40 = vpop.eup %3339  ;;  %v751_v42 = vsel %vm750_vm8, %v3328_v1, %v747_v31  ;;  %3108 = vmatmul.msk.f32.gmra.mxu0 %vm405_vm0, %v388_v30  ;;  %v4102_v4 = vadd.f32 1.0, %v3338_v34  ;;  %vm1110_vm15 = vmor %vm1108_vm7, %vm1109_vm13  ;;  %vm1552_vm2 = vweird.f32 %v4023_v20  ;;  %v1556_v24 = vand.u32 2147483647, %v4023_v20 }
  0xae   : > { %v1105_v46 = vsub.f32 1.0, %v1104_v32  ;;  %3244 = vmatmul.msk.f32.gmra.mxu3 %vm405_vm0, %v3853_v19  ;;  %v756_v49 = vsel %vm4000_vm3, %v755_v9, %v751_v42  ;;  %v1540_v50 = vsel %vm4054_vm10, %v3997_v3, %v1536_v35  ;;  %v2322_v51 = vmul.f32 %v4048_v40, %v4004_v6  ;;  %3172 = vmatmul.msk.f32.gmra.mxu1 %vm405_vm0, %v388_v30  ;;  %v3342_v53 = vpop.eup %3341 }
  0xaf   : > { %v4080_v19 = vmul.f32 -1.442695, %v4036_v33  ;;  %v1223_v55 = vmul.f32 %v756_v49, %v3944_v36  ;;  %v1545_v56 = vsel %vm4012_vm4, %v1544_v14, %v1540_v50  ;;  %3236 = vmatmul.msk.f32.gmra.mxu2 %vm405_vm0, %v388_v30  ;;  %v3344_v58 = vpop.eup %3343  ;;  %v2333_v36 = vor.u32 1.1754944e-38, %v2332_v38  ;;  %v4168_v49 = vpop.f32.mrf.mxu0 }
  0xb0   : > { %v1106_v57 = vmul.f32 %v4026_v26, %v1105_v46  ;;  %v2012_v59 = vmul.f32 %v1545_v56, %v3948_v39  ;;  %v2323_v61 = vsub.f32 1.0, %v2322_v51  ;;  %v3346_v63 = vpop.eup %3345  ;;  %v759_v1 = vmul.f32 %v3344_v58, %v4021_v18  ;;  %v4170_v50 = vpop.f32.mrf.mxu1 }
  0xb1   : > { %1255 = vst.msk [vmem:[%s4066_s11] sm:$0xff] %vm405_vm0, %v1223_v55  ;;  %v767_v3 = vand.u32 2147483647, %v4021_v18  ;;  %v3348_v5 = vpop.eup %3347  ;;  %vm2327_vm1 = vweird.f32 %v4048_v40  ;;  %v4113_v8 = vadd.f32 1.0, %v3342_v53  ;;  %vm764_vm3 = vweird.f32 %v3344_v58 }
  0xb2   : > { %v1107_v0 = vadd.f32 %v4026_v26, %v1106_v57  ;;  %2044 = vst.msk [vmem:[%s4088_s14] sm:$0xff] %vm405_vm0, %v2012_v59  ;;  %v2324_v39 = vmul.f32 %v4048_v40, %v2323_v61  ;;  %v760_v10 = vsub.f32 1.0, %v759_v1  ;;  %v1548_v11 = vmul.f32 %v3348_v5, %v4023_v20  ;;  %vm2328_vm4 = vmor %vm2326_vm11, %vm2327_vm1 }
  0xb3   : > { %3349 = vrcp.f32 %v4102_v4  ;;  %v4127_v17 = vadd.f32 1.0, %v3346_v63  ;;  %vm1553_vm5 = vweird.f32 %v3348_v5  ;;  %vm765_vm6 = vmor %vm763_vm14, %vm764_vm3  ;;  %vm768_vm7 = vcmp.eq.f32.partialorder %v767_v3, 8.507059e+37 }
  0xb4   : > { %v1111_v9 = vsel %vm1110_vm15, %v4026_v26, %v1107_v0  ;;  %v2325_v60 = vadd.f32 %v4048_v40, %v2324_v39  ;;  %v761_v15 = vmul.f32 %v3344_v58, %v760_v10  ;;  %v1549_v16 = vsub.f32 1.0, %v1548_v11  ;;  %vm1554_vm8 = vmor %vm1552_vm2, %vm1553_vm5  ;;  %v4193_v3 = vpop.f32.mrf.mxu2 }
  0xb5   : > { %v1116_v12 = vsel %vm4042_vm9, %v1115_v47, %v1111_v9  ;;  %v1558_v26 = vand.u32 2147483648, %v4023_v20  ;;  %3351 = vrcp.f32 %v4113_v8  ;;  %v770_v30 = vor.u32 1.1754944e-38, %v769_v7 }
  0xb6   : > { %v1247_v14 = vmul.f32 %v1116_v12, %v3956_v41  ;;  %3245 = vmatmul.msk.f32.gmra.mxu3 %vm405_vm0, %v3862_v21  ;;  %v2329_v22 = vsel %vm2328_vm4, %v4048_v40, %v2325_v60  ;;  %v762_v41 = vadd.f32 %v3344_v58, %v761_v15  ;;  %v1550_v6 = vmul.f32 %v3348_v5, %v1549_v16 }
  0xb7   : > { %v2334_v21 = vsel %vm4075_vm12, %v2333_v36, %v2329_v22  ;;  %v1127_v31 = vand.u32 2147483647, %v4102_v4  ;;  %v1129_v35 = vand.u32 2147483648, %v4102_v4  ;;  %3353 = vrcp.f32 %v4127_v17 }
  0xb8   : > { %1279 = vst.msk [vmem:[%s4066_s11 + $0xc0] sm:$0xff] %vm405_vm0, %v1247_v14  ;;  %v2801_v29 = vmul.f32 %v2334_v21, %v3959_v43  ;;  %v766_v32 = vsel %vm765_vm6, %v3344_v58, %v762_v41  ;;  %v1551_v34 = vadd.f32 %v3348_v5, %v1550_v6  ;;  %vm1557_vm9 = vcmp.eq.f32.partialorder %v1556_v24, 8.507059e+37  ;;  %v4182_v58 = vpop.f32.mrf.mxu3  ;;  %v4209_v41 = vpop.f32.mrf.mxu0 }
  0xb9   : > { %v3350_v37 = vpop.eup %3349  ;;  %v771_v38 = vsel %vm768_vm7, %v770_v30, %v766_v32  ;;  %v1559_v43 = vor.u32 1.1754944e-38, %v1558_v26  ;;  %vm1123_vm10 = vweird.f32 %v4102_v4  ;;  %vm2341_vm11 = vweird.f32 %v4113_v8 }
  0xba   : > { %2833 = vst.msk [vmem:[%s4143_s17] sm:$0xff] %vm405_vm0, %v2801_v29  ;;  %v1224_v18 = vmul.f32 %v771_v38, %v3961_v44  ;;  %v1555_v40 = vsel %vm1554_vm8, %v3348_v5, %v1551_v34  ;;  %v1119_v42 = vmul.f32 %v3350_v37, %v4102_v4  ;;  %vm4162_vm12 = vcmp.eq.f32.partialorder %v1127_v31, 8.507059e+37  ;;  %v389_v44 = vld [vmem:[%s3822_s9 + $0xa0] sm:$0xff] }
  0xbb   : > { %v3352_v45 = vpop.eup %3351  ;;  %v1560_v46 = vsel %vm1557_vm9, %v1559_v43, %v1555_v40  ;;  %v2347_v20 = vand.u32 2147483648, %v4113_v8  ;;  %3355 = vpow2.f32 %v4080_v19  ;;  %v1130_v53 = vor.u32 1.1754944e-38, %v1129_v35  ;;  %3109 = vmatmul.msk.f32.gmra.mxu0 %vm405_vm0, %v389_v44  ;;  %3173 = vmatmul.msk.f32.gmra.mxu1 %vm405_vm0, %v389_v44 }
  0xbc   : > { %1256 = vst.msk [vmem:[%s4066_s11 + $0x8] sm:$0xff] %vm405_vm0, %v1224_v18  ;;  %v2013_v51 = vmul.f32 %v1560_v46, %v3965_v48  ;;  %v1120_v52 = vsub.f32 1.0, %v1119_v42  ;;  %v2337_v55 = vmul.f32 %v3352_v45, %v4113_v8  ;;  %vm1124_vm13 = vweird.f32 %v3350_v37  ;;  %3237 = vmatmul.msk.f32.gmra.mxu2 %vm405_vm0, %v389_v44  ;;  %v4241_v42 = vpop.f32.mrf.mxu2 }
  0xbd   : > { %v2345_v19 = vand.u32 2147483647, %v4113_v8  ;;  %v3147_v56 = vmul.f32 -1.442695, %v4122_v13  ;;  %v3251_v57 = vmul.f32 -1.442695, %v4135_v28  ;;  %v3354_v48 = vpop.eup %3353  ;;  %vm778_vm14 = vweird.f32 %v4127_v17  ;;  %vm1125_vm1 = vmor %vm1123_vm10, %vm1124_vm13  ;;  %v4211_v8 = vpop.f32.mrf.mxu1 }
  0xbe   : > { %3246 = vmatmul.msk.f32.gmra.mxu3 %vm405_vm0, %v3871_v23  ;;  %2045 = vst.msk [vmem:[%s4088_s14 + $0x8] sm:$0xff] %vm405_vm0, %v2013_v51  ;;  %v1121_v59 = vmul.f32 %v3350_v37, %v1120_v52  ;;  %v2338_v61 = vsub.f32 1.0, %v2337_v55  ;;  %v3124_v36 = vmul.f32 -1.442695, %v4168_v49  ;;  %v3188_v63 = vmul.f32 -1.442695, %v4170_v50 }
  0xbf   : > { %v2348_v0 = vor.u32 1.1754944e-38, %v2347_v20  ;;  %v774_v1 = vmul.f32 %v3354_v48, %v4127_v17  ;;  %3357 = vpow2.f32 %v3147_v56  ;;  %vm2342_vm15 = vweird.f32 %v3352_v45 }
  0xc0   : > { %v1122_v5 = vadd.f32 %v3350_v37, %v1121_v59  ;;  %v2339_v39 = vmul.f32 %v3352_v45, %v2338_v61  ;;  %3359 = vpow2.f32 %v3251_v57  ;;  %v784_v9 = vand.u32 2147483648, %v4127_v17  ;;  %vm2343_vm2 = vmor %vm2341_vm11, %vm2342_vm15 }
  0xc1   : > { %v3356_v23 = vpop.eup %3355  ;;  %v775_v7 = vsub.f32 1.0, %v774_v1  ;;  %3361 = vpow2.f32 %v3124_v36  ;;  %v3148_v10 = vmul.f32 -1.442695, %v4182_v58  ;;  %vm779_vm3 = vweird.f32 %v3354_v48 }
  0xc2   : > { %v1126_v11 = vsel %vm1125_vm1, %v3350_v37, %v1122_v5  ;;  %v2340_v12 = vadd.f32 %v3352_v45, %v2339_v39  ;;  %v4200_v60 = vadd.f32 1.0, %v3356_v23  ;;  %3363 = vpow2.f32 %v3188_v63  ;;  %vm780_vm5 = vmor %vm778_vm14, %vm779_vm3  ;;  %v391_v5 = vld [vmem:[%s3822_s9 + $0xb0] sm:$0xff] }
  0xc3   : > { %v1131_v14 = vsel %vm4162_vm12, %v1130_v53, %v1126_v11  ;;  %v776_v4 = vmul.f32 %v3354_v48, %v775_v7  ;;  %v782_v15 = vand.u32 2147483647, %v4127_v17  ;;  %vm2346_vm4 = vcmp.eq.f32.partialorder %v2345_v19, 8.507059e+37 }
  0xc4   : > { %v1248_v16 = vmul.f32 %v1131_v14, %v3980_v54  ;;  %v2344_v22 = vsel %vm2343_vm2, %v3352_v45, %v2340_v12  ;;  %3365 = vrcp.f32 %v4200_v60  ;;  %v785_v29 = vor.u32 1.1754944e-38, %v784_v9  ;;  %v390_v45 = vld [vmem:[%s3822_s9 + $0xa8] sm:$0xff] }
  0xc5   : > { %v3358_v24 = vpop.eup %3357  ;;  %v2349_v26 = vsel %vm2346_vm4, %v2348_v0, %v2344_v22  ;;  %v777_v21 = vadd.f32 %v3354_v48, %v776_v4  ;;  %3367 = vpow2.f32 %v3148_v10  ;;  %v3252_v31 = vmul.f32 -1.442695, %v4193_v3  ;;  %3110 = vmatmul.msk.f32.gmra.mxu0 %vm405_vm0, %v390_v45  ;;  %3174 = vmatmul.msk.f32.gmra.mxu1 %vm405_vm0, %v390_v45 }
  0xc6   : > { %3247 = vmatmul.msk.f32.gmra.mxu3 %vm405_vm0, %v3880_v25  ;;  %v3360_v6 = vpop.eup %3359  ;;  %1280 = vst.msk [vmem:[%s4066_s11 + $0xc8] sm:$0xff] %vm405_vm0, %v1248_v16  ;;  %v2802_v54 = vmul.f32 %v2349_v26, %v3989_v62  ;;  %v4221_v30 = vadd.f32 1.0, %v3358_v24  ;;  %vm783_vm6 = vcmp.eq.f32.partialorder %v782_v15, 8.507059e+37  ;;  %v4226_v25 = vpop.f32.mrf.mxu3  ;;  %v4232_v17 = vmul.f32 -1.442695, %v4209_v41  ;;  %3238 = vmatmul.msk.f32.gmra.mxu2 %vm405_vm0, %v390_v45 }
  0xc7   : > { %v3362_v32 = vpop.eup %3361  ;;  %v781_v34 = vsel %vm780_vm5, %v3354_v48, %v777_v21  ;;  %v4224_v35 = vadd.f32 1.0, %v3360_v6  ;;  %v4235_v38 = vmul.f32 -1.442695, %v4211_v8  ;;  %v1571_v18 = vand.u32 2147483647, %v4200_v60 }
  0xc8   : > { %v3364_v37 = vpop.eup %3363  ;;  %2834 = vst.msk [vmem:[%s4143_s17 + $0x8] sm:$0xff] %vm405_vm0, %v2802_v54  ;;  %v786_v62 = vsel %vm783_vm6, %v785_v29, %v781_v34  ;;  %3369 = vrcp.f32 %v4221_v30  ;;  %v1573_v40 = vand.u32 2147483648, %v4200_v60  ;;  %vm1567_vm7 = vweird.f32 %v4200_v60 }
  0xc9   : > { %v1225_v43 = vmul.f32 %v786_v62, %v3995_v2  ;;  %3371 = vrcp.f32 %v4224_v35  ;;  %v4245_v47 = vadd.f32 1.0, %v3362_v32  ;;  %v4248_v20 = vmul.f32 -1.442695, %v4226_v25 }
  0xca   : > { %v3366_v46 = vpop.eup %3365  ;;  %3373 = vpow2.f32 %v3252_v31  ;;  %v1142_v51 = vand.u32 2147483647, %v4221_v30  ;;  %v1144_v52 = vand.u32 2147483648, %v4221_v30  ;;  %v4257_v53 = vadd.f32 1.0, %v3364_v37 }
  0xcb   : > { %v3368_v2 = vpop.eup %3367  ;;  %1257 = vst.msk [vmem:[%s4066_s11 + $0x10] sm:$0xff] %vm405_vm0, %v1225_v43  ;;  %v1563_v44 = vmul.f32 %v3366_v46, %v4200_v60  ;;  %v2360_v55 = vand.u32 2147483647, %v4224_v35  ;;  %v2362_v19 = vand.u32 2147483648, %v4224_v35  ;;  %3375 = vrcp.f32 %v4245_v47 }
  0xcc   : > { %v4264_v56 = vmul.f32 -1.442695, %v4241_v42  ;;  %vm4266_vm8 = vcmp.eq.f32.partialorder %v1571_v18, 8.507059e+37  ;;  %v1574_v59 = vor.u32 1.1754944e-38, %v1573_v40  ;;  %3377 = vrcp.f32 %v4257_v53 }
  0xcd   : > { %v1564_v57 = vsub.f32 1.0, %v1563_v44  ;;  %vm1568_vm9 = vweird.f32 %v3366_v46  ;;  %vm1138_vm10 = vweird.f32 %v4221_v30  ;;  %vm2356_vm11 = vweird.f32 %v4224_v35  ;;  %3111 = vmatmul.msk.f32.gmra.mxu0 %vm405_vm0, %v391_v5  ;;  %3175 = vmatmul.msk.f32.gmra.mxu1 %vm405_vm0, %v391_v5 }
  0xce   : > { %3248 = vmatmul.msk.f32.gmra.mxu3 %vm405_vm0, %v3889_v27  ;;  %v3370_v61 = vpop.eup %3369  ;;  %v4275_v36 = vadd.f32 1.0, %v3368_v2  ;;  %vm4278_vm12 = vcmp.eq.f32.partialorder %v1142_v51, 8.507059e+37  ;;  %v1145_v39 = vor.u32 1.1754944e-38, %v1144_v52  ;;  %v797_v23 = vand.u32 2147483647, %v4245_v47  ;;  %vm1569_vm15 = vmor %vm1567_vm7, %vm1568_vm9  ;;  %3239 = vmatmul.msk.f32.gmra.mxu2 %vm405_vm0, %v391_v5 }
  0xcf   : > { %v3372_v63 = vpop.eup %3371  ;;  %v1565_v0 = vmul.f32 %v3366_v46, %v1564_v57  ;;  %v1134_v1 = vmul.f32 %v3370_v61, %v4221_v30  ;;  %vm4284_vm13 = vcmp.eq.f32.partialorder %v2360_v55, 8.507059e+37  ;;  %v2363_v10 = vor.u32 1.1754944e-38, %v2362_v19 }
  0xd0   : > { %v3374_v27 = vpop.eup %3373  ;;  %v2352_v7 = vmul.f32 %v3372_v63, %v4224_v35  ;;  %vm793_vm14 = vweird.f32 %v4245_v47  ;;  %v799_v11 = vand.u32 2147483648, %v4245_v47  ;;  %v1586_v4 = vand.u32 2147483647, %v4257_v53 }
  0xd1   : > { %v1566_v12 = vadd.f32 %v3366_v46, %v1565_v0  ;;  %v1135_v14 = vsub.f32 1.0, %v1134_v1  ;;  %3379 = vrcp.f32 %v4275_v36  ;;  %v3376_v15 = vpop.eup %3375  ;;  %vm1139_vm1 = vweird.f32 %v3370_v61  ;;  %v4344_v1 = vpop.f32.mrf.mxu0 }
  0xd2   : > { %v2353_v16 = vsub.f32 1.0, %v2352_v7  ;;  %vm1582_vm2 = vweird.f32 %v4257_v53  ;;  %v1588_v22 = vand.u32 2147483648, %v4257_v53  ;;  %v3378_v24 = vpop.eup %3377  ;;  %vm2357_vm3 = vweird.f32 %v3372_v63  ;;  %vm1140_vm6 = vmor %vm1138_vm10, %vm1139_vm1 }
  0xd3   : > { %v1570_v26 = vsel %vm1569_vm15, %v3366_v46, %v1566_v12  ;;  %v1136_v21 = vmul.f32 %v3370_v61, %v1135_v14  ;;  %v789_v6 = vmul.f32 %v3376_v15, %v4245_v47  ;;  %vm4298_vm4 = vcmp.eq.f32.partialorder %v797_v23, 8.507059e+37 }
  0xd4   : > { %v1575_v60 = vsel %vm4266_vm8, %v1574_v59, %v1570_v26  ;;  %v2354_v29 = vmul.f32 %v3372_v63, %v2353_v16  ;;  %v800_v31 = vor.u32 1.1754944e-38, %v799_v11  ;;  %v1578_v32 = vmul.f32 %v3378_v24, %v4257_v53  ;;  %vm2358_vm8 = vmor %vm2356_vm11, %vm2357_vm3 }
  0xd5   : > { %v2014_v34 = vmul.f32 %v1575_v60, %v4036_v33  ;;  %v1137_v37 = vadd.f32 %v3370_v61, %v1136_v21  ;;  %v790_v62 = vsub.f32 1.0, %v789_v6  ;;  %vm4306_vm5 = vcmp.eq.f32.partialorder %v1586_v4, 8.507059e+37 }
  0xd6   : > { %v2355_v18 = vadd.f32 %v3372_v63, %v2354_v29  ;;  %vm794_vm7 = vweird.f32 %v3376_v15  ;;  %v1579_v40 = vsub.f32 1.0, %v1578_v32  ;;  %v4313_v45 = vadd.f32 1.0, %v3374_v27  ;;  %v4351_v27 = vpop.f32.mrf.mxu1 }
  0xd7   : > { %v3380_v46 = vpop.eup %3379  ;;  %2046 = vst.msk [vmem:[%s4088_s14 + $0x10] sm:$0xff] %vm405_vm0, %v2014_v34  ;;  %v1141_v2 = vsel %vm1140_vm6, %v3370_v61, %v1137_v37  ;;  %v791_v33 = vmul.f32 %v3376_v15, %v790_v62  ;;  %vm1583_vm9 = vweird.f32 %v3378_v24  ;;  %3381 = vpow2.f32 %v4232_v17  ;;  %vm795_vm10 = vmor %vm793_vm14, %vm794_vm7 }
  0xd8   : > { %v1146_v30 = vsel %vm4278_vm12, %v1145_v39, %v1141_v2  ;;  %v2359_v44 = vsel %vm2358_vm8, %v3372_v63, %v2355_v18  ;;  %v1580_v51 = vmul.f32 %v3378_v24, %v1579_v40  ;;  %v1149_v52 = vmul.f32 %v3380_v46, %v4275_v36  ;;  %vm1584_vm11 = vmor %vm1582_vm2, %vm1583_vm9 }
  0xd9   : > { %v1249_v55 = vmul.f32 %v1146_v30, %v4122_v13  ;;  %v2364_v19 = vsel %vm4284_vm13, %v2363_v10, %v2359_v44  ;;  %v792_v35 = vadd.f32 %v3376_v15, %v791_v33  ;;  %v1589_v57 = vor.u32 1.1754944e-38, %v1588_v22  ;;  %v4365_v10 = vpop.f32.mrf.mxu3 }
  0xda   : > { %v2803_v48 = vmul.f32 %v2364_v19, %v4135_v28  ;;  %v1581_v17 = vadd.f32 %v3378_v24, %v1580_v51  ;;  %v1150_v59 = vsub.f32 1.0, %v1149_v52  ;;  %3383 = vrcp.f32 %v4313_v45 }
  0xdb   : > { %1281 = vst.msk [vmem:[%s4066_s11 + $0xd0] sm:$0xff] %vm405_vm0, %v1249_v55  ;;  %v796_v61 = vsel %vm795_vm10, %v3376_v15, %v792_v35  ;;  %vm1154_vm12 = vweird.f32 %v3380_v46  ;;  %v1157_v13 = vand.u32 2147483647, %v4275_v36  ;;  %v1159_v28 = vand.u32 2147483648, %v4275_v36 }
  0xdc   : > { %2835 = vst.msk [vmem:[%s4143_s17 + $0x10] sm:$0xff] %vm405_vm0, %v2803_v48  ;;  %v801_v47 = vsel %vm4298_vm4, %v800_v31, %v796_v61  ;;  %v1585_v63 = vsel %vm1584_vm11, %v3378_v24, %v1581_v17  ;;  %v1151_v0 = vmul.f32 %v3380_v46, %v1150_v59  ;;  %3385 = vpow2.f32 %v4235_v38  ;;  %v4388_v31 = vpop.f32.mrf.mxu2  ;;  %v392_v17 = vld [vmem:[%s3822_s9 + $0xb8] sm:$0xff] }
  0xdd   : > { %v3382_v53 = vpop.eup %3381  ;;  %v1226_v39 = vmul.f32 %v801_v47, %v4168_v49  ;;  %v1590_v23 = vsel %vm4306_vm5, %v1589_v57, %v1585_v63  ;;  %vm1153_vm13 = vweird.f32 %v4275_v36  ;;  %3387 = vpow2.f32 %v4248_v20  ;;  %3112 = vmatmul.msk.f32.gmra.mxu0 %vm405_vm0, %v392_v17  ;;  %3176 = vmatmul.msk.f32.gmra.mxu1 %vm405_vm0, %v392_v17 }
  0xde   : > { %v2015_v38 = vmul.f32 %v1590_v23, %v4170_v50  ;;  %v1152_v7 = vadd.f32 %v3380_v46, %v1151_v0  ;;  %v4356_v9 = vadd.f32 1.0, %v3382_v53  ;;  %vm1155_vm14 = vmor %vm1153_vm13, %vm1154_vm12  ;;  %v1160_v49 = vor.u32 1.1754944e-38, %v1159_v28  ;;  %v4402_v2 = vpop.f32.mrf.mxu1  ;;  %3240 = vmatmul.msk.f32.gmra.mxu2 %vm405_vm0, %v392_v17 }
  0xdf   : > { %1258 = vst.msk [vmem:[%s4066_s11 + $0x18] sm:$0xff] %vm405_vm0, %v1226_v39  ;;  %3389 = vpow2.f32 %v4264_v56  ;;  %v3126_v36 = vmul.f32 -1.442695, %v4344_v1  ;;  %vm1158_vm15 = vcmp.eq.f32.partialorder %v1157_v13, 8.507059e+37  ;;  %v3190_v20 = vmul.f32 -1.442695, %v4351_v27 }
  0xe0   : > { %v3384_v11 = vpop.eup %3383  ;;  %2047 = vst.msk [vmem:[%s4088_s14 + $0x18] sm:$0xff] %vm405_vm0, %v2015_v38  ;;  %v1156_v50 = vsel %vm1155_vm14, %v3380_v46, %v1152_v7  ;;  %3391 = vrcp.f32 %v4356_v9  ;;  %v2375_v4 = vand.u32 2147483647, %v4313_v45  ;;  %v2377_v16 = vand.u32 2147483648, %v4313_v45  ;;  %v4400_v46 = vpop.f32.mrf.mxu0 }
  0xe1   : > { %v1161_v12 = vsel %vm1158_vm15, %v1160_v49, %v1156_v50  ;;  %v2367_v14 = vmul.f32 %v3384_v11, %v4313_v45  ;;  %v3150_v22 = vmul.f32 -1.442695, %v4365_v10  ;;  %v812_v26 = vand.u32 2147483647, %v4356_v9 }
  0xe2   : > { %v3386_v56 = vpop.eup %3385  ;;  %v1250_v15 = vmul.f32 %v1161_v12, %v4182_v58  ;;  %3393 = vpow2.f32 %v3126_v36  ;;  %vm2371_vm1 = vweird.f32 %v4313_v45  ;;  %v814_v54 = vand.u32 2147483648, %v4356_v9 }
  0xe3   : > { %v2368_v24 = vsub.f32 1.0, %v2367_v14  ;;  %v4377_v21 = vadd.f32 1.0, %v3386_v56  ;;  %v3388_v6 = vpop.eup %3387  ;;  %3395 = vpow2.f32 %v3190_v20  ;;  %vm2372_vm2 = vweird.f32 %v3384_v11 }
  0xe4   : > { %1282 = vst.msk [vmem:[%s4066_s11 + $0xd8] sm:$0xff] %vm405_vm0, %v1250_v15  ;;  %vm4383_vm3 = vcmp.eq.f32.partialorder %v2375_v4, 8.507059e+37  ;;  %v2378_v34 = vor.u32 1.1754944e-38, %v2377_v16  ;;  %v4390_v37 = vadd.f32 1.0, %v3388_v6  ;;  %vm808_vm4 = vweird.f32 %v4356_v9  ;;  %vm2373_vm6 = vmor %vm2371_vm1, %vm2372_vm2 }
  0xe5   : > { %v3390_v60 = vpop.eup %3389  ;;  %v2369_v58 = vmul.f32 %v3384_v11, %v2368_v24  ;;  %3397 = vrcp.f32 %v4377_v21  ;;  %vm4396_vm5 = vcmp.eq.f32.partialorder %v812_v26, 8.507059e+37  ;;  %v815_v33 = vor.u32 1.1754944e-38, %v814_v54 }
  0xe6   : > { %v3392_v32 = vpop.eup %3391  ;;  %v4392_v62 = vadd.f32 1.0, %v3390_v60  ;;  %3399 = vpow2.f32 %v3150_v22  ;;  %v1601_v30 = vand.u32 2147483647, %v4377_v21  ;;  %v3254_v44 = vmul.f32 -1.442695, %v4388_v31 }
  0xe7   : > { %v2370_v43 = vadd.f32 %v3384_v11, %v2369_v58  ;;  %v804_v18 = vmul.f32 %v3392_v32, %v4356_v9  ;;  %3401 = vrcp.f32 %v4390_v37  ;;  %v1603_v19 = vand.u32 2147483648, %v4377_v21 }
  0xe8   : > { %v3394_v51 = vpop.eup %3393  ;;  %3403 = vrcp.f32 %v4392_v62  ;;  %vm1597_vm7 = vweird.f32 %v4377_v21  ;;  %v4416_v57 = vmul.f32 -1.442695, %v4400_v46  ;;  %v4419_v48 = vmul.f32 -1.442695, %v4402_v2  ;;  %v4522_v20 = vpop.f32.mrf.mxu0 }
  0xe9   : > { %v2374_v52 = vsel %vm2373_vm6, %v3384_v11, %v2370_v43  ;;  %v805_v55 = vsub.f32 1.0, %v804_v18  ;;  %v3396_v35 = vpop.eup %3395  ;;  %vm809_vm8 = vweird.f32 %v3392_v32  ;;  %v1172_v28 = vand.u32 2147483647, %v4390_v37 }
  0xea   : > { %v2379_v45 = vsel %vm4383_vm3, %v2378_v34, %v2374_v52  ;;  %vm4427_vm9 = vcmp.eq.f32.partialorder %v1601_v30, 8.507059e+37  ;;  %v4431_v5 = vadd.f32 1.0, %v3394_v51  ;;  %3405 = vpow2.f32 %v3254_v44  ;;  %vm810_vm11 = vmor %vm808_vm4, %vm809_vm8 }
  0xeb   : > { %v3398_v59 = vpop.eup %3397  ;;  %v2804_v61 = vmul.f32 %v2379_v45, %v4193_v3  ;;  %v806_v13 = vmul.f32 %v3392_v32, %v805_v55  ;;  %v1604_v53 = vor.u32 1.1754944e-38, %v1603_v19  ;;  %vm1168_vm10 = vweird.f32 %v4390_v37 }
  0xec   : > { %v3400_v47 = vpop.eup %3399  ;;  %v1593_v63 = vmul.f32 %v3398_v59, %v4377_v21  ;;  %v1174_v39 = vand.u32 2147483648, %v4390_v37  ;;  %vm2386_vm12 = vweird.f32 %v4392_v62  ;;  %v2390_v7 = vand.u32 2147483647, %v4392_v62 }
  0xed   : > { %2836 = vst.msk [vmem:[%s4143_s17 + $0x18] sm:$0xff] %vm405_vm0, %v2804_v61  ;;  %v807_v3 = vadd.f32 %v3392_v32, %v806_v13  ;;  %v3402_v23 = vpop.eup %3401  ;;  %3407 = vrcp.f32 %v4431_v5  ;;  %v4444_v49 = vadd.f32 1.0, %v3396_v35  ;;  %vm4447_vm13 = vcmp.eq.f32.partialorder %v1172_v28, 8.507059e+37  ;;  %v4495_v13 = vpop.f32.mrf.mxu3 }
  0xee   : > { %v1594_v38 = vsub.f32 1.0, %v1593_v63  ;;  %v3404_v36 = vpop.eup %3403  ;;  %v1164_v50 = vmul.f32 %v3402_v23, %v4390_v37  ;;  %v2392_v9 = vand.u32 2147483648, %v4392_v62  ;;  %v4452_v12 = vadd.f32 1.0, %v3400_v47 }
  0xef   : > { %v811_v11 = vsel %vm810_vm11, %v3392_v32, %v807_v3  ;;  %vm1598_vm14 = vweird.f32 %v3398_v59  ;;  %v2382_v56 = vmul.f32 %v3404_v36, %v4392_v62  ;;  %v1175_v22 = vor.u32 1.1754944e-38, %v1174_v39  ;;  %v4505_v3 = vpop.f32.mrf.mxu2 }
  0xf0   : > { %v816_v14 = vsel %vm4396_vm5, %v815_v33, %v811_v11  ;;  %v1595_v4 = vmul.f32 %v3398_v59, %v1594_v38  ;;  %v1165_v16 = vsub.f32 1.0, %v1164_v50  ;;  %v827_v24 = vand.u32 2147483647, %v4431_v5  ;;  %v3406_v26 = vpop.eup %3405  ;;  %vm1599_vm15 = vmor %vm1597_vm7, %vm1598_vm14 }
  0xf1   : > { %v1227_v15 = vmul.f32 %v816_v14, %v4209_v41  ;;  %v2383_v54 = vsub.f32 1.0, %v2382_v56  ;;  %v829_v60 = vand.u32 2147483648, %v4431_v5  ;;  %3409 = vrcp.f32 %v4444_v49 }
  0xf2   : > { %v1596_v6 = vadd.f32 %v3398_v59, %v1595_v4  ;;  %v1166_v58 = vmul.f32 %v3402_v23, %v1165_v16  ;;  %vm1169_vm1 = vweird.f32 %v3402_v23  ;;  %vm4465_vm2 = vcmp.eq.f32.partialorder %v2390_v7, 8.507059e+37 }
  0xf3   : > { %1259 = vst.msk [vmem:[%s4066_s11 + $0x20] sm:$0xff] %vm405_vm0, %v1227_v15  ;;  %3411 = vrcp.f32 %v4452_v12  ;;  %v3408_v29 = vpop.eup %3407  ;;  %v2384_v34 = vmul.f32 %v3404_v36, %v2383_v54  ;;  %vm2387_vm3 = vweird.f32 %v3404_v36  ;;  %v2393_v43 = vor.u32 1.1754944e-38, %v2392_v9  ;;  %vm1170_vm5 = vmor %vm1168_vm10, %vm1169_vm1 }
  0xf4   : > { %v1600_v32 = vsel %vm1599_vm15, %v3398_v59, %v1596_v6  ;;  %v1167_v40 = vadd.f32 %v3402_v23, %v1166_v58  ;;  %v819_v21 = vmul.f32 %v3408_v29, %v4431_v5  ;;  %vm823_vm4 = vweird.f32 %v4431_v5  ;;  %vm2388_vm7 = vmor %vm2386_vm12, %vm2387_vm3 }
  0xf5   : > { %v1605_v18 = vsel %vm4427_vm9, %v1604_v53, %v1600_v32  ;;  %v2385_v30 = vadd.f32 %v3404_v36, %v2384_v34  ;;  %vm4477_vm6 = vcmp.eq.f32.partialorder %v827_v24, 8.507059e+37  ;;  %v830_v51 = vor.u32 1.1754944e-38, %v829_v60 }
  0xf6   : > { %v2016_v33 = vmul.f32 %v1605_v18, %v4211_v8  ;;  %v1171_v52 = vsel %vm1170_vm5, %v3402_v23, %v1167_v40  ;;  %v820_v55 = vsub.f32 1.0, %v819_v21  ;;  %vm824_vm8 = vweird.f32 %v3408_v29 }
  0xf7   : > { %vm1612_vm9 = vweird.f32 %v4444_v49  ;;  %v3410_v19 = vpop.eup %3409  ;;  %v1176_v8 = vsel %vm4447_vm13, %v1175_v22, %v1171_v52  ;;  %v2389_v37 = vsel %vm2388_vm7, %v3404_v36, %v2385_v30  ;;  %v4488_v35 = vadd.f32 1.0, %v3406_v26  ;;  %vm825_vm11 = vmor %vm823_vm4, %vm824_vm8  ;;  %v4535_v22 = vpop.f32.mrf.mxu1 }
  0xf8   : > { %2048 = vst.msk [vmem:[%s4088_s14 + $0x20] sm:$0xff] %vm405_vm0, %v2016_v33  ;;  %3413 = vpow2.f32 %v4416_v57  ;;  %v1251_v62 = vmul.f32 %v1176_v8, %v4226_v25  ;;  %v2394_v17 = vsel %vm4465_vm2, %v2393_v43, %v2389_v37  ;;  %v821_v59 = vmul.f32 %v3408_v29, %v820_v55  ;;  %v4553_v43 = vpop.f32.mrf.mxu3 }
  0xf9   : > { %v3412_v45 = vpop.eup %3411  ;;  %v1608_v61 = vmul.f32 %v3410_v19, %v4444_v49  ;;  %v2805_v28 = vmul.f32 %v2394_v17, %v4241_v42  ;;  %v1616_v47 = vand.u32 2147483647, %v4444_v49  ;;  %v1618_v63 = vand.u32 2147483648, %v4444_v49 }
  0xfa   : > { %v1179_v57 = vmul.f32 %v3412_v45, %v4452_v12  ;;  %1283 = vst.msk [vmem:[%s4066_s11 + $0xe0] sm:$0xff] %vm405_vm0, %v1251_v62  ;;  %v822_v0 = vadd.f32 %v3408_v29, %v821_v59  ;;  %vm1183_vm10 = vweird.f32 %v4452_v12  ;;  %3415 = vrcp.f32 %v4488_v35 }
  0xfb   : > { %v1609_v25 = vsub.f32 1.0, %v1608_v61  ;;  %2837 = vst.msk [vmem:[%s4143_s17 + $0x20] sm:$0xff] %vm405_vm0, %v2805_v28  ;;  %vm1613_vm12 = vweird.f32 %v3410_v19  ;;  %v1187_v53 = vand.u32 2147483647, %v4452_v12  ;;  %v1189_v39 = vand.u32 2147483648, %v4452_v12 }
  0xfc   : > { %v1180_v42 = vsub.f32 1.0, %v1179_v57  ;;  %v826_v23 = vsel %vm825_vm11, %v3408_v29, %v822_v0  ;;  %3417 = vpow2.f32 %v4419_v48  ;;  %v3151_v7 = vmul.f32 -1.442695, %v4495_v13  ;;  %vm1614_vm15 = vmor %vm1612_vm9, %vm1613_vm12 }
  0xfd   : > { %v1610_v38 = vmul.f32 %v3410_v19, %v1609_v25  ;;  %v831_v11 = vsel %vm4477_vm6, %v830_v51, %v826_v23  ;;  %vm4518_vm13 = vcmp.eq.f32.partialorder %v1616_v47, 8.507059e+37  ;;  %vm1184_vm14 = vweird.f32 %v3412_v45  ;;  %v4591_v23 = vpop.f32.mrf.mxu0 }
  0xfe   : > { %v3414_v36 = vpop.eup %3413  ;;  %v1181_v50 = vmul.f32 %v3412_v45, %v1180_v42  ;;  %v1228_v9 = vmul.f32 %v831_v11, %v4344_v1  ;;  %3419 = vpow2.f32 %v3151_v7  ;;  %v1619_v48 = vor.u32 1.1754944e-38, %v1618_v63  ;;  %vm1185_vm2 = vmor %vm1183_vm10, %vm1184_vm14 }
  0xff   : > { %v1611_v14 = vadd.f32 %v3410_v19, %v1610_v38  ;;  %v4525_v4 = vadd.f32 1.0, %v3414_v36  ;;  %vm4530_vm1 = vcmp.eq.f32.partialorder %v1187_v53, 8.507059e+37  ;;  %v3255_v16 = vmul.f32 -1.442695, %v4505_v3 }
 0x100   : > { %v1182_v56 = vadd.f32 %v3412_v45, %v1181_v50  ;;  %v3416_v24 = vpop.eup %3415  ;;  %1260 = vst.msk [vmem:[%s4066_s11 + $0x28] sm:$0xff] %vm405_vm0, %v1228_v9  ;;  %v1190_v49 = vor.u32 1.1754944e-38, %v1189_v39  ;;  %v3128_v26 = vmul.f32 -1.442695, %v4522_v20  ;;  %v2405_v58 = vand.u32 2147483647, %v4488_v35 }
 0x101   : > { %v1615_v1 = vsel %vm1614_vm15, %v3410_v19, %v1611_v14  ;;  %3421 = vrcp.f32 %v4525_v4  ;;  %v2397_v60 = vmul.f32 %v3416_v24, %v4488_v35  ;;  %v2407_v32 = vand.u32 2147483648, %v4488_v35 }
 0x102   : > { %v1620_v6 = vsel %vm4518_vm13, %v1619_v48, %v1615_v1  ;;  %v1186_v54 = vsel %vm1185_vm2, %v3412_v45, %v1182_v56  ;;  %v3418_v41 = vpop.eup %3417  ;;  %v3192_v34 = vmul.f32 -1.442695, %v4535_v22  ;;  %3423 = vpow2.f32 %v3255_v16 }
 0x103   : > { %v2017_v29 = vmul.f32 %v1620_v6, %v4351_v27  ;;  %v1191_v12 = vsel %vm4530_vm1, %v1190_v49, %v1186_v54  ;;  %v2398_v40 = vsub.f32 1.0, %v2397_v60  ;;  %v4556_v21 = vadd.f32 1.0, %v3418_v41  ;;  %v4561_v27 = vpop.f32.mrf.mxu2 }
 0x104   : > { %v1252_v18 = vmul.f32 %v1191_v12, %v4365_v10  ;;  %v3420_v33 = vpop.eup %3419  ;;  %vm2401_vm3 = vweird.f32 %v4488_v35  ;;  %3425 = vpow2.f32 %v3128_v26  ;;  %vm2402_vm4 = vweird.f32 %v3416_v24 }
 0x105   : > { %2049 = vst.msk [vmem:[%s4088_s14 + $0x28] sm:$0xff] %vm405_vm0, %v2017_v29  ;;  %v2399_v30 = vmul.f32 %v3416_v24, %v2398_v40  ;;  %3427 = vrcp.f32 %v4556_v21  ;;  %v3152_v10 = vmul.f32 -1.442695, %v4553_v43  ;;  %vm4567_vm5 = vcmp.eq.f32.partialorder %v2405_v58, 8.507059e+37  ;;  %vm2403_vm7 = vmor %vm2401_vm3, %vm2402_vm4 }
 0x106   : > { %1284 = vst.msk [vmem:[%s4066_s11 + $0xe8] sm:$0xff] %vm405_vm0, %v1252_v18  ;;  %v2408_v52 = vor.u32 1.1754944e-38, %v2407_v32  ;;  %vm838_vm6 = vweird.f32 %v4525_v4  ;;  %v4572_v55 = vadd.f32 1.0, %v3420_v33  ;;  %3429 = vpow2.f32 %v3192_v34 }
 0x107   : > { %v3422_v44 = vpop.eup %3421  ;;  %v2400_v19 = vadd.f32 %v3416_v24, %v2399_v30  ;;  %v3256_v37 = vmul.f32 -1.442695, %v4561_v27  ;;  %v842_v45 = vand.u32 2147483647, %v4525_v4  ;;  %v844_v62 = vand.u32 2147483648, %v4525_v4 }
 0x108   : > { %v834_v8 = vmul.f32 %v3422_v44, %v4525_v4  ;;  %v1631_v17 = vand.u32 2147483647, %v4556_v21  ;;  %3431 = vrcp.f32 %v4572_v55  ;;  %v3424_v59 = vpop.eup %3423  ;;  %v1633_v47 = vand.u32 2147483648, %v4556_v21 }
 0x109   : > { %v2404_v61 = vsel %vm2403_vm7, %v3416_v24, %v2400_v19  ;;  %3433 = vpow2.f32 %v3152_v10  ;;  %vm839_vm8 = vweird.f32 %v3422_v44  ;;  %v1202_v57 = vand.u32 2147483647, %v4572_v55 }
 0x10a   : > { %v835_v28 = vsub.f32 1.0, %v834_v8  ;;  %v3426_v63 = vpop.eup %3425  ;;  %v2409_v35 = vsel %vm4567_vm5, %v2408_v52, %v2404_v61  ;;  %v4586_v0 = vadd.f32 1.0, %v3424_v59  ;;  %3435 = vpow2.f32 %v3256_v37  ;;  %vm840_vm11 = vmor %vm838_vm6, %vm839_vm8  ;;  %v4656_v61 = vpop.f32.mrf.mxu1 }
 0x10b   : > { %v3428_v25 = vpop.eup %3427  ;;  %v2806_v42 = vmul.f32 %v2409_v35, %v4388_v31  ;;  %v4589_v39 = vadd.f32 1.0, %v3426_v63  ;;  %vm4593_vm9 = vcmp.eq.f32.partialorder %v842_v45, 8.507059e+37  ;;  %v1204_v36 = vand.u32 2147483648, %v4572_v55 }
 0x10c   : > { %v836_v53 = vmul.f32 %v3422_v44, %v835_v28  ;;  %v1623_v7 = vmul.f32 %v3428_v25, %v4556_v21  ;;  %3437 = vrcp.f32 %v4586_v0  ;;  %v3430_v11 = vpop.eup %3429  ;;  %v845_v5 = vor.u32 1.1754944e-38, %v844_v62 }
 0x10d   : > { %2838 = vst.msk [vmem:[%s4143_s17 + $0x28] sm:$0xff] %vm405_vm0, %v2806_v42  ;;  %vm1627_vm10 = vweird.f32 %v4556_v21  ;;  %3439 = vrcp.f32 %v4589_v39  ;;  %vm4607_vm12 = vcmp.eq.f32.partialorder %v1631_v17, 8.507059e+37  ;;  %v1634_v48 = vor.u32 1.1754944e-38, %v1633_v47 }
 0x10e   : > { %v837_v31 = vadd.f32 %v3422_v44, %v836_v53  ;;  %v3432_v50 = vpop.eup %3431  ;;  %v1624_v9 = vsub.f32 1.0, %v1623_v7  ;;  %v3129_v56 = vmul.f32 -1.442695, %v4591_v23  ;;  %vm1198_vm13 = vweird.f32 %v4572_v55 }
 0x10f   : > { %v3434_v15 = vpop.eup %3433  ;;  %v1194_v24 = vmul.f32 %v3432_v50, %v4572_v55  ;;  %vm4614_vm14 = vcmp.eq.f32.partialorder %v1202_v57, 8.507059e+37  ;;  %vm1628_vm15 = vweird.f32 %v3428_v25  ;;  %v1205_v26 = vor.u32 1.1754944e-38, %v1204_v36  ;;  %v4660_v57 = vpop.f32.mrf.mxu3 }
 0x110   : > { %v841_v16 = vsel %vm840_vm11, %v3422_v44, %v837_v31  ;;  %v1625_v49 = vmul.f32 %v3428_v25, %v1624_v9  ;;  %v3436_v6 = vpop.eup %3435  ;;  %vm2416_vm1 = vweird.f32 %v4586_v0  ;;  %v2420_v58 = vand.u32 2147483647, %v4586_v0  ;;  %vm1629_vm3 = vmor %vm1627_vm10, %vm1628_vm15 }
 0x111   : > { %v846_v4 = vsel %vm4593_vm9, %v845_v5, %v841_v16  ;;  %v1195_v60 = vsub.f32 1.0, %v1194_v24  ;;  %v4623_v41 = vadd.f32 1.0, %v3430_v11  ;;  %v2422_v32 = vand.u32 2147483648, %v4586_v0 }
 0x112   : > { %v1229_v54 = vmul.f32 %v846_v4, %v4400_v46  ;;  %v3438_v29 = vpop.eup %3437  ;;  %v1626_v12 = vadd.f32 %v3428_v25, %v1625_v49  ;;  %vm853_vm2 = vweird.f32 %v4589_v39  ;;  %v4627_v34 = vadd.f32 1.0, %v3434_v15 }
 0x113   : > { %v3440_v18 = vpop.eup %3439  ;;  %v1196_v46 = vmul.f32 %v3432_v50, %v1195_v60  ;;  %vm1199_vm4 = vweird.f32 %v3432_v50  ;;  %v2412_v40 = vmul.f32 %v3438_v29, %v4586_v0  ;;  %3441 = vrcp.f32 %v4623_v41 }
 0x114   : > { %1261 = vst.msk [vmem:[%s4066_s11 + $0x30] sm:$0xff] %vm405_vm0, %v1229_v54  ;;  %v1630_v33 = vsel %vm1629_vm3, %v3428_v25, %v1626_v12  ;;  %v849_v30 = vmul.f32 %v3440_v18, %v4589_v39  ;;  %v857_v10 = vand.u32 2147483647, %v4589_v39  ;;  %v4638_v44 = vadd.f32 1.0, %v3436_v6  ;;  %vm1200_vm5 = vmor %vm1198_vm13, %vm1199_vm4 }
 0x115   : > { %v1635_v51 = vsel %vm4607_vm12, %v1634_v48, %v1630_v33  ;;  %v1197_v52 = vadd.f32 %v3432_v50, %v1196_v46  ;;  %v2413_v21 = vsub.f32 1.0, %v2412_v40  ;;  %3443 = vpow2.f32 %v3129_v56  ;;  %v4709_v46 = vpop.f32.mrf.mxu0  ;;  %v4711_v40 = vpop.f32.mrf.mxu1 }
 0x116   : > { %v2018_v19 = vmul.f32 %v1635_v51, %v4402_v2  ;;  %v850_v8 = vsub.f32 1.0, %v849_v30  ;;  %v859_v37 = vand.u32 2147483648, %v4589_v39  ;;  %3445 = vrcp.f32 %v4627_v34  ;;  %v4683_v39 = vpop.f32.mrf.mxu2 }
 0x117   : > { %v1201_v45 = vsel %vm1200_vm5, %v3432_v50, %v1197_v52  ;;  %v2414_v62 = vmul.f32 %v3438_v29, %v2413_v21  ;;  %vm2417_vm6 = vweird.f32 %v3438_v29  ;;  %v1646_v17 = vand.u32 2147483647, %v4623_v41 }
 0x118   : > { %2050 = vst.msk [vmem:[%s4088_s14 + $0x30] sm:$0xff] %vm405_vm0, %v2018_v19  ;;  %v1206_v59 = vsel %vm4614_vm14, %v1205_v26, %v1201_v45  ;;  %vm4652_vm7 = vcmp.eq.f32.partialorder %v2420_v58, 8.507059e+37  ;;  %v851_v55 = vmul.f32 %v3440_v18, %v850_v8  ;;  %vm854_vm8 = vweird.f32 %v3440_v18  ;;  %vm2418_vm9 = vmor %vm2416_vm1, %vm2417_vm6 }
 0x119   : > { %v3442_v28 = vpop.eup %3441  ;;  %v1253_v47 = vmul.f32 %v1206_v59, %v4495_v13  ;;  %v2415_v63 = vadd.f32 %v3438_v29, %v2414_v62  ;;  %v2423_v35 = vor.u32 1.1754944e-38, %v2422_v32  ;;  %3447 = vrcp.f32 %v4638_v44  ;;  %vm855_vm11 = vmor %vm853_vm2, %vm854_vm8 }
 0x11a   : > { %v852_v25 = vadd.f32 %v3440_v18, %v851_v55  ;;  %vm4664_vm10 = vcmp.eq.f32.partialorder %v857_v10, 8.507059e+37  ;;  %v860_v53 = vor.u32 1.1754944e-38, %v859_v37  ;;  %v1638_v38 = vmul.f32 %v3442_v28, %v4623_v41  ;;  %v4716_v10 = vpop.f32.mrf.mxu3 }
 0x11b   : > { %v3444_v7 = vpop.eup %3443  ;;  %1285 = vst.msk [vmem:[%s4066_s11 + $0xf0] sm:$0xff] %vm405_vm0, %v1253_v47  ;;  %v2419_v13 = vsel %vm2418_vm9, %v3438_v29, %v2415_v63  ;;  %vm1642_vm12 = vweird.f32 %v4623_v41  ;;  %vm4675_vm13 = vcmp.eq.f32.partialorder %v1646_v17, 8.507059e+37  ;;  %v1648_v36 = vand.u32 2147483648, %v4623_v41 }
 0x11c   : > { %v3446_v11 = vpop.eup %3445  ;;  %v2424_v31 = vsel %vm4652_vm7, %v2423_v35, %v2419_v13  ;;  %v856_v5 = vsel %vm855_vm11, %v3440_v18, %v852_v25  ;;  %v1639_v50 = vsub.f32 1.0, %v1638_v38  ;;  %v1217_v9 = vand.u32 2147483647, %v4627_v34 }
 0x11d   : > { %v2807_v14 = vmul.f32 %v2424_v31, %v4505_v3  ;;  %v861_v48 = vsel %vm4664_vm10, %v860_v53, %v856_v5  ;;  %v1209_v56 = vmul.f32 %v3446_v11, %v4627_v34  ;;  %v1219_v15 = vand.u32 2147483648, %v4627_v34  ;;  %v4754_v5 = vpop.f32.mrf.mxu1 }
 0x11e   : > { %v1230_v16 = vmul.f32 %v861_v48, %v4522_v20  ;;  %v1640_v24 = vmul.f32 %v3442_v28, %v1639_v50  ;;  %vm1643_vm14 = vweird.f32 %v3442_v28  ;;  %vm1213_vm15 = vweird.f32 %v4627_v34  ;;  %v4731_v62 = vpop.f32.mrf.mxu2 }
 0x11f   : > { %v3448_v1 = vpop.eup %3447  ;;  %2839 = vst.msk [vmem:[%s4143_s17 + $0x30] sm:$0xff] %vm405_vm0, %v2807_v14  ;;  %v1649_v4 = vor.u32 1.1754944e-38, %v1648_v36  ;;  %v1210_v49 = vsub.f32 1.0, %v1209_v56  ;;  %v4694_v26 = vadd.f32 1.0, %v3444_v7  ;;  %v3193_v3 = vmul.f32 -1.442695, %v4656_v61  ;;  %vm1644_vm2 = vmor %vm1642_vm12, %vm1643_vm14  ;;  %v4750_v36 = vpop.f32.mrf.mxu0 }
 0x120   : > { %1262 = vst.msk [vmem:[%s4066_s11 + $0x38] sm:$0xff] %vm405_vm0, %v1230_v16  ;;  %v1641_v6 = vadd.f32 %v3442_v28, %v1640_v24  ;;  %vm4699_vm1 = vcmp.eq.f32.partialorder %v1217_v9, 8.507059e+37  ;;  %v2427_v20 = vmul.f32 %v3448_v1, %v4638_v44  ;;  %v3209_v60 = vmul.f32 -1.442695, %v4660_v57 }
 0x121   : > { %v1211_v58 = vmul.f32 %v3446_v11, %v1210_v49  ;;  %vm1214_vm3 = vweird.f32 %v3446_v11  ;;  %v1220_v29 = vor.u32 1.1754944e-38, %v1219_v15  ;;  %3449 = vrcp.f32 %v4694_v26 }
 0x122   : > { %v1645_v12 = vsel %vm1644_vm2, %v3442_v28, %v1641_v6  ;;  %v2428_v32 = vsub.f32 1.0, %v2427_v20  ;;  %v2435_v18 = vand.u32 2147483647, %v4638_v44  ;;  %3451 = vpow2.f32 %v3193_v3  ;;  %vm1215_vm4 = vmor %vm1213_vm15, %vm1214_vm3  ;;  %v4760_v56 = vpop.f32.mrf.mxu3 }
 0x123   : > { %v1650_v33 = vsel %vm4675_vm13, %v1649_v4, %v1645_v12  ;;  %v1212_v41 = vadd.f32 %v3446_v11, %v1211_v58  ;;  %v2437_v30 = vand.u32 2147483648, %v4638_v44  ;;  %3453 = vpow2.f32 %v3209_v60 }
 0x124   : > { %v2019_v51 = vmul.f32 %v1650_v33, %v4535_v22  ;;  %v2429_v52 = vmul.f32 %v3448_v1, %v2428_v32  ;;  %vm2432_vm5 = vweird.f32 %v3448_v1  ;;  %v3257_v21 = vmul.f32 -1.442695, %v4683_v39 }
 0x125   : > { %v1216_v19 = vsel %vm1215_vm4, %v3446_v11, %v1212_v41  ;;  %vm2431_vm6 = vweird.f32 %v4638_v44  ;;  %v3130_v8 = vmul.f32 -1.442695, %v4709_v46  ;;  %v3194_v37 = vmul.f32 -1.442695, %v4711_v40 }
 0x126   : > { %2051 = vst.msk [vmem:[%s4088_s14 + $0x38] sm:$0xff] %vm405_vm0, %v2019_v51  ;;  %v1221_v22 = vsel %vm4699_vm1, %v1220_v29, %v1216_v19  ;;  %v2430_v45 = vadd.f32 %v3448_v1, %v2429_v52  ;;  %3455 = vpow2.f32 %v3257_v21  ;;  %v3210_v34 = vmul.f32 -1.442695, %v4716_v10  ;;  %vm2433_vm7 = vmor %vm2431_vm6, %vm2432_vm5 }
 0x127   : > { %v3450_v17 = vpop.eup %3449  ;;  %v1254_v59 = vmul.f32 %v1221_v22, %v4553_v43  ;;  %v2438_v44 = vor.u32 1.1754944e-38, %v2437_v30  ;;  %3457 = vpow2.f32 %v3130_v8  ;;  %vm2436_vm8 = vcmp.eq.f32.partialorder %v2435_v18, 8.507059e+37 }
 0x128   : > { %v3452_v2 = vpop.eup %3451  ;;  %v2434_v55 = vsel %vm2433_vm7, %v3448_v1, %v2430_v45  ;;  %v864_v28 = vmul.f32 %v3450_v17, %v4694_v26  ;;  %v874_v47 = vand.u32 2147483648, %v4694_v26  ;;  %3459 = vpow2.f32 %v3194_v37 }
 0x129   : > { %v3454_v63 = vpop.eup %3453  ;;  %1286 = vst.msk [vmem:[%s4066_s11 + $0xf8] sm:$0xff] %vm405_vm0, %v1254_v59  ;;  %v2439_v35 = vsel %vm2436_vm8, %v2438_v44, %v2434_v55  ;;  %v4738_v25 = vadd.f32 1.0, %v3452_v2  ;;  %v3258_v43 = vmul.f32 -1.442695, %v4731_v62  ;;  %3461 = vpow2.f32 %v3210_v34 }
 0x12a   : > { %v2808_v42 = vmul.f32 %v2439_v35, %v4561_v27  ;;  %v865_v53 = vsub.f32 1.0, %v864_v28  ;;  %v4742_v38 = vadd.f32 1.0, %v3454_v63  ;;  %vm868_vm9 = vweird.f32 %v4694_v26 }
 0x12b   : > { %3463 = vrcp.f32 %v4738_v25  ;;  %vm869_vm10 = vweird.f32 %v3450_v17  ;;  %v872_v0 = vand.u32 2147483647, %v4694_v26  ;;  %v875_v11 = vor.u32 1.1754944e-38, %v874_v47 }
 0x12c   : > { %v3456_v7 = vpop.eup %3455  ;;  %2840 = vst.msk [vmem:[%s4143_s17 + $0x38] sm:$0xff] %vm405_vm0, %v2808_v42  ;;  %v866_v13 = vmul.f32 %v3450_v17, %v865_v53  ;;  %3465 = vrcp.f32 %v4742_v38  ;;  %v1661_v9 = vand.u32 2147483647, %v4738_v25  ;;  %v1663_v14 = vand.u32 2147483648, %v4738_v25  ;;  %vm870_vm11 = vmor %vm868_vm9, %vm869_vm10 }
 0x12d   : > { %v3458_v27 = vpop.eup %3457  ;;  %v4752_v31 = vadd.f32 1.0, %v3456_v7  ;;  %3467 = vpow2.f32 %v3258_v43  ;;  %v1901_v16 = vand.u32 2147483647, %v4742_v38  ;;  %v1903_v24 = vand.u32 2147483648, %v4742_v38 }
 0x12e   : > { %v867_v50 = vadd.f32 %v3450_v17, %v866_v13  ;;  %v4758_v48 = vadd.f32 1.0, %v3458_v27  ;;  %v3460_v15 = vpop.eup %3459  ;;  %v3131_v1 = vmul.f32 -1.442695, %v4750_v36  ;;  %vm873_vm12 = vcmp.eq.f32.partialorder %v872_v0, 8.507059e+37 }
 0x12f   : > { %3469 = vrcp.f32 %v4752_v31  ;;  %v3462_v4 = vpop.eup %3461  ;;  %v3195_v3 = vmul.f32 -1.442695, %v4754_v5  ;;  %vm1657_vm13 = vweird.f32 %v4738_v25  ;;  %vm1897_vm14 = vweird.f32 %v4742_v38 }
 0x130   : > { %v871_v49 = vsel %vm870_vm11, %v3450_v17, %v867_v50  ;;  %3471 = vrcp.f32 %v4758_v48  ;;  %v4774_v26 = vmul.f32 -1.442695, %v4760_v56  ;;  %vm4778_vm15 = vcmp.eq.f32.partialorder %v1661_v9, 8.507059e+37 }
 0x131   : > { %v3464_v6 = vpop.eup %3463  ;;  %v876_v54 = vsel %vm873_vm12, %v875_v11, %v871_v49  ;;  %v1664_v12 = vor.u32 1.1754944e-38, %v1663_v14  ;;  %v2450_v32 = vand.u32 2147483647, %v4752_v31  ;;  %vm4784_vm1 = vcmp.eq.f32.partialorder %v1901_v16, 8.507059e+37 }
 0x132   : > { %v3466_v20 = vpop.eup %3465  ;;  %v1231_v60 = vmul.f32 %v876_v54, %v4591_v23  ;;  %v1653_v58 = vmul.f32 %v3464_v6, %v4738_v25  ;;  %v1904_v30 = vor.u32 1.1754944e-38, %v1903_v24  ;;  %3473 = vpow2.f32 %v3131_v1 }
 0x133   : > { %v3468_v18 = vpop.eup %3467  ;;  %v1893_v33 = vmul.f32 %v3466_v20, %v4742_v38  ;;  %v2452_v51 = vand.u32 2147483648, %v4752_v31  ;;  %v887_v52 = vand.u32 2147483647, %v4758_v48  ;;  %v4792_v21 = vadd.f32 1.0, %v3460_v15 }
 0x134   : > { %1263 = vst.msk [vmem:[%s4066_s11 + $0x40] sm:$0xff] %vm405_vm0, %v1231_v60  ;;  %v1654_v23 = vsub.f32 1.0, %v1653_v58  ;;  %vm2446_vm2 = vweird.f32 %v4752_v31  ;;  %vm883_vm3 = vweird.f32 %v4758_v48  ;;  %v4796_v37 = vadd.f32 1.0, %v3462_v4 }
 0x135   : > { %v3470_v19 = vpop.eup %3469  ;;  %v1894_v8 = vsub.f32 1.0, %v1893_v33  ;;  %vm1658_vm4 = vweird.f32 %v3464_v6  ;;  %vm4799_vm5 = vcmp.eq.f32.partialorder %v2450_v32, 8.507059e+37  ;;  %3475 = vrcp.f32 %v4792_v21 }
 0x136   : > { %v3472_v22 = vpop.eup %3471  ;;  %v1655_v45 = vmul.f32 %v3464_v6, %v1654_v23  ;;  %v2442_v34 = vmul.f32 %v3470_v19, %v4752_v31  ;;  %vm1898_vm6 = vweird.f32 %v3466_v20  ;;  %v889_v2 = vand.u32 2147483648, %v4758_v48  ;;  %vm1659_vm8 = vmor %vm1657_vm13, %vm1658_vm4 }
 0x137   : > { %v1895_v59 = vmul.f32 %v3466_v20, %v1894_v8  ;;  %v879_v44 = vmul.f32 %v3472_v22, %v4758_v48  ;;  %v2453_v47 = vor.u32 1.1754944e-38, %v2452_v51  ;;  %vm4806_vm7 = vcmp.eq.f32.partialorder %v887_v52, 8.507059e+37  ;;  %vm1899_vm9 = vmor %vm1897_vm14, %vm1898_vm6  ;;  %v4840_v48 = vpop.f32.mrf.mxu2 }
 0x138   : > { %v1656_v55 = vadd.f32 %v3464_v6, %v1655_v45  ;;  %v2443_v28 = vsub.f32 1.0, %v2442_v34  ;;  %v3474_v35 = vpop.eup %3473  ;;  %3477 = vrcp.f32 %v4796_v37  ;;  %v4813_v53 = vadd.f32 1.0, %v3468_v18  ;;  %v4867_v45 = vpop.f32.mrf.mxu0 }
 0x139   : > { %v1896_v43 = vadd.f32 %v3466_v20, %v1895_v59  ;;  %v880_v42 = vsub.f32 1.0, %v879_v44  ;;  %vm2447_vm10 = vweird.f32 %v3470_v19  ;;  %3479 = vpow2.f32 %v3195_v3  ;;  %v4871_v59 = vpop.f32.mrf.mxu1 }
 0x13a   : > { %v1660_v7 = vsel %vm1659_vm8, %v3464_v6, %v1656_v55  ;;  %v2444_v13 = vmul.f32 %v3470_v19, %v2443_v28  ;;  %vm884_vm11 = vweird.f32 %v3472_v22  ;;  %v890_v38 = vor.u32 1.1754944e-38, %v889_v2  ;;  %vm2448_vm12 = vmor %vm2446_vm2, %vm2447_vm10 }
 0x13b   : > { %v1665_v0 = vsel %vm4778_vm15, %v1664_v12, %v1660_v7  ;;  %v1900_v27 = vsel %vm1899_vm9, %v3466_v20, %v1896_v43  ;;  %v881_v25 = vmul.f32 %v3472_v22, %v880_v42  ;;  %v3476_v11 = vpop.eup %3475  ;;  %v4826_v1 = vadd.f32 1.0, %v3474_v35  ;;  %vm885_vm13 = vmor %vm883_vm3, %vm884_vm11  ;;  %v4885_v42 = vpop.f32.mrf.mxu3 }
 0x13c   : > { %v2020_v50 = vmul.f32 %v1665_v0, %v4656_v61  ;;  %v1905_v9 = vsel %vm4784_vm1, %v1904_v30, %v1900_v27  ;;  %v2445_v14 = vadd.f32 %v3470_v19, %v2444_v13  ;;  %v1668_v24 = vmul.f32 %v3476_v11, %v4792_v21 }
 0x13d   : > { %v2036_v15 = vmul.f32 %v1905_v9, %v4660_v57  ;;  %v882_v16 = vadd.f32 %v3472_v22, %v881_v25  ;;  %v1676_v61 = vand.u32 2147483647, %v4792_v21  ;;  %v1678_v49 = vand.u32 2147483648, %v4792_v21 }
 0x13e   : > { %2052 = vst.msk [vmem:[%s4088_s14 + $0x40] sm:$0xff] %vm405_vm0, %v2020_v50  ;;  %v2449_v4 = vsel %vm2448_vm12, %v3470_v19, %v2445_v14  ;;  %3481 = vrcp.f32 %v4813_v53  ;;  %v3478_v57 = vpop.eup %3477  ;;  %v1669_v6 = vsub.f32 1.0, %v1668_v24  ;;  %v1916_v54 = vand.u32 2147483647, %v4796_v37 }
 0x13f   : > { %2068 = vst.msk [vmem:[%s4088_s14 + $0xc0] sm:$0xff] %vm405_vm0, %v2036_v15  ;;  %v2454_v31 = vsel %vm4799_vm5, %v2453_v47, %v2449_v4  ;;  %v886_v3 = vsel %vm885_vm13, %v3472_v22, %v882_v16  ;;  %v3480_v20 = vpop.eup %3479  ;;  %vm1672_vm14 = vweird.f32 %v4792_v21  ;;  %v1908_v29 = vmul.f32 %v3478_v57, %v4796_v37 }
 0x140   : > { %v2809_v60 = vmul.f32 %v2454_v31, %v4683_v39  ;;  %v891_v58 = vsel %vm4806_vm7, %v890_v38, %v886_v3  ;;  %v1670_v32 = vmul.f32 %v3476_v11, %v1669_v6  ;;  %vm1673_vm15 = vweird.f32 %v3476_v11 }
 0x141   : > { %v1232_v12 = vmul.f32 %v891_v58, %v4709_v46  ;;  %v1918_v18 = vand.u32 2147483648, %v4796_v37  ;;  %v1909_v33 = vsub.f32 1.0, %v1908_v29  ;;  %vm1912_vm1 = vweird.f32 %v4796_v37  ;;  %vm1674_vm4 = vmor %vm1672_vm14, %vm1673_vm15 }
 0x142   : > { %2841 = vst.msk [vmem:[%s4143_s17 + $0x40] sm:$0xff] %vm405_vm0, %v2809_v60  ;;  %3483 = vrcp.f32 %v4826_v1  ;;  %v3259_v39 = vmul.f32 -1.442695, %v4840_v48  ;;  %v1671_v41 = vadd.f32 %v3476_v11, %v1670_v32  ;;  %vm1677_vm2 = vcmp.eq.f32.partialorder %v1676_v61, 8.507059e+37 }
 0x143   : > { %1264 = vst.msk [vmem:[%s4066_s11 + $0x48] sm:$0xff] %vm405_vm0, %v1232_v12  ;;  %v1679_v30 = vor.u32 1.1754944e-38, %v1678_v49  ;;  %vm4856_vm3 = vcmp.eq.f32.partialorder %v1916_v54, 8.507059e+37  ;;  %v1910_v51 = vmul.f32 %v3478_v57, %v1909_v33  ;;  %vm1913_vm5 = vweird.f32 %v3478_v57  ;;  %v4923_v12 = vpop.f32.mrf.mxu0 }
 0x144   : > { %v3482_v23 = vpop.eup %3481  ;;  %v4862_v52 = vadd.f32 1.0, %v3480_v20  ;;  %3485 = vpow2.f32 %v4774_v26  ;;  %v1675_v19 = vsel %vm1674_vm4, %v3476_v11, %v1671_v41  ;;  %v1919_v8 = vor.u32 1.1754944e-38, %v1918_v18  ;;  %vm1914_vm7 = vmor %vm1912_vm1, %vm1913_vm5  ;;  %v4913_v20 = vpop.f32.mrf.mxu2 }
 0x145   : > { %v2457_v22 = vmul.f32 %v3482_v23, %v4813_v53  ;;  %vm2461_vm6 = vweird.f32 %v4813_v53  ;;  %v1680_v34 = vsel %vm1677_vm2, %v1679_v30, %v1675_v19  ;;  %v1911_v17 = vadd.f32 %v3478_v57, %v1910_v51 }
 0x146   : > { %v2465_v21 = vand.u32 2147483647, %v4813_v53  ;;  %3487 = vrcp.f32 %v4862_v52  ;;  %v2021_v44 = vmul.f32 %v1680_v34, %v4711_v40  ;;  %v2467_v2 = vand.u32 2147483648, %v4813_v53 }
 0x147   : > { %v2458_v26 = vsub.f32 1.0, %v2457_v22  ;;  %v902_v55 = vand.u32 2147483647, %v4826_v1  ;;  %v1915_v47 = vsel %vm1914_vm7, %v3478_v57, %v1911_v17  ;;  %vm2462_vm8 = vweird.f32 %v3482_v23 }
 0x148   : > { %v3484_v28 = vpop.eup %3483  ;;  %3489 = vpow2.f32 %v3259_v39  ;;  %v3132_v63 = vmul.f32 -1.442695, %v4867_v45  ;;  %2053 = vst.msk [vmem:[%s4088_s14 + $0x48] sm:$0xff] %vm405_vm0, %v2021_v44  ;;  %v1920_v40 = vsel %vm4856_vm3, %v1919_v8, %v1915_v47  ;;  %v3196_v43 = vmul.f32 -1.442695, %v4871_v59  ;;  %vm2463_vm11 = vmor %vm2461_vm6, %vm2462_vm8 }
 0x149   : > { %v2459_v35 = vmul.f32 %v3482_v23, %v2458_v26  ;;  %v894_v37 = vmul.f32 %v3484_v28, %v4826_v1  ;;  %v2037_v13 = vmul.f32 %v1920_v40, %v4716_v10  ;;  %vm898_vm9 = vweird.f32 %v4826_v1  ;;  %v4972_v10 = vpop.f32.mrf.mxu3 }
 0x14a   : > { %v3486_v7 = vpop.eup %3485  ;;  %v904_v0 = vand.u32 2147483648, %v4826_v1  ;;  %3491 = vpow2.f32 %v3132_v63  ;;  %vm2466_vm10 = vcmp.eq.f32.partialorder %v2465_v21, 8.507059e+37  ;;  %v2468_v9 = vor.u32 1.1754944e-38, %v2467_v2 }
 0x14b   : > { %v2460_v27 = vadd.f32 %v3482_v23, %v2459_v35  ;;  %v895_v25 = vsub.f32 1.0, %v894_v37  ;;  %v4890_v11 = vadd.f32 1.0, %v3486_v7  ;;  %2069 = vst.msk [vmem:[%s4088_s14 + $0xc8] sm:$0xff] %vm405_vm0, %v2037_v13  ;;  %vm899_vm12 = vweird.f32 %v3484_v28 }
 0x14c   : > { %v3488_v50 = vpop.eup %3487  ;;  %vm4897_vm13 = vcmp.eq.f32.partialorder %v902_v55, 8.507059e+37  ;;  %v3212_v14 = vmul.f32 -1.442695, %v4885_v42  ;;  %3493 = vpow2.f32 %v3196_v43  ;;  %v905_v61 = vor.u32 1.1754944e-38, %v904_v0  ;;  %vm900_vm15 = vmor %vm898_vm9, %vm899_vm12 }
 0x14d   : > { %v2464_v38 = vsel %vm2463_vm11, %v3482_v23, %v2460_v27  ;;  %v896_v15 = vmul.f32 %v3484_v28, %v895_v25  ;;  %v1683_v16 = vmul.f32 %v3488_v50, %v4862_v52  ;;  %vm1687_vm14 = vweird.f32 %v4862_v52 }
 0x14e   : > { %v3490_v24 = vpop.eup %3489  ;;  %v2469_v4 = vsel %vm2466_vm10, %v2468_v9, %v2464_v38  ;;  %3495 = vrcp.f32 %v4890_v11  ;;  %v1691_v31 = vand.u32 2147483647, %v4862_v52  ;;  %vm1688_vm1 = vweird.f32 %v3488_v50  ;;  %v4970_v9 = vpop.f32.mrf.mxu1 }
 0x14f   : > { %v2810_v53 = vmul.f32 %v2469_v4, %v4731_v62  ;;  %v897_v49 = vadd.f32 %v3484_v28, %v896_v15  ;;  %v1684_v57 = vsub.f32 1.0, %v1683_v16  ;;  %v1693_v6 = vand.u32 2147483648, %v4862_v52  ;;  %vm1689_vm2 = vmor %vm1687_vm14, %vm1688_vm1 }
 0x150   : > { %v3492_v3 = vpop.eup %3491  ;;  %v4911_v54 = vadd.f32 1.0, %v3490_v24  ;;  %3497 = vpow2.f32 %v3212_v14  ;;  %v1931_v58 = vand.u32 2147483647, %v4890_v11  ;;  %v3260_v39 = vmul.f32 -1.442695, %v4913_v20 }
 0x151   : > { %2842 = vst.msk [vmem:[%s4143_s17 + $0x48] sm:$0xff] %vm405_vm0, %v2810_v53  ;;  %v901_v62 = vsel %vm900_vm15, %v3484_v28, %v897_v49  ;;  %v1685_v60 = vmul.f32 %v3488_v50, %v1684_v57  ;;  %v4918_v29 = vadd.f32 1.0, %v3492_v3  ;;  %vm1692_vm3 = vcmp.eq.f32.partialorder %v1691_v31, 8.507059e+37 }
 0x152   : > { %v906_v1 = vsel %vm4897_vm13, %v905_v61, %v901_v62  ;;  %3499 = vrcp.f32 %v4911_v54  ;;  %v3494_v32 = vpop.eup %3493  ;;  %v1694_v30 = vor.u32 1.1754944e-38, %v1693_v6  ;;  %vm1927_vm4 = vweird.f32 %v4890_v11 }
 0x153   : > { %v1233_v18 = vmul.f32 %v906_v1, %v4750_v36  ;;  %v1686_v33 = vadd.f32 %v3488_v50, %v1685_v60  ;;  %3501 = vrcp.f32 %v4918_v29  ;;  %v1933_v46 = vand.u32 2147483648, %v4890_v11 }
 0x154   : > { %v3496_v41 = vpop.eup %3495  ;;  %vm4936_vm5 = vcmp.eq.f32.partialorder %v1931_v58, 8.507059e+37  ;;  %v2480_v19 = vand.u32 2147483647, %v4911_v54  ;;  %v3133_v52 = vmul.f32 -1.442695, %v4923_v12  ;;  %v2482_v34 = vand.u32 2147483648, %v4911_v54 }
 0x155   : > { %1265 = vst.msk [vmem:[%s4066_s11 + $0x50] sm:$0xff] %vm405_vm0, %v1233_v18  ;;  %v1690_v23 = vsel %vm1689_vm2, %v3488_v50, %v1686_v33  ;;  %v1923_v36 = vmul.f32 %v3496_v41, %v4890_v11  ;;  %v917_v17 = vand.u32 2147483647, %v4918_v29  ;;  %v4944_v21 = vadd.f32 1.0, %v3494_v32 }
 0x156   : > { %v3498_v8 = vpop.eup %3497  ;;  %v1695_v22 = vsel %vm1692_vm3, %v1694_v30, %v1690_v23  ;;  %3503 = vpow2.f32 %v3260_v39  ;;  %v1934_v28 = vor.u32 1.1754944e-38, %v1933_v46  ;;  %vm2476_vm6 = vweird.f32 %v4911_v54 }
 0x157   : > { %v2022_v44 = vmul.f32 %v1695_v22, %v4754_v5  ;;  %v1924_v26 = vsub.f32 1.0, %v1923_v36  ;;  %v4947_v2 = vadd.f32 1.0, %v3498_v8  ;;  %v919_v47 = vand.u32 2147483648, %v4918_v29  ;;  %v5004_v36 = vpop.f32.mrf.mxu0 }
 0x158   : > { %v3500_v55 = vpop.eup %3499  ;;  %3505 = vrcp.f32 %v4944_v21  ;;  %vm1928_vm7 = vweird.f32 %v3496_v41  ;;  %vm4956_vm8 = vcmp.eq.f32.partialorder %v2480_v19, 8.507059e+37  ;;  %v2483_v37 = vor.u32 1.1754944e-38, %v2482_v34 }
 0x159   : > { %v3502_v63 = vpop.eup %3501  ;;  %2054 = vst.msk [vmem:[%s4088_s14 + $0x50] sm:$0xff] %vm405_vm0, %v2022_v44  ;;  %v1925_v40 = vmul.f32 %v3496_v41, %v1924_v26  ;;  %v2472_v35 = vmul.f32 %v3500_v55, %v4911_v54  ;;  %3507 = vrcp.f32 %v4947_v2  ;;  %vm913_vm9 = vweird.f32 %v4918_v29  ;;  %vm1929_vm11 = vmor %vm1927_vm4, %vm1928_vm7  ;;  %v4996_v54 = vpop.f32.mrf.mxu2 }
 0x15a   : > { %v909_v43 = vmul.f32 %v3502_v63, %v4918_v29  ;;  %vm4962_vm10 = vcmp.eq.f32.partialorder %v917_v17, 8.507059e+37  ;;  %v1706_v27 = vand.u32 2147483647, %v4944_v21  ;;  %v920_v50 = vor.u32 1.1754944e-38, %v919_v47  ;;  %v5018_v17 = vpop.f32.mrf.mxu1  ;;  %v5020_v44 = vpop.f32.mrf.mxu3 }
 0x15b   : > { %v1926_v7 = vadd.f32 %v3496_v41, %v1925_v40  ;;  %v2473_v13 = vsub.f32 1.0, %v2472_v35  ;;  %vm1702_vm12 = vweird.f32 %v4944_v21  ;;  %3509 = vpow2.f32 %v3133_v52 }
 0x15c   : > { %v910_v25 = vsub.f32 1.0, %v909_v43  ;;  %v3504_v14 = vpop.eup %3503  ;;  %vm2477_vm13 = vweird.f32 %v3500_v55  ;;  %v1708_v16 = vand.u32 2147483648, %v4944_v21  ;;  %vm914_vm14 = vweird.f32 %v3502_v63 }
 0x15d   : > { %v1930_v38 = vsel %vm1929_vm11, %v3496_v41, %v1926_v7  ;;  %v2474_v15 = vmul.f32 %v3500_v55, %v2473_v13  ;;  %v4977_v61 = vadd.f32 1.0, %v3504_v14  ;;  %vm4981_vm15 = vcmp.eq.f32.partialorder %v1706_v27, 8.507059e+37  ;;  %vm2478_vm1 = vmor %vm2476_vm6, %vm2477_vm13 }
 0x15e   : > { %v3506_v24 = vpop.eup %3505  ;;  %v1935_v11 = vsel %vm4936_vm5, %v1934_v28, %v1930_v38  ;;  %v911_v4 = vmul.f32 %v3502_v63, %v910_v25  ;;  %v1946_v60 = vand.u32 2147483647, %v4947_v2  ;;  %vm915_vm2 = vmor %vm913_vm9, %vm914_vm14  ;;  %v1948_v1 = vand.u32 2147483648, %v4947_v2 }
 0x15f   : > { %v3508_v53 = vpop.eup %3507  ;;  %v2038_v49 = vmul.f32 %v1935_v11, %v4760_v56  ;;  %v2475_v57 = vadd.f32 %v3500_v55, %v2474_v15  ;;  %v1698_v31 = vmul.f32 %v3506_v24, %v4944_v21  ;;  %3511 = vrcp.f32 %v4977_v61 }
 0x160   : > { %v912_v6 = vadd.f32 %v3502_v63, %v911_v4  ;;  %v1938_v62 = vmul.f32 %v3508_v53, %v4947_v2  ;;  %v3197_v32 = vmul.f32 -1.442695, %v4970_v9  ;;  %v3213_v30 = vmul.f32 -1.442695, %v4972_v10 }
 0x161   : > { %2070 = vst.msk [vmem:[%s4088_s14 + $0xd0] sm:$0xff] %vm405_vm0, %v2038_v49  ;;  %v2479_v56 = vsel %vm2478_vm1, %v3500_v55, %v2475_v57  ;;  %v1699_v58 = vsub.f32 1.0, %v1698_v31  ;;  %v3510_v18 = vpop.eup %3509  ;;  %vm1703_vm3 = vweird.f32 %v3506_v24  ;;  %vm1943_vm4 = vweird.f32 %v3508_v53  ;;  %v5035_v25 = vpop.f32.mrf.mxu2 }
 0x162   : > { %v2484_v33 = vsel %vm4956_vm8, %v2483_v37, %v2479_v56  ;;  %v916_v39 = vsel %vm915_vm2, %v3502_v63, %v912_v6  ;;  %v1939_v41 = vsub.f32 1.0, %v1938_v62  ;;  %v5007_v52 = vadd.f32 1.0, %v3510_v18  ;;  %vm1704_vm6 = vmor %vm1702_vm12, %vm1703_vm3  ;;  %v5065_v56 = vpop.f32.mrf.mxu1 }
 0x163   : > { %v2811_v29 = vmul.f32 %v2484_v33, %v4840_v48  ;;  %v921_v46 = vsel %vm4962_vm10, %v920_v50, %v916_v39  ;;  %v1700_v23 = vmul.f32 %v3506_v24, %v1699_v58  ;;  %v1709_v22 = vor.u32 1.1754944e-38, %v1708_v16  ;;  %v5048_v16 = vpop.f32.mrf.mxu0  ;;  %v5067_v58 = vpop.f32.mrf.mxu3 }
 0x164   : > { %v1234_v51 = vmul.f32 %v921_v46, %v4867_v45  ;;  %v1940_v19 = vmul.f32 %v3508_v53, %v1939_v41  ;;  %vm1942_vm5 = vweird.f32 %v4947_v2  ;;  %3513 = vpow2.f32 %v3197_v32 }
 0x165   : > { %2843 = vst.msk [vmem:[%s4143_s17 + $0x50] sm:$0xff] %vm405_vm0, %v2811_v29  ;;  %v1701_v8 = vadd.f32 %v3506_v24, %v1700_v23  ;;  %v3512_v48 = vpop.eup %3511  ;;  %vm1947_vm7 = vcmp.eq.f32.partialorder %v1946_v60, 8.507059e+37  ;;  %3515 = vrcp.f32 %v5007_v52  ;;  %v3261_v45 = vmul.f32 -1.442695, %v4996_v54  ;;  %vm1944_vm8 = vmor %vm1942_vm5, %vm1943_vm4 }
 0x166   : > { %1266 = vst.msk [vmem:[%s4066_s11 + $0x58] sm:$0xff] %vm405_vm0, %v1234_v51  ;;  %v1941_v34 = vadd.f32 %v3508_v53, %v1940_v19  ;;  %v1949_v2 = vor.u32 1.1754944e-38, %v1948_v1  ;;  %v2487_v55 = vmul.f32 %v3512_v48, %v4977_v61  ;;  %v3134_v21 = vmul.f32 -1.442695, %v5004_v36 }
 0x167   : > { %v1705_v26 = vsel %vm1704_vm6, %v3506_v24, %v1701_v8  ;;  %v2495_v63 = vand.u32 2147483647, %v4977_v61  ;;  %3517 = vpow2.f32 %v3213_v30  ;;  %v2497_v37 = vand.u32 2147483648, %v4977_v61 }
 0x168   : > { %v1710_v28 = vsel %vm4981_vm15, %v1709_v22, %v1705_v26  ;;  %v1945_v47 = vsel %vm1944_vm8, %v3508_v53, %v1941_v34  ;;  %v2488_v5 = vsub.f32 1.0, %v2487_v55  ;;  %v932_v7 = vand.u32 2147483647, %v5007_v52 }
 0x169   : > { %v2023_v40 = vmul.f32 %v1710_v28, %v4871_v59  ;;  %v1950_v35 = vsel %vm1947_vm7, %v1949_v2, %v1945_v47  ;;  %3519 = vpow2.f32 %v3261_v45  ;;  %v3198_v13 = vmul.f32 -1.442695, %v5018_v17  ;;  %v5095_v26 = vpop.f32.mrf.mxu2 }
 0x16a   : > { %v2039_v43 = vmul.f32 %v1950_v35, %v4885_v42  ;;  %v3514_v0 = vpop.eup %3513  ;;  %v2489_v27 = vmul.f32 %v3512_v48, %v2488_v5  ;;  %vm2492_vm9 = vweird.f32 %v3512_v48  ;;  %3521 = vpow2.f32 %v3134_v21 }
 0x16b   : > { %2055 = vst.msk [vmem:[%s4088_s14 + $0x58] sm:$0xff] %vm405_vm0, %v2023_v40  ;;  %v3516_v59 = vpop.eup %3515  ;;  %vm2491_vm10 = vweird.f32 %v4977_v61  ;;  %vm5040_vm11 = vcmp.eq.f32.partialorder %v2495_v63, 8.507059e+37  ;;  %v5044_v50 = vadd.f32 1.0, %v3514_v0  ;;  %3523 = vpow2.f32 %v3198_v13 }
 0x16c   : > { %2071 = vst.msk [vmem:[%s4088_s14 + $0xd8] sm:$0xff] %vm405_vm0, %v2039_v43  ;;  %v2490_v14 = vadd.f32 %v3512_v48, %v2489_v27  ;;  %v2498_v38 = vor.u32 1.1754944e-38, %v2497_v37  ;;  %v924_v15 = vmul.f32 %v3516_v59, %v5007_v52  ;;  %vm928_vm12 = vweird.f32 %v5007_v52  ;;  %vm2493_vm13 = vmor %vm2491_vm10, %vm2492_vm9 }
 0x16d   : > { %v3518_v24 = vpop.eup %3517  ;;  %vm5051_vm14 = vcmp.eq.f32.partialorder %v932_v7, 8.507059e+37  ;;  %v934_v4 = vand.u32 2147483648, %v5007_v52  ;;  %3525 = vrcp.f32 %v5044_v50  ;;  %v3214_v61 = vmul.f32 -1.442695, %v5020_v44 }
 0x16e   : > { %v2494_v53 = vsel %vm2493_vm13, %v3512_v48, %v2490_v14  ;;  %v925_v49 = vsub.f32 1.0, %v924_v15  ;;  %v5058_v57 = vadd.f32 1.0, %v3518_v24  ;;  %v3262_v31 = vmul.f32 -1.442695, %v5035_v25 }
 0x16f   : > { %v3520_v3 = vpop.eup %3519  ;;  %v2499_v6 = vsel %vm5040_vm11, %v2498_v38, %v2494_v53  ;;  %vm929_vm15 = vweird.f32 %v3516_v59  ;;  %v1723_v62 = vand.u32 2147483648, %v5044_v50  ;;  %v3135_v60 = vmul.f32 -1.442695, %v5048_v16 }
 0x170   : > { %v3522_v1 = vpop.eup %3521  ;;  %v2812_v32 = vmul.f32 %v2499_v6, %v4913_v20  ;;  %v926_v18 = vmul.f32 %v3516_v59, %v925_v49  ;;  %v1721_v33 = vand.u32 2147483647, %v5044_v50  ;;  %3527 = vrcp.f32 %v5058_v57  ;;  %vm930_vm1 = vmor %vm928_vm12, %vm929_vm15 }
 0x171   : > { %v3524_v39 = vpop.eup %3523  ;;  %v935_v41 = vor.u32 1.1754944e-38, %v934_v4  ;;  %v5072_v30 = vadd.f32 1.0, %v3520_v3  ;;  %v5074_v29 = vadd.f32 1.0, %v3522_v1  ;;  %3529 = vpow2.f32 %v3214_v61 }
 0x172   : > { %2844 = vst.msk [vmem:[%s4143_s17 + $0x58] sm:$0xff] %vm405_vm0, %v2812_v32  ;;  %v927_v46 = vadd.f32 %v3516_v59, %v926_v18  ;;  %3531 = vpow2.f32 %v3262_v31  ;;  %v3199_v23 = vmul.f32 -1.442695, %v5065_v56  ;;  %v5080_v20 = vmul.f32 -1.442695, %v5067_v58 }
 0x173   : > { %v3526_v51 = vpop.eup %3525  ;;  %vm1717_vm2 = vweird.f32 %v5044_v50  ;;  %v1724_v19 = vor.u32 1.1754944e-38, %v1723_v62  ;;  %v1961_v8 = vand.u32 2147483647, %v5058_v57  ;;  %3533 = vrcp.f32 %v5072_v30 }
 0x174   : > { %v931_v22 = vsel %vm930_vm1, %v3516_v59, %v927_v46  ;;  %v1713_v48 = vmul.f32 %v3526_v51, %v5044_v50  ;;  %vm5089_vm3 = vcmp.eq.f32.partialorder %v1721_v33, 8.507059e+37  ;;  %v5093_v45 = vadd.f32 1.0, %v3524_v39 }
 0x175   : > { %3535 = vpow2.f32 %v3135_v60  ;;  %v936_v52 = vsel %vm5051_vm14, %v935_v41, %v931_v22  ;;  %vm1957_vm4 = vweird.f32 %v5058_v57  ;;  %v1963_v2 = vand.u32 2147483648, %v5058_v57 }
 0x176   : > { %3537 = vrcp.f32 %v5074_v29  ;;  %v3528_v55 = vpop.eup %3527  ;;  %v1235_v21 = vmul.f32 %v936_v52, %v4923_v12  ;;  %v1714_v28 = vsub.f32 1.0, %v1713_v48  ;;  %v2510_v47 = vand.u32 2147483647, %v5072_v30 }
 0x177   : > { %3539 = vpow2.f32 %v3199_v23  ;;  %v3530_v63 = vpop.eup %3529  ;;  %v1953_v40 = vmul.f32 %v3528_v55, %v5058_v57  ;;  %vm5105_vm5 = vcmp.eq.f32.partialorder %v1961_v8, 8.507059e+37  ;;  %v2512_v5 = vand.u32 2147483648, %v5072_v30 }
 0x178   : > { %v5111_v37 = vmul.f32 -1.442695, %v5095_v26  ;;  %v3532_v43 = vpop.eup %3531  ;;  %1267 = vst.msk [vmem:[%s4066_s11 + $0x60] sm:$0xff] %vm405_vm0, %v1235_v21  ;;  %v1715_v12 = vmul.f32 %v3526_v51, %v1714_v28  ;;  %vm1718_vm6 = vweird.f32 %v3526_v51  ;;  %v947_v7 = vand.u32 2147483647, %v5074_v29 }
 0x179   : > { %3541 = vrcp.f32 %v5093_v45  ;;  %v3534_v13 = vpop.eup %3533  ;;  %v1954_v0 = vsub.f32 1.0, %v1953_v40  ;;  %v1964_v27 = vor.u32 1.1754944e-38, %v1963_v2  ;;  %vm2506_vm7 = vweird.f32 %v5072_v30  ;;  %vm1719_vm10 = vmor %vm1717_vm2, %vm1718_vm6 }
 0x17a   : > { %vm943_vm8 = vweird.f32 %v5074_v29  ;;  %v1716_v42 = vadd.f32 %v3526_v51, %v1715_v12  ;;  %v2502_v14 = vmul.f32 %v3534_v13, %v5072_v30  ;;  %vm5120_vm9 = vcmp.eq.f32.partialorder %v2510_v47, 8.507059e+37 }
 0x17b   : > { %v3536_v59 = vpop.eup %3535  ;;  %v5124_v15 = vadd.f32 1.0, %v3530_v63  ;;  %v1955_v11 = vmul.f32 %v3528_v55, %v1954_v0  ;;  %vm1958_vm11 = vweird.f32 %v3528_v55  ;;  %v2513_v4 = vor.u32 1.1754944e-38, %v2512_v5 }
 0x17c   : > { %v3538_v24 = vpop.eup %3537  ;;  %v949_v61 = vand.u32 2147483648, %v5074_v29  ;;  %v1720_v49 = vsel %vm1719_vm10, %v3526_v51, %v1716_v42  ;;  %v2503_v31 = vsub.f32 1.0, %v2502_v14  ;;  %vm5130_vm12 = vcmp.eq.f32.partialorder %v947_v7, 8.507059e+37  ;;  %vm1959_vm13 = vmor %vm1957_vm4, %vm1958_vm11  ;;  %v5179_v7 = vpop.f32.mrf.mxu0 }
 0x17d   : > { %v3540_v53 = vpop.eup %3539  ;;  %v939_v3 = vmul.f32 %v3538_v24, %v5074_v29  ;;  %v1725_v62 = vsel %vm5089_vm3, %v1724_v19, %v1720_v49  ;;  %v1956_v50 = vadd.f32 %v3528_v55, %v1955_v11  ;;  %3543 = vrcp.f32 %v5124_v15 }
 0x17e   : > { %v5137_v60 = vadd.f32 1.0, %v3532_v43  ;;  %v2024_v32 = vmul.f32 %v1725_v62, %v4970_v9  ;;  %v2504_v18 = vmul.f32 %v3534_v13, %v2503_v31  ;;  %vm2507_vm14 = vweird.f32 %v3534_v13 }
 0x17f   : > { %v3542_v1 = vpop.eup %3541  ;;  %v940_v33 = vsub.f32 1.0, %v939_v3  ;;  %v1960_v39 = vsel %vm1959_vm13, %v3528_v55, %v1956_v50  ;;  %vm1732_vm15 = vweird.f32 %v5093_v45  ;;  %v1736_v46 = vand.u32 2147483647, %v5093_v45  ;;  %vm2508_vm2 = vmor %vm2506_vm7, %vm2507_vm14  ;;  %v5211_v3 = vpop.f32.mrf.mxu3 }
 0x180   : > { %v1728_v41 = vmul.f32 %v3542_v1, %v5093_v45  ;;  %2056 = vst.msk [vmem:[%s4088_s14 + $0x60] sm:$0xff] %vm405_vm0, %v2024_v32  ;;  %v1965_v23 = vsel %vm5105_vm5, %v1964_v27, %v1960_v39  ;;  %v2505_v9 = vadd.f32 %v3534_v13, %v2504_v18  ;;  %vm944_vm1 = vweird.f32 %v3538_v24 }
 0x181   : > { %v941_v51 = vmul.f32 %v3538_v24, %v940_v33  ;;  %v2040_v57 = vmul.f32 %v1965_v23, %v4972_v10  ;;  %v1738_v8 = vand.u32 2147483648, %v5093_v45  ;;  %3545 = vrcp.f32 %v5137_v60  ;;  %vm945_vm3 = vmor %vm943_vm8, %vm944_vm1  ;;  %v5188_v45 = vpop.f32.mrf.mxu1 }
 0x182   : > { %v1729_v19 = vsub.f32 1.0, %v1728_v41  ;;  %v2509_v22 = vsel %vm2508_vm2, %v3534_v13, %v2505_v9  ;;  %v950_v34 = vor.u32 1.1754944e-38, %v949_v61  ;;  %v1976_v52 = vand.u32 2147483647, %v5124_v15 }
 0x183   : > { %v942_v48 = vadd.f32 %v3538_v24, %v941_v51  ;;  %v3544_v2 = vpop.eup %3543  ;;  %2072 = vst.msk [vmem:[%s4088_s14 + $0xe0] sm:$0xff] %vm405_vm0, %v2040_v57  ;;  %v2514_v10 = vsel %vm5120_vm9, %v2513_v4, %v2509_v22  ;;  %vm1733_vm4 = vweird.f32 %v3542_v1  ;;  %v5161_v55 = vadd.f32 1.0, %v3536_v59 }
 0x184   : > { %v1730_v30 = vmul.f32 %v3542_v1, %v1729_v19  ;;  %v2813_v21 = vmul.f32 %v2514_v10, %v4996_v54  ;;  %vm5164_vm5 = vcmp.eq.f32.partialorder %v1736_v46, 8.507059e+37  ;;  %v1968_v63 = vmul.f32 %v3544_v2, %v5124_v15  ;;  %vm1734_vm6 = vmor %vm1732_vm15, %vm1733_vm4  ;;  %v5229_v57 = vpop.f32.mrf.mxu0 }
 0x185   : > { %v946_v28 = vsel %vm945_vm3, %v3538_v24, %v942_v48  ;;  %v1739_v29 = vor.u32 1.1754944e-38, %v1738_v8  ;;  %v1978_v5 = vand.u32 2147483648, %v5124_v15  ;;  %v2525_v12 = vand.u32 2147483647, %v5137_v60 }
 0x186   : > { %v951_v40 = vsel %vm5130_vm12, %v950_v34, %v946_v28  ;;  %v1731_v35 = vadd.f32 %v3542_v1, %v1730_v30  ;;  %2845 = vst.msk [vmem:[%s4143_s17 + $0x60] sm:$0xff] %vm405_vm0, %v2813_v21  ;;  %v1969_v54 = vsub.f32 1.0, %v1968_v63  ;;  %3547 = vrcp.f32 %v5161_v55 }
 0x187   : > { %v1236_v43 = vmul.f32 %v951_v40, %v5004_v36  ;;  %v3546_v13 = vpop.eup %3545  ;;  %vm1972_vm7 = vweird.f32 %v5124_v15  ;;  %vm5182_vm8 = vcmp.eq.f32.partialorder %v1976_v52, 8.507059e+37  ;;  %v5186_v36 = vadd.f32 1.0, %v3540_v53 }
 0x188   : > { %v1735_v0 = vsel %vm1734_vm6, %v3542_v1, %v1731_v35  ;;  %v1970_v42 = vmul.f32 %v3544_v2, %v1969_v54  ;;  %vm1973_vm9 = vweird.f32 %v3544_v2  ;;  %v2517_v14 = vmul.f32 %v3546_v13, %v5137_v60 }
 0x189   : > { %1268 = vst.msk [vmem:[%s4066_s11 + $0x68] sm:$0xff] %vm405_vm0, %v1236_v43  ;;  %v1740_v59 = vsel %vm5164_vm5, %v1739_v29, %v1735_v0  ;;  %v1979_v24 = vor.u32 1.1754944e-38, %v1978_v5  ;;  %v2527_v11 = vand.u32 2147483648, %v5137_v60  ;;  %3549 = vrcp.f32 %v5186_v36  ;;  %vm1974_vm12 = vmor %vm1972_vm7, %vm1973_vm9  ;;  %v5234_v48 = vpop.f32.mrf.mxu1 }
 0x18a   : > { %v2025_v38 = vmul.f32 %v1740_v59, %v5018_v17  ;;  %v1971_v4 = vadd.f32 %v3544_v2, %v1970_v42  ;;  %v2518_v61 = vsub.f32 1.0, %v2517_v14  ;;  %vm2521_vm10 = vweird.f32 %v5137_v60 }
 0x18b   : > { %vm5199_vm11 = vcmp.eq.f32.partialorder %v2525_v12, 8.507059e+37  ;;  %v964_v17 = vand.u32 2147483648, %v5161_v55  ;;  %3551 = vpow2.f32 %v5080_v20  ;;  %v3136_v49 = vmul.f32 -1.442695, %v5179_v7  ;;  %v5218_v20 = vpop.f32.mrf.mxu2 }
 0x18c   : > { %2057 = vst.msk [vmem:[%s4088_s14 + $0x68] sm:$0xff] %vm405_vm0, %v2025_v38  ;;  %v3200_v31 = vmul.f32 -1.442695, %v5188_v45  ;;  %v3548_v6 = vpop.eup %3547  ;;  %v1975_v62 = vsel %vm1974_vm12, %v3544_v2, %v1971_v4  ;;  %v2519_v50 = vmul.f32 %v3546_v13, %v2518_v61  ;;  %vm2522_vm13 = vweird.f32 %v3546_v13 }
 0x18d   : > { %3553 = vpow2.f32 %v5111_v37  ;;  %v1980_v15 = vsel %vm5182_vm8, %v1979_v24, %v1975_v62  ;;  %v2528_v1 = vor.u32 1.1754944e-38, %v2527_v11  ;;  %v954_v32 = vmul.f32 %v3548_v6, %v5161_v55  ;;  %vm2523_vm15 = vmor %vm2521_vm10, %vm2522_vm13 }
 0x18e   : > { %vm958_vm14 = vweird.f32 %v5161_v55  ;;  %v2041_v18 = vmul.f32 %v1980_v15, %v5020_v44  ;;  %v2520_v33 = vadd.f32 %v3546_v13, %v2519_v50  ;;  %3555 = vpow2.f32 %v3136_v49 }
 0x18f   : > { %v3216_v39 = vmul.f32 -1.442695, %v5211_v3  ;;  %v3550_v41 = vpop.eup %3549  ;;  %v955_v37 = vsub.f32 1.0, %v954_v32  ;;  %v962_v46 = vand.u32 2147483647, %v5161_v55  ;;  %v965_v23 = vor.u32 1.1754944e-38, %v964_v17 }
 0x190   : > { %3557 = vpow2.f32 %v3200_v31  ;;  %2073 = vst.msk [vmem:[%s4088_s14 + $0xe8] sm:$0xff] %vm405_vm0, %v2041_v18  ;;  %v2524_v9 = vsel %vm2523_vm15, %v3546_v13, %v2520_v33  ;;  %v1743_v51 = vmul.f32 %v3550_v41, %v5186_v36  ;;  %v1751_v44 = vand.u32 2147483647, %v5186_v36 }
 0x191   : > { %3559 = vpow2.f32 %v3216_v39  ;;  %v3552_v19 = vpop.eup %3551  ;;  %v2529_v60 = vsel %vm5199_vm11, %v2528_v1, %v2524_v9  ;;  %v956_v8 = vmul.f32 %v3548_v6, %v955_v37  ;;  %vm959_vm1 = vweird.f32 %v3548_v6 }
 0x192   : > { %v1753_v22 = vand.u32 2147483648, %v5186_v36  ;;  %v2814_v52 = vmul.f32 %v2529_v60, %v5035_v25  ;;  %v1744_v2 = vsub.f32 1.0, %v1743_v51  ;;  %v5237_v10 = vadd.f32 1.0, %v3552_v19  ;;  %vm960_vm3 = vmor %vm958_vm14, %vm959_vm1 }
 0x193   : > { %v3554_v34 = vpop.eup %3553  ;;  %v3264_v30 = vmul.f32 -1.442695, %v5218_v20  ;;  %v957_v21 = vadd.f32 %v3548_v6, %v956_v8  ;;  %vm1747_vm2 = vweird.f32 %v5186_v36  ;;  %v3137_v47 = vmul.f32 -1.442695, %v5229_v57  ;;  %v5261_v59 = vpop.f32.mrf.mxu2 }
 0x194   : > { %v5241_v28 = vadd.f32 1.0, %v3554_v34  ;;  %v3556_v63 = vpop.eup %3555  ;;  %2846 = vst.msk [vmem:[%s4143_s17 + $0x68] sm:$0xff] %vm405_vm0, %v2814_v52  ;;  %v1745_v40 = vmul.f32 %v3550_v41, %v1744_v2  ;;  %vm1748_vm4 = vweird.f32 %v3550_v41  ;;  %3561 = vrcp.f32 %v5237_v10 }
 0x195   : > { %v3201_v25 = vmul.f32 -1.442695, %v5234_v48  ;;  %v961_v29 = vsel %vm960_vm3, %v3548_v6, %v957_v21  ;;  %vm963_vm5 = vcmp.eq.f32.partialorder %v962_v46, 8.507059e+37  ;;  %vm5250_vm6 = vcmp.eq.f32.partialorder %v1751_v44, 8.507059e+37  ;;  %vm1749_vm7 = vmor %vm1747_vm2, %vm1748_vm4 }
 0x196   : > { %v3558_v35 = vpop.eup %3557  ;;  %3563 = vrcp.f32 %v5241_v28  ;;  %v966_v54 = vsel %vm963_vm5, %v965_v23, %v961_v29  ;;  %v1746_v55 = vadd.f32 %v3550_v41, %v1745_v40  ;;  %v1754_v12 = vor.u32 1.1754944e-38, %v1753_v22 }
 0x197   : > { %v3560_v43 = vpop.eup %3559  ;;  %3565 = vpow2.f32 %v3264_v30  ;;  %v1237_v13 = vmul.f32 %v966_v54, %v5048_v16  ;;  %v1991_v0 = vand.u32 2147483647, %v5237_v10  ;;  %v5259_v27 = vadd.f32 1.0, %v3556_v63 }
 0x198   : > { %3567 = vpow2.f32 %v3137_v47  ;;  %v1750_v42 = vsel %vm1749_vm7, %v3550_v41, %v1746_v55  ;;  %v1993_v14 = vand.u32 2147483648, %v5237_v10  ;;  %v5264_v38 = vadd.f32 1.0, %v3558_v35  ;;  %v5329_v55 = vpop.f32.mrf.mxu3 }
 0x199   : > { %3569 = vpow2.f32 %v3201_v25  ;;  %1269 = vst.msk [vmem:[%s4066_s11 + $0x70] sm:$0xff] %vm405_vm0, %v1237_v13  ;;  %v1755_v16 = vsel %vm5250_vm6, %v1754_v12, %v1750_v42  ;;  %v2540_v36 = vand.u32 2147483647, %v5241_v28  ;;  %v5272_v24 = vadd.f32 1.0, %v3560_v43 }
 0x19a   : > { %3571 = vrcp.f32 %v5259_v27  ;;  %v3562_v11 = vpop.eup %3561  ;;  %v2026_v4 = vmul.f32 %v1755_v16, %v5065_v56  ;;  %v2542_v61 = vand.u32 2147483648, %v5241_v28  ;;  %v5278_v53 = vmul.f32 -1.442695, %v5261_v59 }
 0x19b   : > { %3573 = vrcp.f32 %v5264_v38  ;;  %v1983_v49 = vmul.f32 %v3562_v11, %v5237_v10  ;;  %vm1987_vm8 = vweird.f32 %v5237_v10  ;;  %vm5282_vm9 = vcmp.eq.f32.partialorder %v1991_v0, 8.507059e+37 }
 0x19c   : > { %v3564_v17 = vpop.eup %3563  ;;  %vm2536_vm10 = vweird.f32 %v5241_v28  ;;  %2058 = vst.msk [vmem:[%s4088_s14 + $0x70] sm:$0xff] %vm405_vm0, %v2026_v4  ;;  %v1994_v56 = vor.u32 1.1754944e-38, %v1993_v14  ;;  %v977_v50 = vand.u32 2147483647, %v5259_v27  ;;  %v979_v15 = vand.u32 2147483648, %v5259_v27 }
 0x19d   : > { %v3566_v6 = vpop.eup %3565  ;;  %v2532_v62 = vmul.f32 %v3564_v17, %v5241_v28  ;;  %v1984_v32 = vsub.f32 1.0, %v1983_v49  ;;  %vm5292_vm11 = vcmp.eq.f32.partialorder %v2540_v36, 8.507059e+37  ;;  %v1766_v33 = vand.u32 2147483647, %v5264_v38 }
 0x19e   : > { %v3568_v1 = vpop.eup %3567  ;;  %3575 = vrcp.f32 %v5272_v24  ;;  %vm1988_vm12 = vweird.f32 %v3562_v11  ;;  %v2543_v37 = vor.u32 1.1754944e-38, %v2542_v61  ;;  %vm973_vm13 = vweird.f32 %v5259_v27 }
 0x19f   : > { %v5298_v39 = vpop.eup %3569  ;;  %v2533_v41 = vsub.f32 1.0, %v2532_v62  ;;  %v1985_v23 = vmul.f32 %v3562_v11, %v1984_v32  ;;  %vm2537_vm14 = vweird.f32 %v3564_v17  ;;  %vm1762_vm15 = vweird.f32 %v5264_v38  ;;  %vm1989_vm3 = vmor %vm1987_vm8, %vm1988_vm12 }
 0x1a0   : > { %v3572_v46 = vpop.eup %3571  ;;  %v5302_v9 = vadd.f32 1.0, %v3566_v6  ;;  %vm5305_vm1 = vcmp.eq.f32.partialorder %v977_v50, 8.507059e+37  ;;  %v980_v8 = vor.u32 1.1754944e-38, %v979_v15  ;;  %vm5310_vm2 = vcmp.eq.f32.partialorder %v1766_v33, 8.507059e+37  ;;  %vm2538_vm4 = vmor %vm2536_vm10, %vm2537_vm14  ;;  %v5356_v6 = vpop.f32.mrf.mxu1 }
 0x1a1   : > { %v3574_v51 = vpop.eup %3573  ;;  %v2534_v44 = vmul.f32 %v3564_v17, %v2533_v41  ;;  %v969_v19 = vmul.f32 %v3572_v46, %v5259_v27  ;;  %v1986_v22 = vadd.f32 %v3562_v11, %v1985_v23  ;;  %v1768_v2 = vand.u32 2147483648, %v5264_v38  ;;  %v5350_v27 = vpop.f32.mrf.mxu0 }
 0x1a2   : > { %v1758_v34 = vmul.f32 %v3574_v51, %v5264_v38  ;;  %v2006_v30 = vand.u32 2147483647, %v5272_v24  ;;  %v2008_v63 = vand.u32 2147483648, %v5272_v24  ;;  %3577 = vrcp.f32 %v5302_v9 }
 0x1a3   : > { %v2535_v21 = vadd.f32 %v3564_v17, %v2534_v44  ;;  %v970_v47 = vsub.f32 1.0, %v969_v19  ;;  %v1990_v25 = vsel %vm1989_vm3, %v3562_v11, %v1986_v22  ;;  %vm974_vm5 = vweird.f32 %v3572_v46  ;;  %v5388_v44 = vpop.f32.mrf.mxu3 }
 0x1a4   : > { %v3576_v40 = vpop.eup %3575  ;;  %v1759_v35 = vsub.f32 1.0, %v1758_v34  ;;  %v5324_v29 = vadd.f32 1.0, %v3568_v1  ;;  %v1995_v10 = vsel %vm5282_vm9, %v1994_v56, %v1990_v25  ;;  %vm1763_vm6 = vweird.f32 %v3574_v51  ;;  %vm975_vm8 = vmor %vm973_vm13, %vm974_vm5 }
 0x1a5   : > { %v2539_v5 = vsel %vm2538_vm4, %v3564_v17, %v2535_v21  ;;  %v971_v43 = vmul.f32 %v3572_v46, %v970_v47  ;;  %v1998_v54 = vmul.f32 %v3576_v40, %v5272_v24  ;;  %v2042_v12 = vmul.f32 %v1995_v10, %v5067_v58  ;;  %vm1764_vm10 = vmor %vm1762_vm15, %vm1763_vm6 }
 0x1a6   : > { %v2544_v28 = vsel %vm5292_vm11, %v2543_v37, %v2539_v5  ;;  %v1760_v13 = vmul.f32 %v3574_v51, %v1759_v35  ;;  %vm2002_vm7 = vweird.f32 %v5272_v24  ;;  %v1769_v36 = vor.u32 1.1754944e-38, %v1768_v2 }
 0x1a7   : > { %v2815_v0 = vmul.f32 %v2544_v28, %v5095_v26  ;;  %v972_v42 = vadd.f32 %v3572_v46, %v971_v43  ;;  %v1999_v14 = vsub.f32 1.0, %v1998_v54  ;;  %2074 = vst.msk [vmem:[%s4088_s14 + $0xf0] sm:$0xff] %vm405_vm0, %v2042_v12  ;;  %vm5341_vm9 = vcmp.eq.f32.partialorder %v2006_v30, 8.507059e+37 }
 0x1a8   : > { %v1761_v16 = vadd.f32 %v3574_v51, %v1760_v13  ;;  %3579 = vrcp.f32 %v5324_v29  ;;  %v3578_v11 = vpop.eup %3577  ;;  %vm2003_vm11 = vweird.f32 %v3576_v40  ;;  %v2009_v61 = vor.u32 1.1754944e-38, %v2008_v63  ;;  %v5410_v5 = vpop.f32.mrf.mxu1 }
 0x1a9   : > { %2847 = vst.msk [vmem:[%s4143_s17 + $0x70] sm:$0xff] %vm405_vm0, %v2815_v0  ;;  %v976_v26 = vsel %vm975_vm8, %v3572_v46, %v972_v42  ;;  %v2000_v4 = vmul.f32 %v3576_v40, %v1999_v14  ;;  %v2547_v31 = vmul.f32 %v3578_v11, %v5302_v9  ;;  %vm2551_vm12 = vweird.f32 %v5302_v9  ;;  %vm2004_vm13 = vmor %vm2002_vm7, %vm2003_vm11 }
 0x1aa   : > { %v981_v17 = vsel %vm5305_vm1, %v980_v8, %v976_v26  ;;  %v1765_v49 = vsel %vm1764_vm10, %v3574_v51, %v1761_v16  ;;  %v2555_v50 = vand.u32 2147483647, %v5302_v9  ;;  %v2557_v32 = vand.u32 2147483648, %v5302_v9  ;;  %v5401_v9 = vpop.f32.mrf.mxu0 }
 0x1ab   : > { %v1238_v38 = vmul.f32 %v981_v17, %v5179_v7  ;;  %v1770_v56 = vsel %vm5310_vm2, %v1769_v36, %v1765_v49  ;;  %v2001_v62 = vadd.f32 %v3576_v40, %v2000_v4  ;;  %v2548_v1 = vsub.f32 1.0, %v2547_v31 }
 0x1ac   : > { %v2027_v15 = vmul.f32 %v1770_v56, %v5188_v45  ;;  %v5367_v18 = vadd.f32 1.0, %v5298_v39  ;;  %3581 = vpow2.f32 %v5278_v53  ;;  %v3273_v33 = vmul.f32 -1.442695, %v5329_v55  ;;  %v5379_v39 = vpop.f32.mrf.mxu2 }
 0x1ad   : > { %1270 = vst.msk [vmem:[%s4066_s11 + $0x78] sm:$0xff] %vm405_vm0, %v1238_v38  ;;  %v2005_v7 = vsel %vm2004_vm13, %v3576_v40, %v2001_v62  ;;  %v3138_v41 = vmul.f32 -1.442695, %v5350_v27  ;;  %v2549_v24 = vmul.f32 %v3578_v11, %v2548_v1  ;;  %vm2552_vm14 = vweird.f32 %v3578_v11 }
 0x1ae   : > { %v3580_v37 = vpop.eup %3579  ;;  %2059 = vst.msk [vmem:[%s4088_s14 + $0x78] sm:$0xff] %vm405_vm0, %v2027_v15  ;;  %v2010_v45 = vsel %vm5341_vm9, %v2009_v61, %v2005_v7  ;;  %3583 = vrcp.f32 %v5367_v18  ;;  %vm5382_vm15 = vcmp.eq.f32.partialorder %v2555_v50, 8.507059e+37  ;;  %v992_v51 = vand.u32 2147483647, %v5324_v29  ;;  %vm2553_vm1 = vmor %vm2551_vm12, %vm2552_vm14 }
 0x1af   : > { %v2043_v46 = vmul.f32 %v2010_v45, %v5211_v3  ;;  %v984_v23 = vmul.f32 %v3580_v37, %v5324_v29  ;;  %v2550_v19 = vadd.f32 %v3578_v11, %v2549_v24  ;;  %v994_v60 = vand.u32 2147483648, %v5324_v29 }
 0x1b0   : > { %3585 = vpow2.f32 %v3273_v33  ;;  %v3202_v8 = vmul.f32 -1.442695, %v5356_v6  ;;  %v2558_v3 = vor.u32 1.1754944e-38, %v2557_v32  ;;  %v3266_v34 = vmul.f32 -1.442695, %v5379_v39 }
 0x1b1   : > { %2075 = vst.msk [vmem:[%s4088_s14 + $0xf8] sm:$0xff] %vm405_vm0, %v2043_v46  ;;  %v985_v22 = vsub.f32 1.0, %v984_v23  ;;  %3587 = vpow2.f32 %v3138_v41  ;;  %v2554_v52 = vsel %vm2553_vm1, %v3578_v11, %v2550_v19  ;;  %vm988_vm2 = vweird.f32 %v5324_v29 }
 0x1b2   : > { %3589 = vpow2.f32 %v3202_v8  ;;  %v3274_v2 = vmul.f32 -1.442695, %v5388_v44  ;;  %v3582_v30 = vpop.eup %3581  ;;  %v2559_v21 = vsel %vm5382_vm15, %v2558_v3, %v2554_v52  ;;  %vm989_vm3 = vweird.f32 %v3580_v37 }
 0x1b3   : > { %v986_v47 = vmul.f32 %v3580_v37, %v985_v22  ;;  %3591 = vpow2.f32 %v3266_v34  ;;  %v2816_v40 = vmul.f32 %v2559_v21, %v5218_v20  ;;  %vm5404_vm4 = vcmp.eq.f32.partialorder %v992_v51, 8.507059e+37  ;;  %vm990_vm6 = vmor %vm988_vm2, %vm989_vm3 }
 0x1b4   : > { %v3584_v63 = vpop.eup %3583  ;;  %v995_v35 = vor.u32 1.1754944e-38, %v994_v60  ;;  %v5408_v10 = vadd.f32 1.0, %v3582_v30  ;;  %vm1777_vm5 = vweird.f32 %v5367_v18  ;;  %3593 = vpow2.f32 %v3274_v2 }
 0x1b5   : > { %v987_v43 = vadd.f32 %v3580_v37, %v986_v47  ;;  %v1773_v54 = vmul.f32 %v3584_v63, %v5367_v18  ;;  %2848 = vst.msk [vmem:[%s4143_s17 + $0x78] sm:$0xff] %vm405_vm0, %v2816_v40  ;;  %v1781_v20 = vand.u32 2147483647, %v5367_v18  ;;  %v1783_v28 = vand.u32 2147483648, %v5367_v18 }
 0x1b6   : > { %v3586_v12 = vpop.eup %3585  ;;  %3595 = vrcp.f32 %v5408_v10  ;;  %v3139_v13 = vmul.f32 -1.442695, %v5401_v9  ;;  %v3203_v36 = vmul.f32 -1.442695, %v5410_v5  ;;  %vm1778_vm7 = vweird.f32 %v3584_v63 }
 0x1b7   : > { %v3588_v0 = vpop.eup %3587  ;;  %v991_v42 = vsel %vm990_vm6, %v3580_v37, %v987_v43  ;;  %v1774_v14 = vsub.f32 1.0, %v1773_v54  ;;  %v5423_v16 = vadd.f32 1.0, %v3586_v12  ;;  %v2570_v11 = vand.u32 2147483647, %v5408_v10  ;;  %vm1779_vm9 = vmor %vm1777_vm5, %vm1778_vm7 }
 0x1b8   : > { %v3590_v58 = vpop.eup %3589  ;;  %v996_v29 = vsel %vm5404_vm4, %v995_v35, %v991_v42  ;;  %v5429_v26 = vadd.f32 1.0, %v3588_v0  ;;  %v2572_v49 = vand.u32 2147483648, %v5408_v10  ;;  %vm1782_vm8 = vcmp.eq.f32.partialorder %v1781_v20, 8.507059e+37 }
 0x1b9   : > { %v3592_v4 = vpop.eup %3591  ;;  %v1239_v61 = vmul.f32 %v996_v29, %v5229_v57  ;;  %v1775_v17 = vmul.f32 %v3584_v63, %v1774_v14  ;;  %3597 = vrcp.f32 %v5423_v16  ;;  %v5437_v56 = vadd.f32 1.0, %v3590_v58  ;;  %v5492_v29 = vpop.f32.mrf.mxu2 }
 0x1ba   : > { %3599 = vrcp.f32 %v5429_v26  ;;  %v3594_v31 = vpop.eup %3593  ;;  %v1784_v57 = vor.u32 1.1754944e-38, %v1783_v28  ;;  %vm2566_vm10 = vweird.f32 %v5408_v10  ;;  %v5443_v50 = vadd.f32 1.0, %v3592_v4 }
 0x1bb   : > { %1271 = vst.msk [vmem:[%s4066_s11 + $0x80] sm:$0xff] %vm405_vm0, %v1239_v61  ;;  %v1776_v38 = vadd.f32 %v3584_v63, %v1775_v17  ;;  %3601 = vpow2.f32 %v3139_v13  ;;  %vm5446_vm11 = vcmp.eq.f32.partialorder %v2570_v11, 8.507059e+37  ;;  %v2573_v7 = vor.u32 1.1754944e-38, %v2572_v49 }
 0x1bc   : > { %v3596_v62 = vpop.eup %3595  ;;  %3603 = vpow2.f32 %v3203_v36  ;;  %v2690_v33 = vand.u32 2147483647, %v5423_v16  ;;  %v2692_v18 = vand.u32 2147483648, %v5423_v16  ;;  %v1007_v37 = vand.u32 2147483647, %v5429_v26 }
 0x1bd   : > { %v1780_v15 = vsel %vm1779_vm9, %v3584_v63, %v1776_v38  ;;  %v2562_v1 = vmul.f32 %v3596_v62, %v5408_v10  ;;  %3605 = vrcp.f32 %v5437_v56  ;;  %v1009_v53 = vand.u32 2147483648, %v5429_v26 }
 0x1be   : > { %v1785_v41 = vsel %vm1782_vm8, %v1784_v57, %v1780_v15  ;;  %v5456_v23 = vadd.f32 1.0, %v3594_v31  ;;  %vm2686_vm12 = vweird.f32 %v5423_v16  ;;  %vm1003_vm13 = vweird.f32 %v5429_v26  ;;  %v5510_v15 = vpop.f32.mrf.mxu0 }
 0x1bf   : > { %v3598_v45 = vpop.eup %3597  ;;  %v2028_v24 = vmul.f32 %v1785_v41, %v5234_v48  ;;  %v2563_v46 = vsub.f32 1.0, %v2562_v1  ;;  %3607 = vrcp.f32 %v5443_v50  ;;  %vm2567_vm14 = vweird.f32 %v3596_v62 }
 0x1c0   : > { %v3600_v51 = vpop.eup %3599  ;;  %v2682_v19 = vmul.f32 %v3598_v45, %v5423_v16  ;;  %vm5464_vm15 = vcmp.eq.f32.partialorder %v2690_v33, 8.507059e+37  ;;  %v2693_v52 = vor.u32 1.1754944e-38, %v2692_v18  ;;  %vm5469_vm1 = vcmp.eq.f32.partialorder %v1007_v37, 8.507059e+37  ;;  %vm2568_vm2 = vmor %vm2566_vm10, %vm2567_vm14  ;;  %v5514_v33 = vpop.f32.mrf.mxu1 }
 0x1c1   : > { %v3602_v60 = vpop.eup %3601  ;;  %2060 = vst.msk [vmem:[%s4088_s14 + $0x80] sm:$0xff] %vm405_vm0, %v2028_v24  ;;  %v2564_v8 = vmul.f32 %v3596_v62, %v2563_v46  ;;  %v999_v3 = vmul.f32 %v3600_v51, %v5429_v26  ;;  %v1796_v30 = vand.u32 2147483647, %v5437_v56  ;;  %v1010_v63 = vor.u32 1.1754944e-38, %v1009_v53 }
 0x1c2   : > { %v3604_v22 = vpop.eup %3603  ;;  %v2683_v34 = vsub.f32 1.0, %v2682_v19  ;;  %3609 = vrcp.f32 %v5456_v23  ;;  %vm2687_vm3 = vweird.f32 %v3598_v45  ;;  %vm1792_vm4 = vweird.f32 %v5437_v56 }
 0x1c3   : > { %v2565_v21 = vadd.f32 %v3596_v62, %v2564_v8  ;;  %v1000_v47 = vsub.f32 1.0, %v999_v3  ;;  %v3606_v40 = vpop.eup %3605  ;;  %v1798_v35 = vand.u32 2147483648, %v5437_v56  ;;  %vm1004_vm5 = vweird.f32 %v3600_v51  ;;  %vm2688_vm8 = vmor %vm2686_vm12, %vm2687_vm3 }
 0x1c4   : > { %v2684_v25 = vmul.f32 %v3598_v45, %v2683_v34  ;;  %v1788_v12 = vmul.f32 %v3606_v40, %v5437_v56  ;;  %vm2581_vm6 = vweird.f32 %v5443_v50  ;;  %vm5483_vm7 = vcmp.eq.f32.partialorder %v1796_v30, 8.507059e+37  ;;  %vm1005_vm9 = vmor %vm1003_vm13, %vm1004_vm5 }
 0x1c5   : > { %v2569_v43 = vsel %vm2568_vm2, %v3596_v62, %v2565_v21  ;;  %v1001_v54 = vmul.f32 %v3600_v51, %v1000_v47  ;;  %v3608_v20 = vpop.eup %3607  ;;  %v2585_v0 = vand.u32 2147483647, %v5443_v50  ;;  %vm1793_vm10 = vweird.f32 %v3606_v40 }
 0x1c6   : > { %v2574_v28 = vsel %vm5446_vm11, %v2573_v7, %v2569_v43  ;;  %v2685_v13 = vadd.f32 %v3598_v45, %v2684_v25  ;;  %v1789_v36 = vsub.f32 1.0, %v1788_v12  ;;  %v2577_v58 = vmul.f32 %v3608_v20, %v5443_v50  ;;  %vm1794_vm12 = vmor %vm1792_vm4, %vm1793_vm10  ;;  %v5553_v43 = vpop.f32.mrf.mxu0 }
 0x1c7   : > { %v2817_v42 = vmul.f32 %v2574_v28, %v5261_v59  ;;  %v1002_v14 = vadd.f32 %v3600_v51, %v1001_v54  ;;  %v2587_v4 = vand.u32 2147483648, %v5443_v50  ;;  %v5498_v61 = vadd.f32 1.0, %v3602_v60  ;;  %v5500_v59 = vpop.f32.mrf.mxu3 }
 0x1c8   : > { %v2689_v11 = vsel %vm2688_vm8, %v3598_v45, %v2685_v13  ;;  %v3610_v16 = vpop.eup %3609  ;;  %v1790_v31 = vmul.f32 %v3606_v40, %v1789_v36  ;;  %v2578_v38 = vsub.f32 1.0, %v2577_v58  ;;  %vm2582_vm11 = vweird.f32 %v3608_v20 }
 0x1c9   : > { %2849 = vst.msk [vmem:[%s4143_s17 + $0x80] sm:$0xff] %vm405_vm0, %v2817_v42  ;;  %v2694_v17 = vsel %vm5464_vm15, %v2693_v52, %v2689_v11  ;;  %v1006_v49 = vsel %vm1005_vm9, %v3600_v51, %v1002_v14  ;;  %v2697_v57 = vmul.f32 %v3610_v16, %v5456_v23  ;;  %3611 = vrcp.f32 %v5498_v61  ;;  %vm2583_vm13 = vmor %vm2581_vm6, %vm2582_vm11  ;;  %v5541_v52 = vpop.f32.mrf.mxu2 }
 0x1ca   : > { %v2825_v26 = vmul.f32 %v2694_v17, %v5329_v55  ;;  %v1011_v62 = vsel %vm5469_vm1, %v1010_v63, %v1006_v49  ;;  %v1791_v32 = vadd.f32 %v3606_v40, %v1790_v31  ;;  %v2579_v7 = vmul.f32 %v3608_v20, %v2578_v38 }
 0x1cb   : > { %v1240_v1 = vmul.f32 %v1011_v62, %v5350_v27  ;;  %v1799_v55 = vor.u32 1.1754944e-38, %v1798_v35  ;;  %v2588_v41 = vor.u32 1.1754944e-38, %v2587_v4  ;;  %v2698_v18 = vsub.f32 1.0, %v2697_v57 }
 0x1cc   : > { %2857 = vst.msk [vmem:[%s4143_s17 + $0xc0] sm:$0xff] %vm405_vm0, %v2825_v26  ;;  %v2707_v37 = vand.u32 2147483648, %v5456_v23  ;;  %v1795_v27 = vsel %vm1794_vm12, %v3606_v40, %v1791_v32  ;;  %v2580_v45 = vadd.f32 %v3608_v20, %v2579_v7  ;;  %v5524_v24 = vadd.f32 1.0, %v3604_v22 }
 0x1cd   : > { %1272 = vst.msk [vmem:[%s4066_s11 + $0x88] sm:$0xff] %vm405_vm0, %v1240_v1  ;;  %v3267_v46 = vmul.f32 -1.442695, %v5492_v29  ;;  %v1800_v53 = vsel %vm5483_vm7, %v1799_v55, %v1795_v27  ;;  %v2699_v56 = vmul.f32 %v3610_v16, %v2698_v18  ;;  %vm2702_vm14 = vweird.f32 %v3610_v16 }
 0x1ce   : > { %v2705_v51 = vand.u32 2147483647, %v5456_v23  ;;  %v2029_v19 = vmul.f32 %v1800_v53, %v5356_v6  ;;  %v2584_v60 = vsel %vm2583_vm13, %v3608_v20, %v2580_v45  ;;  %vm2586_vm15 = vcmp.eq.f32.partialorder %v2585_v0, 8.507059e+37  ;;  %v5556_v20 = vpop.f32.mrf.mxu1 }
 0x1cf   : > { %3613 = vrcp.f32 %v5524_v24  ;;  %v2589_v8 = vsel %vm2586_vm15, %v2588_v41, %v2584_v60  ;;  %v2700_v48 = vadd.f32 %v3610_v16, %v2699_v56  ;;  %vm2701_vm1 = vweird.f32 %v5456_v23  ;;  %v3612_v22 = vpop.eup %3611  ;;  %v5545_v21 = vpop.f32.mrf.mxu3 }
 0x1d0   : > { %v2708_v3 = vor.u32 1.1754944e-38, %v2707_v37  ;;  %2061 = vst.msk [vmem:[%s4088_s14 + $0x88] sm:$0xff] %vm405_vm0, %v2029_v19  ;;  %v2818_v50 = vmul.f32 %v2589_v8, %v5379_v39  ;;  %vm2703_vm2 = vmor %vm2701_vm1, %vm2702_vm14  ;;  %3615 = vpow2.f32 %v3267_v46  ;;  %v3275_v34 = vmul.f32 -1.442695, %v5500_v59  ;;  %v5597_v46 = vpop.f32.mrf.mxu0 }
 0x1d1   : > { %v3140_v6 = vmul.f32 -1.442695, %v5510_v15  ;;  %v2704_v2 = vsel %vm2703_vm2, %v3610_v16, %v2700_v48  ;;  %vm2706_vm3 = vcmp.eq.f32.partialorder %v2705_v51, 8.507059e+37  ;;  %v1014_v30 = vmul.f32 %v3612_v22, %v5498_v61  ;;  %v5578_v57 = vpop.f32.mrf.mxu2 }
 0x1d2   : > { %v1022_v23 = vand.u32 2147483647, %v5498_v61  ;;  %2850 = vst.msk [vmem:[%s4143_s17 + $0x88] sm:$0xff] %vm405_vm0, %v2818_v50  ;;  %v2709_v39 = vsel %vm2706_vm3, %v2708_v3, %v2704_v2  ;;  %v1024_v47 = vand.u32 2147483648, %v5498_v61  ;;  %3617 = vpow2.f32 %v3275_v34 }
 0x1d3   : > { %v3204_v63 = vmul.f32 -1.442695, %v5514_v33  ;;  %v2826_v40 = vmul.f32 %v2709_v39, %v5388_v44  ;;  %v1015_v25 = vsub.f32 1.0, %v1014_v30  ;;  %3619 = vpow2.f32 %v3140_v6 }
 0x1d4   : > { %v3268_v35 = vmul.f32 -1.442695, %v5541_v52  ;;  %v3276_v12 = vmul.f32 -1.442695, %v5545_v21  ;;  %vm1018_vm4 = vweird.f32 %v5498_v61  ;;  %vm1019_vm5 = vweird.f32 %v3612_v22 }
 0x1d5   : > { %v3614_v54 = vpop.eup %3613  ;;  %3621 = vpow2.f32 %v3204_v63  ;;  %2858 = vst.msk [vmem:[%s4143_s17 + $0xc8] sm:$0xff] %vm405_vm0, %v2826_v40  ;;  %v1016_v28 = vmul.f32 %v3612_v22, %v1015_v25  ;;  %vm5562_vm6 = vcmp.eq.f32.partialorder %v1022_v23, 8.507059e+37  ;;  %v1025_v0 = vor.u32 1.1754944e-38, %v1024_v47  ;;  %vm1020_vm7 = vmor %vm1018_vm4, %vm1019_vm5 }
 0x1d6   : > { %v1803_v44 = vmul.f32 %v3614_v54, %v5524_v24  ;;  %v3616_v13 = vpop.eup %3615  ;;  %v3141_v42 = vmul.f32 -1.442695, %v5553_v43  ;;  %3623 = vpow2.f32 %v3268_v35  ;;  %vm1807_vm8 = vweird.f32 %v5524_v24  ;;  %v5603_v19 = vpop.f32.mrf.mxu1 }
 0x1d7   : > { %v1017_v14 = vadd.f32 %v3612_v22, %v1016_v28  ;;  %v5567_v58 = vadd.f32 1.0, %v3616_v13  ;;  %v1811_v4 = vand.u32 2147483647, %v5524_v24  ;;  %v1813_v61 = vand.u32 2147483648, %v5524_v24  ;;  %v5585_v41 = vpop.f32.mrf.mxu3 }
 0x1d8   : > { %v1804_v36 = vsub.f32 1.0, %v1803_v44  ;;  %v3618_v11 = vpop.eup %3617  ;;  %3625 = vpow2.f32 %v3276_v12  ;;  %vm1808_vm9 = vweird.f32 %v3614_v54  ;;  %v3205_v62 = vmul.f32 -1.442695, %v5556_v20 }
 0x1d9   : > { %v3620_v16 = vpop.eup %3619  ;;  %v1021_v17 = vsel %vm1020_vm7, %v3612_v22, %v1017_v14  ;;  %3627 = vrcp.f32 %v5567_v58  ;;  %v5575_v26 = vadd.f32 1.0, %v3618_v11  ;;  %vm1809_vm10 = vmor %vm1807_vm8, %vm1808_vm9  ;;  %vm1812_vm11 = vcmp.eq.f32.partialorder %v1811_v4, 8.507059e+37 }
 0x1da   : > { %v1805_v49 = vmul.f32 %v3614_v54, %v1804_v36  ;;  %v1026_v38 = vsel %vm5562_vm6, %v1025_v0, %v1021_v17  ;;  %3629 = vpow2.f32 %v3141_v42  ;;  %v5581_v7 = vadd.f32 1.0, %v3620_v16 }
 0x1db   : > { %v3622_v31 = vpop.eup %3621  ;;  %v1241_v1 = vmul.f32 %v1026_v38, %v5401_v9  ;;  %v1814_v18 = vor.u32 1.1754944e-38, %v1813_v61  ;;  %3631 = vrcp.f32 %v5575_v26  ;;  %v2600_v9 = vand.u32 2147483647, %v5567_v58 }
 0x1dc   : > { %v1806_v32 = vadd.f32 %v3614_v54, %v1805_v49  ;;  %v5583_v55 = vadd.f32 1.0, %v3622_v31  ;;  %v3624_v37 = vpop.eup %3623  ;;  %3633 = vrcp.f32 %v5581_v7  ;;  %v5595_v45 = vmul.f32 -1.442695, %v5578_v57 }
 0x1dd   : > { %1273 = vst.msk [vmem:[%s4066_s11 + $0x90] sm:$0xff] %vm405_vm0, %v1241_v1  ;;  %v2602_v56 = vand.u32 2147483648, %v5567_v58  ;;  %3635 = vpow2.f32 %v3205_v62  ;;  %v5601_v51 = vmul.f32 -1.442695, %v5585_v41  ;;  %v2720_v48 = vand.u32 2147483647, %v5575_v26 }
 0x1de   : > { %v1810_v27 = vsel %vm1809_vm10, %v3614_v54, %v1806_v32  ;;  %v3626_v53 = vpop.eup %3625  ;;  %v2722_v3 = vand.u32 2147483648, %v5575_v26  ;;  %3637 = vrcp.f32 %v5583_v55  ;;  %v1037_v34 = vand.u32 2147483647, %v5581_v7 }
 0x1df   : > { %v1815_v24 = vsel %vm1812_vm11, %v1814_v18, %v1810_v27  ;;  %v3628_v60 = vpop.eup %3627  ;;  %v1039_v6 = vand.u32 2147483648, %v5581_v7  ;;  %v5613_v2 = vmul.f32 -1.442695, %v5597_v46  ;;  %vm2596_vm12 = vweird.f32 %v5567_v58 }
 0x1e0   : > { %v2030_v8 = vmul.f32 %v1815_v24, %v5410_v5  ;;  %v3630_v22 = vpop.eup %3629  ;;  %v2592_v50 = vmul.f32 %v3628_v60, %v5567_v58  ;;  %vm5618_vm13 = vcmp.eq.f32.partialorder %v2600_v9, 8.507059e+37  ;;  %v5622_v30 = vadd.f32 1.0, %v3624_v37 }
 0x1e1   : > { %v5625_v23 = vmul.f32 -1.442695, %v5603_v19  ;;  %v3632_v39 = vpop.eup %3631  ;;  %v2603_v63 = vor.u32 1.1754944e-38, %v2602_v56  ;;  %vm2716_vm14 = vweird.f32 %v5575_v26  ;;  %vm1033_vm15 = vweird.f32 %v5581_v7 }
 0x1e2   : > { %2062 = vst.msk [vmem:[%s4088_s14 + $0x90] sm:$0xff] %vm405_vm0, %v2030_v8  ;;  %v2593_v47 = vsub.f32 1.0, %v2592_v50  ;;  %v3634_v40 = vpop.eup %3633  ;;  %vm2597_vm1 = vweird.f32 %v3628_v60  ;;  %v2712_v25 = vmul.f32 %v3632_v39, %v5575_v26  ;;  %vm5630_vm2 = vcmp.eq.f32.partialorder %v2720_v48, 8.507059e+37 }
 0x1e3   : > { %v2723_v54 = vor.u32 1.1754944e-38, %v2722_v3  ;;  %v5634_v12 = vadd.f32 1.0, %v3626_v53  ;;  %v3636_v28 = vpop.eup %3635  ;;  %v1029_v13 = vmul.f32 %v3634_v40, %v5581_v7  ;;  %vm5637_vm3 = vcmp.eq.f32.partialorder %v1037_v34, 8.507059e+37  ;;  %vm2598_vm5 = vmor %vm2596_vm12, %vm2597_vm1 }
 0x1e4   : > { %v2594_v44 = vmul.f32 %v3628_v60, %v2593_v47  ;;  %v1040_v0 = vor.u32 1.1754944e-38, %v1039_v6  ;;  %3639 = vrcp.f32 %v5622_v30  ;;  %v3638_v42 = vpop.eup %3637  ;;  %v2713_v14 = vsub.f32 1.0, %v2712_v25 }
 0x1e5   : > { %vm1822_vm4 = vweird.f32 %v5583_v55  ;;  %v1826_v36 = vand.u32 2147483647, %v5583_v55  ;;  %v1828_v11 = vand.u32 2147483648, %v5583_v55  ;;  %v1030_v61 = vsub.f32 1.0, %v1029_v13  ;;  %v5698_v13 = vpop.f32.mrf.mxu2 }
 0x1e6   : > { %v2595_v4 = vadd.f32 %v3628_v60, %v2594_v44  ;;  %v1818_v16 = vmul.f32 %v3638_v42, %v5583_v55  ;;  %v5646_v17 = vadd.f32 1.0, %v3630_v22  ;;  %v2714_v49 = vmul.f32 %v3632_v39, %v2713_v14 }
 0x1e7   : > { %vm2717_vm6 = vweird.f32 %v3632_v39  ;;  %3641 = vrcp.f32 %v5634_v12  ;;  %v5652_v31 = vadd.f32 1.0, %v3636_v28  ;;  %v1031_v62 = vmul.f32 %v3634_v40, %v1030_v61 }
 0x1e8   : > { %v2599_v38 = vsel %vm2598_vm5, %v3628_v60, %v2595_v4  ;;  %vm1034_vm7 = vweird.f32 %v3634_v40  ;;  %v1819_v1 = vsub.f32 1.0, %v1818_v16  ;;  %v2715_v18 = vadd.f32 %v3632_v39, %v2714_v49  ;;  %vm2718_vm10 = vmor %vm2716_vm14, %vm2717_vm6  ;;  %v5714_v16 = vpop.f32.mrf.mxu1 }
 0x1e9   : > { %v2604_v32 = vsel %vm5618_vm13, %v2603_v63, %v2599_v38  ;;  %vm1823_vm8 = vweird.f32 %v3638_v42  ;;  %vm5656_vm9 = vcmp.eq.f32.partialorder %v1826_v36, 8.507059e+37  ;;  %v1032_v9 = vadd.f32 %v3634_v40, %v1031_v62  ;;  %vm1035_vm11 = vmor %vm1033_vm15, %vm1034_vm7 }
 0x1ea   : > { %v3640_v58 = vpop.eup %3639  ;;  %v2819_v27 = vmul.f32 %v2604_v32, %v5492_v29  ;;  %v1820_v53 = vmul.f32 %v3638_v42, %v1819_v1  ;;  %3643 = vrcp.f32 %v5646_v17  ;;  %v2719_v24 = vsel %vm2718_vm10, %v3632_v39, %v2715_v18  ;;  %vm1824_vm12 = vmor %vm1822_vm4, %vm1823_vm8 }
 0x1eb   : > { %v1829_v56 = vor.u32 1.1754944e-38, %v1828_v11  ;;  %v2607_v60 = vmul.f32 %v3640_v58, %v5622_v30  ;;  %v2615_v8 = vand.u32 2147483647, %v5622_v30  ;;  %v2724_v29 = vsel %vm5630_vm2, %v2723_v54, %v2719_v24  ;;  %v5709_v11 = vpop.f32.mrf.mxu0 }
 0x1ec   : > { %2851 = vst.msk [vmem:[%s4143_s17 + $0x90] sm:$0xff] %vm405_vm0, %v2819_v27  ;;  %v1036_v26 = vsel %vm1035_vm11, %v3634_v40, %v1032_v9  ;;  %v1821_v48 = vadd.f32 %v3638_v42, %v1820_v53  ;;  %v2617_v3 = vand.u32 2147483648, %v5622_v30  ;;  %v2827_v7 = vmul.f32 %v2724_v29, %v5500_v59 }
 0x1ed   : > { %v3642_v22 = vpop.eup %3641  ;;  %v1041_v50 = vsel %vm5637_vm3, %v1040_v0, %v1036_v26  ;;  %v2608_v34 = vsub.f32 1.0, %v2607_v60  ;;  %vm2611_vm13 = vweird.f32 %v5622_v30  ;;  %v2737_v47 = vand.u32 2147483648, %v5634_v12  ;;  %v5705_v0 = vpop.f32.mrf.mxu3 }
 0x1ee   : > { %v1242_v6 = vmul.f32 %v1041_v50, %v5510_v15  ;;  %v1825_v5 = vsel %vm1824_vm12, %v3638_v42, %v1821_v48  ;;  %v2727_v39 = vmul.f32 %v3642_v22, %v5634_v12  ;;  %2859 = vst.msk [vmem:[%s4143_s17 + $0xd0] sm:$0xff] %vm405_vm0, %v2827_v7  ;;  %vm2612_vm14 = vweird.f32 %v3640_v58 }
 0x1ef   : > { %v1830_v59 = vsel %vm5656_vm9, %v1829_v56, %v1825_v5  ;;  %v2609_v63 = vmul.f32 %v3640_v58, %v2608_v34  ;;  %vm5687_vm15 = vcmp.eq.f32.partialorder %v2615_v8, 8.507059e+37  ;;  %v2618_v25 = vor.u32 1.1754944e-38, %v2617_v3  ;;  %vm2613_vm2 = vmor %vm2611_vm13, %vm2612_vm14  ;;  %v5741_v8 = vpop.f32.mrf.mxu2 }
 0x1f0   : > { %v3644_v40 = vpop.eup %3643  ;;  %1274 = vst.msk [vmem:[%s4066_s11 + $0x98] sm:$0xff] %vm405_vm0, %v1242_v6  ;;  %v2031_v15 = vmul.f32 %v1830_v59, %v5514_v33  ;;  %v2728_v35 = vsub.f32 1.0, %v2727_v39  ;;  %3645 = vrcp.f32 %v5652_v31  ;;  %vm2731_vm1 = vweird.f32 %v5634_v12  ;;  %v5758_v5 = vpop.f32.mrf.mxu1 }
 0x1f1   : > { %v2610_v54 = vadd.f32 %v3640_v58, %v2609_v63  ;;  %v2735_v28 = vand.u32 2147483647, %v5634_v12  ;;  %v1044_v44 = vmul.f32 %v3644_v40, %v5646_v17  ;;  %vm2732_vm3 = vweird.f32 %v3642_v22 }
 0x1f2   : > { %2063 = vst.msk [vmem:[%s4088_s14 + $0x98] sm:$0xff] %vm405_vm0, %v2031_v15  ;;  %v2729_v10 = vmul.f32 %v3642_v22, %v2728_v35  ;;  %v2738_v33 = vor.u32 1.1754944e-38, %v2737_v47  ;;  %vm1048_vm4 = vweird.f32 %v5646_v17  ;;  %v1052_v36 = vand.u32 2147483647, %v5646_v17  ;;  %vm2733_vm6 = vmor %vm2731_vm1, %vm2732_vm3 }
 0x1f3   : > { %v2614_v42 = vsel %vm2613_vm2, %v3640_v58, %v2610_v54  ;;  %v1045_v14 = vsub.f32 1.0, %v1044_v44  ;;  %3647 = vpow2.f32 %v5595_v45  ;;  %vm1049_vm5 = vweird.f32 %v3644_v40 }
 0x1f4   : > { %v2619_v30 = vsel %vm5687_vm15, %v2618_v25, %v2614_v42  ;;  %v2730_v4 = vadd.f32 %v3642_v22, %v2729_v10  ;;  %v1054_v61 = vand.u32 2147483648, %v5646_v17  ;;  %3649 = vpow2.f32 %v5601_v51  ;;  %vm1050_vm9 = vmor %vm1048_vm4, %vm1049_vm5 }
 0x1f5   : > { %v2820_v49 = vmul.f32 %v2619_v30, %v5541_v52  ;;  %v1046_v38 = vmul.f32 %v3644_v40, %v1045_v14  ;;  %v3270_v45 = vmul.f32 -1.442695, %v5698_v13  ;;  %vm2736_vm7 = vcmp.eq.f32.partialorder %v2735_v28, 8.507059e+37  ;;  %v5744_v26 = vpop.f32.mrf.mxu3 }
 0x1f6   : > { %v3646_v62 = vpop.eup %3645  ;;  %v2734_v1 = vsel %vm2733_vm6, %v3642_v22, %v2730_v4  ;;  %vm1837_vm8 = vweird.f32 %v5652_v31  ;;  %3651 = vpow2.f32 %v5613_v2  ;;  %v3278_v18 = vmul.f32 -1.442695, %v5705_v0 }
 0x1f7   : > { %2852 = vst.msk [vmem:[%s4143_s17 + $0x98] sm:$0xff] %vm405_vm0, %v2820_v49  ;;  %v2739_v52 = vsel %vm2736_vm7, %v2738_v33, %v2734_v1  ;;  %v1047_v32 = vadd.f32 %v3644_v40, %v1046_v38  ;;  %v1833_v12 = vmul.f32 %v3646_v62, %v5652_v31  ;;  %vm1053_vm10 = vcmp.eq.f32.partialorder %v1052_v36, 8.507059e+37 }
 0x1f8   : > { %v2828_v51 = vmul.f32 %v2739_v52, %v5545_v21  ;;  %v1055_v37 = vor.u32 1.1754944e-38, %v1054_v61  ;;  %3653 = vpow2.f32 %v5625_v23  ;;  %v1841_v9 = vand.u32 2147483647, %v5652_v31 }
 0x1f9   : > { %v3648_v2 = vpop.eup %3647  ;;  %v1051_v58 = vsel %vm1050_vm9, %v3644_v40, %v1047_v32  ;;  %v1834_v27 = vsub.f32 1.0, %v1833_v12  ;;  %3655 = vpow2.f32 %v3270_v45  ;;  %v1843_v21 = vand.u32 2147483648, %v5652_v31 }
 0x1fa   : > { %2860 = vst.msk [vmem:[%s4143_s17 + $0xd8] sm:$0xff] %vm405_vm0, %v2828_v51  ;;  %v1056_v53 = vsel %vm1053_vm10, %v1055_v37, %v1051_v58  ;;  %v5737_v24 = vadd.f32 1.0, %v3648_v2  ;;  %v3143_v17 = vmul.f32 -1.442695, %v5709_v11  ;;  %v3650_v56 = vpop.eup %3649  ;;  %vm1838_vm11 = vweird.f32 %v3646_v62 }
 0x1fb   : > { %v1243_v60 = vmul.f32 %v1056_v53, %v5553_v43  ;;  %v1835_v23 = vmul.f32 %v3646_v62, %v1834_v27  ;;  %3657 = vpow2.f32 %v3278_v18  ;;  %v5748_v3 = vadd.f32 1.0, %v3650_v56  ;;  %v5753_v43 = vpop.f32.mrf.mxu0  ;;  %vm1839_vm12 = vmor %vm1837_vm8, %vm1838_vm11 }
 0x1fc   : > { %v3652_v29 = vpop.eup %3651  ;;  %3659 = vrcp.f32 %v5737_v24  ;;  %v3207_v7 = vmul.f32 -1.442695, %v5714_v16  ;;  %vm1842_vm13 = vcmp.eq.f32.partialorder %v1841_v9, 8.507059e+37  ;;  %v1844_v34 = vor.u32 1.1754944e-38, %v1843_v21 }
 0x1fd   : > { %1275 = vst.msk [vmem:[%s4066_s11 + $0xa0] sm:$0xff] %vm405_vm0, %v1243_v60  ;;  %v1836_v48 = vadd.f32 %v3646_v62, %v1835_v23  ;;  %v5750_v22 = vadd.f32 1.0, %v3652_v29  ;;  %3661 = vpow2.f32 %v3143_v17  ;;  %v3271_v6 = vmul.f32 -1.442695, %v5741_v8 }
 0x1fe   : > { %v3654_v50 = vpop.eup %3653  ;;  %v2630_v59 = vand.u32 2147483647, %v5737_v24  ;;  %3663 = vrcp.f32 %v5748_v3  ;;  %v5763_v63 = vmul.f32 -1.442695, %v5744_v26  ;;  %v2632_v31 = vand.u32 2147483648, %v5737_v24 }
 0x1ff   : > { %v3656_v39 = vpop.eup %3655  ;;  %v1840_v47 = vsel %vm1839_vm12, %v3646_v62, %v1836_v48  ;;  %3665 = vrcp.f32 %v5750_v22  ;;  %v5768_v40 = vmul.f32 -1.442695, %v5753_v43  ;;  %vm2626_vm14 = vweird.f32 %v5737_v24 }
 0x200   : > { %v1845_v55 = vsel %vm1842_vm13, %v1844_v34, %v1840_v47  ;;  %3667 = vpow2.f32 %v3207_v7  ;;  %v5773_v35 = vmul.f32 -1.442695, %v5758_v5  ;;  %v2750_v28 = vand.u32 2147483647, %v5748_v3 }
 0x201   : > { %v3658_v15 = vpop.eup %3657  ;;  %v2032_v25 = vmul.f32 %v1845_v55, %v5556_v20  ;;  %v2752_v44 = vand.u32 2147483648, %v5748_v3  ;;  %v5777_v10 = vadd.f32 1.0, %v3654_v50  ;;  %v5779_v33 = vadd.f32 1.0, %v3656_v39 }
 0x202   : > { %v3660_v54 = vpop.eup %3659  ;;  %vm5784_vm15 = vcmp.eq.f32.partialorder %v2630_v59, 8.507059e+37  ;;  %v1067_v14 = vand.u32 2147483647, %v5750_v22  ;;  %3669 = vpow2.f32 %v3271_v6  ;;  %v2633_v30 = vor.u32 1.1754944e-38, %v2632_v31 }
 0x203   : > { %2064 = vst.msk [vmem:[%s4088_s14 + $0xa0] sm:$0xff] %vm405_vm0, %v2032_v25  ;;  %v2622_v42 = vmul.f32 %v3660_v54, %v5737_v24  ;;  %v3662_v36 = vpop.eup %3661  ;;  %v1069_v4 = vand.u32 2147483648, %v5750_v22  ;;  %3671 = vrcp.f32 %v5777_v10  ;;  %v5791_v61 = vadd.f32 1.0, %v3658_v15 }
 0x204   : > { %v3664_v49 = vpop.eup %3663  ;;  %vm2746_vm1 = vweird.f32 %v5748_v3  ;;  %vm1063_vm2 = vweird.f32 %v5750_v22  ;;  %3673 = vrcp.f32 %v5779_v33  ;;  %vm2627_vm3 = vweird.f32 %v3660_v54 }
 0x205   : > { %v2623_v38 = vsub.f32 1.0, %v2622_v42  ;;  %v3666_v45 = vpop.eup %3665  ;;  %v2742_v62 = vmul.f32 %v3664_v49, %v5748_v3  ;;  %vm5797_vm4 = vcmp.eq.f32.partialorder %v2750_v28, 8.507059e+37  ;;  %v2753_v52 = vor.u32 1.1754944e-38, %v2752_v44  ;;  %vm2628_vm7 = vmor %vm2626_vm14, %vm2627_vm3 }
 0x206   : > { %v3668_v32 = vpop.eup %3667  ;;  %v1059_v18 = vmul.f32 %v3666_v45, %v5750_v22  ;;  %vm5802_vm5 = vcmp.eq.f32.partialorder %v1067_v14, 8.507059e+37  ;;  %v1856_v37 = vand.u32 2147483647, %v5777_v10  ;;  %v1070_v58 = vor.u32 1.1754944e-38, %v1069_v4 }
 0x207   : > { %v2624_v12 = vmul.f32 %v3660_v54, %v2623_v38  ;;  %v2743_v2 = vsub.f32 1.0, %v2742_v62  ;;  %vm1852_vm6 = vweird.f32 %v5777_v10  ;;  %3675 = vrcp.f32 %v5791_v61 }
 0x208   : > { %v5809_v27 = vpop.eup %3669  ;;  %v1060_v53 = vsub.f32 1.0, %v1059_v18  ;;  %v1858_v21 = vand.u32 2147483648, %v5777_v10  ;;  %v2645_v17 = vand.u32 2147483647, %v5779_v33  ;;  %vm2747_vm8 = vweird.f32 %v3664_v49 }
 0x209   : > { %v2625_v9 = vadd.f32 %v3660_v54, %v2624_v12  ;;  %v3672_v56 = vpop.eup %3671  ;;  %v2744_v60 = vmul.f32 %v3664_v49, %v2743_v2  ;;  %vm1064_vm9 = vweird.f32 %v3666_v45  ;;  %vm2641_vm10 = vweird.f32 %v5779_v33  ;;  %vm2748_vm12 = vmor %vm2746_vm1, %vm2747_vm8  ;;  %v5868_v2 = vpop.f32.mrf.mxu2 }
 0x20a   : > { %v5817_v23 = vadd.f32 1.0, %v3662_v36  ;;  %v3674_v29 = vpop.eup %3673  ;;  %v1061_v7 = vmul.f32 %v3666_v45, %v1060_v53  ;;  %v1848_v50 = vmul.f32 %v3672_v56, %v5777_v10  ;;  %vm5820_vm11 = vcmp.eq.f32.partialorder %v1856_v37, 8.507059e+37  ;;  %vm1065_vm13 = vmor %vm1063_vm2, %vm1064_vm9 }
 0x20b   : > { %v2629_v48 = vsel %vm2628_vm7, %v3660_v54, %v2625_v9  ;;  %v2647_v6 = vand.u32 2147483648, %v5779_v33  ;;  %v2745_v39 = vadd.f32 %v3664_v49, %v2744_v60  ;;  %v2637_v47 = vmul.f32 %v3674_v29, %v5779_v33 }
 0x20c   : > { %v2634_v24 = vsel %vm5784_vm15, %v2633_v30, %v2629_v48  ;;  %v2765_v59 = vand.u32 2147483647, %v5791_v61  ;;  %v1062_v31 = vadd.f32 %v3666_v45, %v1061_v7  ;;  %v1849_v15 = vsub.f32 1.0, %v1848_v50 }
 0x20d   : > { %v2821_v55 = vmul.f32 %v2634_v24, %v5578_v57  ;;  %v5833_v25 = vadd.f32 1.0, %v3668_v32  ;;  %v3676_v54 = vpop.eup %3675  ;;  %v2749_v28 = vsel %vm2748_vm12, %v3664_v49, %v2745_v39  ;;  %vm1853_vm14 = vweird.f32 %v3672_v56 }
 0x20e   : > { %v2638_v44 = vsub.f32 1.0, %v2637_v47  ;;  %3677 = vrcp.f32 %v5817_v23  ;;  %v2754_v57 = vsel %vm5797_vm4, %v2753_v52, %v2749_v28  ;;  %v1066_v3 = vsel %vm1065_vm13, %v3666_v45, %v1062_v31  ;;  %vm1854_vm1 = vmor %vm1852_vm6, %vm1853_vm14 }
 0x20f   : > { %2853 = vst.msk [vmem:[%s4143_s17 + $0xa0] sm:$0xff] %vm405_vm0, %v2821_v55  ;;  %v1850_v42 = vmul.f32 %v3672_v56, %v1849_v15  ;;  %v2757_v20 = vmul.f32 %v3676_v54, %v5791_v61  ;;  %v2829_v14 = vmul.f32 %v2754_v57, %v5585_v41  ;;  %v1071_v22 = vsel %vm5802_vm5, %v1070_v58, %v1066_v3 }
 0x210   : > { %v2639_v36 = vmul.f32 %v3674_v29, %v2638_v44  ;;  %vm2642_vm15 = vweird.f32 %v3674_v29  ;;  %v1244_v30 = vmul.f32 %v1071_v22, %v5597_v46  ;;  %v1859_v49 = vor.u32 1.1754944e-38, %v1858_v21 }
 0x211   : > { %v1851_v4 = vadd.f32 %v3672_v56, %v1850_v42  ;;  %v2758_v38 = vsub.f32 1.0, %v2757_v20  ;;  %2861 = vst.msk [vmem:[%s4143_s17 + $0xe0] sm:$0xff] %vm405_vm0, %v2829_v14  ;;  %vm2646_vm2 = vcmp.eq.f32.partialorder %v2645_v17, 8.507059e+37  ;;  %v2767_v41 = vand.u32 2147483648, %v5791_v61  ;;  %vm2643_vm3 = vmor %vm2641_vm10, %vm2642_vm15 }
 0x212   : > { %v2640_v45 = vadd.f32 %v3674_v29, %v2639_v36  ;;  %3679 = vrcp.f32 %v5833_v25  ;;  %1276 = vst.msk [vmem:[%s4066_s11 + $0xa8] sm:$0xff] %vm405_vm0, %v1244_v30  ;;  %v2648_v46 = vor.u32 1.1754944e-38, %v2647_v6  ;;  %vm2762_vm4 = vweird.f32 %v3676_v54 }
 0x213   : > { %v1855_v62 = vsel %vm1854_vm1, %v3672_v56, %v1851_v4  ;;  %v2759_v1 = vmul.f32 %v3676_v54, %v2758_v38  ;;  %vm2761_vm5 = vweird.f32 %v5791_v61  ;;  %vm5862_vm6 = vcmp.eq.f32.partialorder %v2765_v59, 8.507059e+37 }
 0x214   : > { %v3678_v52 = vpop.eup %3677  ;;  %v1860_v10 = vsel %vm5820_vm11, %v1859_v49, %v1855_v62  ;;  %v2644_v32 = vsel %vm2643_vm3, %v3674_v29, %v2640_v45  ;;  %vm2763_vm7 = vmor %vm2761_vm5, %vm2762_vm4  ;;  %v2768_v9 = vor.u32 1.1754944e-38, %v2767_v41  ;;  %vm1078_vm8 = vweird.f32 %v5817_v23  ;;  %v5886_v29 = vpop.f32.mrf.mxu3 }
 0x215   : > { %v2033_v18 = vmul.f32 %v1860_v10, %v5603_v19  ;;  %v2649_v33 = vsel %vm2646_vm2, %v2648_v46, %v2644_v32  ;;  %v2760_v51 = vadd.f32 %v3676_v54, %v2759_v1  ;;  %v1074_v37 = vmul.f32 %v3678_v52, %v5817_v23 }
 0x216   : > { %v2822_v58 = vmul.f32 %v2649_v33, %v5698_v13  ;;  %v1082_v61 = vand.u32 2147483647, %v5817_v23  ;;  %v5876_v19 = vadd.f32 1.0, %v5809_v27  ;;  %3681 = vpow2.f32 %v5763_v63 }
 0x217   : > { %2065 = vst.msk [vmem:[%s4088_s14 + $0xa8] sm:$0xff] %vm405_vm0, %v2033_v18  ;;  %v2764_v53 = vsel %vm2763_vm7, %v3676_v54, %v2760_v51  ;;  %v1075_v21 = vsub.f32 1.0, %v1074_v37  ;;  %v1084_v56 = vand.u32 2147483648, %v5817_v23  ;;  %3683 = vpow2.f32 %v5768_v40 }
 0x218   : > { %v3680_v17 = vpop.eup %3679  ;;  %2854 = vst.msk [vmem:[%s4143_s17 + $0xa8] sm:$0xff] %vm405_vm0, %v2822_v58  ;;  %v2769_v13 = vsel %vm5862_vm6, %v2768_v9, %v2764_v53  ;;  %v3272_v60 = vmul.f32 -1.442695, %v5868_v2  ;;  %vm1079_vm9 = vweird.f32 %v3678_v52  ;;  %vm1867_vm10 = vweird.f32 %v5833_v25 }
 0x219   : > { %v2830_v27 = vmul.f32 %v2769_v13, %v5705_v0  ;;  %v1076_v48 = vmul.f32 %v3678_v52, %v1075_v21  ;;  %v1863_v63 = vmul.f32 %v3680_v17, %v5833_v25  ;;  %v1871_v7 = vand.u32 2147483647, %v5833_v25  ;;  %vm1080_vm11 = vmor %vm1078_vm8, %vm1079_vm9 }
 0x21a   : > { %3685 = vrcp.f32 %v5876_v19  ;;  %v3280_v34 = vmul.f32 -1.442695, %v5886_v29  ;;  %vm1083_vm12 = vcmp.eq.f32.partialorder %v1082_v61, 8.507059e+37  ;;  %v1085_v0 = vor.u32 1.1754944e-38, %v1084_v56 }
 0x21b   : > { %2862 = vst.msk [vmem:[%s4143_s17 + $0xe8] sm:$0xff] %vm405_vm0, %v2830_v27  ;;  %v1077_v50 = vadd.f32 %v3678_v52, %v1076_v48  ;;  %v1864_v40 = vsub.f32 1.0, %v1863_v63  ;;  %3687 = vpow2.f32 %v5773_v35  ;;  %v1873_v6 = vand.u32 2147483648, %v5833_v25 }
 0x21c   : > { %3689 = vpow2.f32 %v3272_v60  ;;  %v3682_v24 = vpop.eup %3681  ;;  %vm1868_vm13 = vweird.f32 %v3680_v17  ;;  %vm1872_vm15 = vcmp.eq.f32.partialorder %v1871_v7, 8.507059e+37  ;;  %v2660_v22 = vand.u32 2147483647, %v5876_v19 }
 0x21d   : > { %v1081_v39 = vsel %vm1080_vm11, %v3678_v52, %v1077_v50  ;;  %v1865_v47 = vmul.f32 %v3680_v17, %v1864_v40  ;;  %3691 = vpow2.f32 %v3280_v34  ;;  %v3684_v59 = vpop.eup %3683  ;;  %v5900_v31 = vadd.f32 1.0, %v3682_v24  ;;  %vm1869_vm14 = vmor %vm1867_vm10, %vm1868_vm13 }
 0x21e   : > { %v1086_v55 = vsel %vm1083_vm12, %v1085_v0, %v1081_v39  ;;  %v5903_v23 = vadd.f32 1.0, %v3684_v59  ;;  %v1874_v28 = vor.u32 1.1754944e-38, %v1873_v6  ;;  %v2662_v36 = vand.u32 2147483648, %v5876_v19 }
 0x21f   : > { %v1245_v35 = vmul.f32 %v1086_v55, %v5709_v11  ;;  %v1866_v15 = vadd.f32 %v3680_v17, %v1865_v47  ;;  %3693 = vrcp.f32 %v5900_v31  ;;  %vm2656_vm2 = vweird.f32 %v5876_v19 }
 0x220   : > { %v3686_v54 = vpop.eup %3685  ;;  %3695 = vrcp.f32 %v5903_v23  ;;  %v2780_v46 = vand.u32 2147483647, %v5900_v31  ;;  %vm2661_vm4 = vcmp.eq.f32.partialorder %v2660_v22, 8.507059e+37  ;;  %v2663_v1 = vor.u32 1.1754944e-38, %v2662_v36 }
 0x221   : > { %v3688_v44 = vpop.eup %3687  ;;  %1277 = vst.msk [vmem:[%s4066_s11 + $0xb0] sm:$0xff] %vm405_vm0, %v1245_v35  ;;  %v1870_v57 = vsel %vm1869_vm14, %v3680_v17, %v1866_v15  ;;  %v2652_v3 = vmul.f32 %v3686_v54, %v5876_v19  ;;  %vm2657_vm1 = vweird.f32 %v3686_v54  ;;  %v2782_v52 = vand.u32 2147483648, %v5900_v31 }
 0x222   : > { %v3690_v11 = vpop.eup %3689  ;;  %v1875_v42 = vsel %vm1872_vm15, %v1874_v28, %v1870_v57  ;;  %v5915_v30 = vadd.f32 1.0, %v3688_v44  ;;  %vm2658_vm3 = vmor %vm2656_vm2, %vm2657_vm1  ;;  %v1097_v18 = vand.u32 2147483647, %v5903_v23  ;;  %v1099_v33 = vand.u32 2147483648, %v5903_v23 }
 0x223   : > { %v3692_v20 = vpop.eup %3691  ;;  %v2034_v14 = vmul.f32 %v1875_v42, %v5714_v16  ;;  %v2653_v25 = vsub.f32 1.0, %v2652_v3  ;;  %v5917_v4 = vadd.f32 1.0, %v3690_v11  ;;  %vm2776_vm5 = vweird.f32 %v5900_v31 }
 0x224   : > { %3697 = vrcp.f32 %v5915_v30  ;;  %v5923_v45 = vadd.f32 1.0, %v3692_v20  ;;  %vm5935_vm7 = vcmp.eq.f32.partialorder %v2780_v46, 8.507059e+37  ;;  %v2783_v21 = vor.u32 1.1754944e-38, %v2782_v52 }
 0x225   : > { %2066 = vst.msk [vmem:[%s4088_s14 + $0xb0] sm:$0xff] %vm405_vm0, %v2034_v14  ;;  %v2654_v49 = vmul.f32 %v3686_v54, %v2653_v25  ;;  %v3694_v38 = vpop.eup %3693  ;;  %3699 = vrcp.f32 %v5917_v4  ;;  %vm1093_vm8 = vweird.f32 %v5903_v23  ;;  %vm5942_vm10 = vcmp.eq.f32.partialorder %v1097_v18, 8.507059e+37 }
 0x226   : > { %v3696_v16 = vpop.eup %3695  ;;  %v2772_v62 = vmul.f32 %v3694_v38, %v5900_v31  ;;  %3701 = vrcp.f32 %v5923_v45  ;;  %vm2777_vm6 = vweird.f32 %v3694_v38  ;;  %vm1882_vm12 = vweird.f32 %v5915_v30 }
 0x227   : > { %v2655_v41 = vadd.f32 %v3686_v54, %v2654_v49  ;;  %v1089_v10 = vmul.f32 %v3696_v16, %v5903_v23  ;;  %vm1094_vm9 = vweird.f32 %v3696_v16  ;;  %vm2778_vm11 = vmor %vm2776_vm5, %vm2777_vm6  ;;  %v1886_v48 = vand.u32 2147483647, %v5915_v30 }
 0x228   : > { %v2773_v12 = vsub.f32 1.0, %v2772_v62  ;;  %vm1095_vm13 = vmor %vm1093_vm8, %vm1094_vm9  ;;  %v1888_v40 = vand.u32 2147483648, %v5915_v30  ;;  %v2677_v34 = vand.u32 2147483648, %v5917_v4  ;;  %v2675_v23 = vand.u32 2147483647, %v5917_v4 }
 0x229   : > { %v2659_v32 = vsel %vm2658_vm3, %v3686_v54, %v2655_v41  ;;  %v1090_v37 = vsub.f32 1.0, %v1089_v10  ;;  %vm1887_vm1 = vcmp.eq.f32.partialorder %v1886_v48, 8.507059e+37  ;;  %vm2671_vm3 = vweird.f32 %v5917_v4 }
 0x22a   : > { %v2664_v51 = vsel %vm2661_vm4, %v2663_v1, %v2659_v32  ;;  %v2774_v9 = vmul.f32 %v3694_v38, %v2773_v12  ;;  %v3698_v53 = vpop.eup %3697  ;;  %v1889_v28 = vor.u32 1.1754944e-38, %v1888_v40  ;;  %v2797_v57 = vand.u32 2147483648, %v5923_v45 }
 0x22b   : > { %v2823_v58 = vmul.f32 %v2664_v51, %v5741_v8  ;;  %v1091_v19 = vmul.f32 %v3696_v16, %v1090_v37  ;;  %v3700_v17 = vpop.eup %3699  ;;  %v1100_v8 = vor.u32 1.1754944e-38, %v1099_v33  ;;  %v1878_v60 = vmul.f32 %v3698_v53, %v5915_v30 }
 0x22c   : > { %v2775_v13 = vadd.f32 %v3694_v38, %v2774_v9  ;;  %v2667_v63 = vmul.f32 %v3700_v17, %v5917_v4  ;;  %v3702_v0 = vpop.eup %3701  ;;  %vm1883_vm14 = vweird.f32 %v3698_v53  ;;  %vm2672_vm15 = vweird.f32 %v3700_v17 }
 0x22d   : > { %2855 = vst.msk [vmem:[%s4143_s17 + $0xb0] sm:$0xff] %vm405_vm0, %v2823_v58  ;;  %v1092_v27 = vadd.f32 %v3696_v16, %v1091_v19  ;;  %v1879_v50 = vsub.f32 1.0, %v1878_v60  ;;  %v2787_v31 = vmul.f32 %v3702_v0, %v5923_v45  ;;  %vm1884_vm2 = vmor %vm1882_vm12, %vm1883_vm14  ;;  %vm2792_vm5 = vweird.f32 %v3702_v0 }
 0x22e   : > { %v2779_v7 = vsel %vm2778_vm11, %v3694_v38, %v2775_v13  ;;  %v2668_v39 = vsub.f32 1.0, %v2667_v63  ;;  %vm2673_vm4 = vmor %vm2671_vm3, %vm2672_vm15  ;;  %v2795_v42 = vand.u32 2147483647, %v5923_v45  ;;  %vm2676_vm6 = vcmp.eq.f32.partialorder %v2675_v23, 8.507059e+37 }
 0x22f   : > { %v2784_v6 = vsel %vm5935_vm7, %v2783_v21, %v2779_v7  ;;  %v1096_v24 = vsel %vm1095_vm13, %v3696_v16, %v1092_v27  ;;  %v1880_v55 = vmul.f32 %v3698_v53, %v1879_v50  ;;  %v2788_v44 = vsub.f32 1.0, %v2787_v31 }
 0x230   : > { %v2831_v47 = vmul.f32 %v2784_v6, %v5744_v26  ;;  %v1101_v59 = vsel %vm5942_vm10, %v1100_v8, %v1096_v24  ;;  %v2669_v15 = vmul.f32 %v3700_v17, %v2668_v39  ;;  %vm2791_vm7 = vweird.f32 %v5923_v45 }
 0x231   : > { %v1246_v35 = vmul.f32 %v1101_v59, %v5753_v43  ;;  %v1881_v54 = vadd.f32 %v3698_v53, %v1880_v55  ;;  %v2678_v43 = vor.u32 1.1754944e-38, %v2677_v34  ;;  %v2789_v11 = vmul.f32 %v3702_v0, %v2788_v44  ;;  %vm2793_vm8 = vmor %vm2791_vm7, %vm2792_vm5 }
 0x232   : > { %2863 = vst.msk [vmem:[%s4143_s17 + $0xf0] sm:$0xff] %vm405_vm0, %v2831_v47  ;;  %v2670_v26 = vadd.f32 %v3700_v17, %v2669_v15  ;;  %v2798_v4 = vor.u32 1.1754944e-38, %v2797_v57  ;;  %vm2796_vm9 = vcmp.eq.f32.partialorder %v2795_v42, 8.507059e+37 }
 0x233   : > { %1278 = vst.msk [vmem:[%s4066_s11 + $0xb8] sm:$0xff] %vm405_vm0, %v1246_v35  ;;  %v1885_v3 = vsel %vm1884_vm2, %v3698_v53, %v1881_v54  ;;  %v2790_v36 = vadd.f32 %v3702_v0, %v2789_v11 }
 0x234   : > { %v1890_v20 = vsel %vm1887_vm1, %v1889_v28, %v1885_v3  ;;  %v2674_v14 = vsel %vm2673_vm4, %v3700_v17, %v2670_v26 }
 0x235   : > { %v2035_v25 = vmul.f32 %v1890_v20, %v5758_v5  ;;  %v2679_v22 = vsel %vm2676_vm6, %v2678_v43, %v2674_v14  ;;  %v2794_v49 = vsel %vm2793_vm8, %v3702_v0, %v2790_v36 }
 0x236   : > { %v2824_v30 = vmul.f32 %v2679_v22, %v5868_v2  ;;  %v2799_v38 = vsel %vm2796_vm9, %v2798_v4, %v2794_v49 }
 0x237   : > { %2067 = vst.msk [vmem:[%s4088_s14 + $0xb8] sm:$0xff] %vm405_vm0, %v2035_v25  ;;  %v2832_v16 = vmul.f32 %v2799_v38, %v5886_v29 }
 0x238   : > { %2856 = vst.msk [vmem:[%s4143_s17 + $0xb8] sm:$0xff] %vm405_vm0, %v2824_v30 }
 0x239   : > { %2864 = vst.msk [vmem:[%s4143_s17 + $0xf8] sm:$0xff] %vm405_vm0, %v2832_v16 }
 0x23a PF: > { %s17_s23 = sadd.s32 1, %s3725_s23   ;;  %s6140_s21 = smov %s3721_s22 }
 0x23b   : > { %p14_p5 = scmp.ge.s32.totalorder %s17_s23, 6   ;;  %s6141_s22 = smov %s6143_s24 }
 0x23d   :  { %16 = sbr.rel (!%p14_p5) target bundleno = 2 (0x2), region = 99 }

</bundles_post_ra>
